<compile_context>
chip_gen: v6e
topology: v6e:2x2x1
jax: 0.10.0
libtpu: 0.0.40
codegen_flags: <defaults>
</compile_context>

<pallas_src>
import math
import numpy as np
import jax
import jax.numpy as jnp
from jax import lax
from jax.experimental import pallas as pl
from jax.experimental.pallas import tpu as pltpu

F32 = jnp.float32
BF16 = jnp.bfloat16


# ===================== small helpers =====================

def _layer_norm_vals(x, g, b, eps=1e-5):
    mu = jnp.mean(x, axis=-1, keepdims=True)
    var = jnp.mean((x - mu) ** 2, axis=-1, keepdims=True)
    return (x - mu) * lax.rsqrt(var + eps) * g + b


def _apply_act(x, act):
    if act == "relu":
        return jnp.maximum(x, 0.0)
    if act == "gelu":
        # TODO(synk): tanh approximation, PyTorch F.gelu default is erf-based.
        return 0.5 * x * (1.0 + jnp.tanh(0.7978845608028654 * (x + 0.044715 * x ** 3)))
    if act == "elu":
        return jnp.where(x > 0.0, x, jnp.exp(jnp.minimum(x, 0.0)) - 1.0)
    return x


def _rep(shape):
    """BlockSpec for an array replicated (resident) across the grid."""
    n = len(shape)
    return pl.BlockSpec(tuple(shape), lambda *_: (0,) * n)


def _batched(arr_shape):
    """BlockSpec taking one leading-(batch)-dim slice per grid step."""
    n = len(arr_shape)
    blk = (1,) + tuple(arr_shape[1:])
    return pl.BlockSpec(blk, lambda b: (b,) + (0,) * (n - 1))


def _par():
    return pltpu.CompilerParams(dimension_semantics=("parallel",))


# ---- in-kernel circular row roll (replaces the old (L,L) shift matrices) ----

_ROLL_MODE = None  # ("pltpu", sign_multiplier) or ("concat", 0); resolved once.


def _probe_roll_mode():
    """Detect pltpu.roll availability + direction on the sublane axis once."""
    def k(x_ref, o_ref):
        o_ref[...] = pltpu.roll(x_ref[...], 1, 0)
    try:
        x = jnp.tile(jnp.arange(16, dtype=F32)[:, None], (1, 128))
        y = np.asarray(pl.pallas_call(
            k, out_shape=jax.ShapeDtypeStruct((16, 128), F32))(x))
        if y[1, 0] == 0.0:      # jnp.roll convention: out[i] = x[(i - shift) % L]
            return ("pltpu", -1)
        if y[0, 0] == 1.0:      # opposite convention: out[i] = x[(i + shift) % L]
            return ("pltpu", +1)
    except Exception:
        pass
    return ("concat", 0)


def _roll_rows(x, k):
    """out[t] = x[(t + k) % L] along axis 0 (static k), inside a kernel."""
    global _ROLL_MODE
    if _ROLL_MODE is None:
        _ROLL_MODE = _probe_roll_mode()
    L = x.shape[0]
    if k % L == 0:
        return x
    mode, m = _ROLL_MODE
    if mode == "pltpu":
        return pltpu.roll(x, (m * k) % L, 0)          # XLU slot, no extra DMA
    kk = k % L
    return jnp.concatenate([x[kk:], x[:kk]], axis=0)  # fallback


# ===================== Pallas kernels =====================

# ---- fused DataEmbedding: circular Conv1d(k=3,p=1) + time-feature linear + PE ----

def _embed_kernel(x_ref, mk_ref, pe_ref, w_ref, o_ref):
    x = x_ref[0]                                    # (L, Cin) f32
    mk = mk_ref[0]                                  # (L, Cm)
    xp = _roll_rows(x, -1)                          # x[(t-1) % L]
    xn = _roll_rows(x, +1)                          # x[(t+1) % L]
    xin = jnp.concatenate([xp, x, xn, mk], axis=1).astype(BF16)
    acc = jnp.dot(xin, w_ref[...], preferred_element_type=F32)
    o_ref[0] = acc + pe_ref[...]


def pallas_data_embedding(p, x, x_mark):
    B, L, Cin = x.shape
    Cm = x_mark.shape[-1]
    D = p["Wt"].shape[1]
    pe = p["pe"][:L]
    w_all = jnp.concatenate([p["W0"], p["W1"], p["W2"], p["Wt"]], axis=0).astype(BF16)
    return pl.pallas_call(
        _embed_kernel,
        out_shape=jax.ShapeDtypeStruct((B, L, D), F32),
        grid=(B,),
        in_specs=[_batched(x.shape), _batched(x_mark.shape),
                  _rep((L, D)), _rep((3 * Cin + Cm, D))],
        out_specs=_batched((B, L, D)),
        compiler_params=_par(),
    )(x.astype(F32), x_mark.astype(F32), pe, w_all)


# ---- fused distilling ConvLayer: circular Conv1d(k=3,p=2) + BN(eval) + ELU ----

def _distil_conv_kernel(x_ref, w_ref, sc_ref, bi_ref, o_ref):
    x = x_ref[0]                                    # (L, C)
    xm2 = _roll_rows(x, -2)                         # x[(t-2) % L]
    xm1 = _roll_rows(x, -1)                         # x[(t-1) % L]
    xin = jnp.concatenate([xm2, xm1, x], axis=1).astype(BF16)
    acc = jnp.dot(xin, w_ref[...], preferred_element_type=F32)
    acc = acc * sc_ref[...] + bi_ref[...]           # folded BatchNorm (eval)
    o_ref[0] = jnp.where(acc > 0.0, acc, jnp.exp(jnp.minimum(acc, 0.0)) - 1.0)  # ELU


def maxpool1d_k3_s2_p1(x):
    """MaxPool1d(kernel=3, stride=2, padding=1) over the time axis of (B, L, C)."""
    B, L, C = x.shape
    neg = jnp.full((B, 1, C), -jnp.inf, x.dtype)
    xp = jnp.concatenate([neg, x, neg], axis=1)
    L_out = (L + 2 - 3) // 2 + 1
    idx = jnp.arange(L_out) * 2
    return jnp.maximum(jnp.maximum(xp[:, idx, :], xp[:, idx + 1, :]), xp[:, idx + 2, :])


def conv_layer(p, x):
    B, L, C = x.shape
    eps = 1e-5
    # TODO(synk): BatchNorm1d folded with running_mean=0, running_var=1 (init values).
    s = p["bn_g"] / jnp.sqrt(1.0 + eps)
    eff_bias = p["conv_b"] * s + p["bn_b"]
    w_all = jnp.concatenate([p["W0"], p["W1"], p["W2"]], axis=0).astype(BF16)
    y = pl.pallas_call(
        _distil_conv_kernel,
        out_shape=jax.ShapeDtypeStruct((B, L, C), F32),
        grid=(B,),
        in_specs=[_batched(x.shape), _rep((3 * C, C)), _rep((1, C)), _rep((1, C))],
        out_specs=_batched((B, L, C)),
        compiler_params=_par(),
    )(x.astype(F32), w_all, s.reshape(1, C).astype(F32), eff_bias.reshape(1, C).astype(F32))
    # circular padding=2 output (length L+2) == periodic extension of the length-L result
    y_full = jnp.concatenate([y, y[:, :2, :]], axis=1)
    return maxpool1d_k3_s2_p1(y_full)


# ---- fused QKV (or any x @ W + b) projection, grid over batch, resident weights ----

def _qkv_kernel(x_ref, w_ref, b_ref, o_ref):
    o_ref[0] = jnp.dot(x_ref[0].astype(BF16), w_ref[...],
                       preferred_element_type=F32) + b_ref[...]


def pallas_qkv(x, W, b):
    B, L, D = x.shape
    N = W.shape[1]
    ce = pl.CostEstimate(flops=2 * B * L * D * N, transcendentals=0,
                         bytes_accessed=4 * B * L * (D + N) + 2 * D * N)
    return pl.pallas_call(
        _qkv_kernel,
        out_shape=jax.ShapeDtypeStruct((B, L, N), F32),
        grid=(B,),
        in_specs=[_batched(x.shape), _rep((D, N)), _rep((1, N))],
        out_specs=_batched((B, L, N)),
        compiler_params=_par(),
        cost_estimate=ce,
    )(x.astype(F32), W.astype(BF16), b.reshape(1, N).astype(F32))


# ---- fused ProbSparse attention core: scores -> scale -> (mask) -> softmax -> @V ----

def _attn_body(q_ref, k_ref, v_ref, idx_ref, o_ref, scale):
    q = q_ref[0].astype(BF16)                                # (H, u, D)
    k = k_ref[0].astype(BF16)                                # (H, Lk, D)
    s = jnp.einsum("hud,hkd->huk", q, k, preferred_element_type=F32) * scale
    if idx_ref is not None:
        col = lax.broadcasted_iota(jnp.int32, s.shape, 2)
        s = jnp.where(col > idx_ref[0], -1e30, s)            # causal ProbMask
    m = jnp.max(s, axis=-1, keepdims=True)
    p = jnp.exp(s - m)
    p = p * pl.reciprocal(jnp.sum(p, axis=-1, keepdims=True), approx=True)
    o_ref[0] = jnp.einsum("huk,hkd->hud", p.astype(BF16), v_ref[0].astype(BF16),
                          preferred_element_type=F32)


def _attn_core_kernel(scale, masked):
    if masked:
        def kernel(q_ref, k_ref, v_ref, idx_ref, o_ref):
            _attn_body(q_ref, k_ref, v_ref, idx_ref, o_ref, scale)
    else:
        def kernel(q_ref, k_ref, v_ref, o_ref):
            _attn_body(q_ref, k_ref, v_ref, None, o_ref, scale)
    return kernel


def pallas_sparse_attn(q, k, v, m_top, scale):
    """q:(B,H,u,D)  k,v:(B,H,Lk,D)  m_top:(B,H,u) int or None -> (B,H,u,D)."""
    B, H, u, D = q.shape
    Lk = k.shape[2]
    ce = pl.CostEstimate(flops=4 * B * H * u * Lk * D,
                         transcendentals=B * H * u * Lk,
                         bytes_accessed=4 * (q.size + k.size + v.size + q.size))
    args = [q.astype(F32), k.astype(F32), v.astype(F32)]
    in_specs = [_batched(q.shape), _batched(k.shape), _batched(v.shape)]
    if m_top is not None:
        mt = m_top.reshape(B, H, u, 1).astype(jnp.int32)
        args.append(mt)
        in_specs.append(_batched(mt.shape))
    return pl.pallas_call(
        _attn_core_kernel(scale, m_top is not None),
        out_shape=jax.ShapeDtypeStruct((B, H, u, D), F32),
        grid=(B,),
        in_specs=in_specs,
        out_specs=_batched((B, H, u, D)),
        compiler_params=_par(),
        cost_estimate=ce,
    )(*args)


# ---- fused "attn out-proj + residual + LN1 + FFN + residual + LN2 [+ final LN]" ----

def _attn_ffn_block_kernel(act, final_ln):
    def kernel(x_ref, c_ref, wo_ref, bo_ref, w1_ref, b1_ref, w2_ref, b2_ref,
               g1_ref, e1_ref, g2_ref, e2_ref, *rest):
        o_ref = rest[-1]
        delta = jnp.dot(c_ref[0].astype(BF16), wo_ref[...],
                        preferred_element_type=F32) + bo_ref[...]
        x = _layer_norm_vals(x_ref[0] + delta, g1_ref[...], e1_ref[...])
        y = _apply_act(jnp.dot(x.astype(BF16), w1_ref[...],
                               preferred_element_type=F32) + b1_ref[...], act)
        y = jnp.dot(y.astype(BF16), w2_ref[...], preferred_element_type=F32) + b2_ref[...]
        out = _layer_norm_vals(x + y, g2_ref[...], e2_ref[...])
        if final_ln:
            out = _layer_norm_vals(out, rest[0][...], rest[1][...])
        o_ref[0] = out
    return kernel


def pallas_attn_ffn_block(x, ctx, Wo, bo, W1, b1, W2, b2, g1, e1, g2, e2, act,
                          final_ln=None):
    B, L, D = x.shape
    Fh = W1.shape[1]
    args = [x.astype(F32), ctx.astype(F32),
            Wo.astype(BF16), bo.reshape(1, D).astype(F32),
            W1.astype(BF16), b1.reshape(1, Fh).astype(F32),
            W2.astype(BF16), b2.reshape(1, D).astype(F32),
            g1.reshape(1, D).astype(F32), e1.reshape(1, D).astype(F32),
            g2.reshape(1, D).astype(F32), e2.reshape(1, D).astype(F32)]
    in_specs = [_batched(x.shape), _batched(ctx.shape),
                _rep((D, D)), _rep((1, D)), _rep((D, Fh)), _rep((1, Fh)),
                _rep((Fh, D)), _rep((1, D)),
                _rep((1, D)), _rep((1, D)), _rep((1, D)), _rep((1, D))]
    if final_ln is not None:
        g3, e3 = final_ln
        args += [g3.reshape(1, D).astype(F32), e3.reshape(1, D).astype(F32)]
        in_specs += [_rep((1, D)), _rep((1, D))]
    R = B * L
    ce = pl.CostEstimate(
        flops=2 * R * D * (D + 2 * Fh) + 20 * R * D,
        transcendentals=R * Fh if act in ("gelu", "elu") else 0,
        bytes_accessed=4 * 3 * R * D + 2 * (D * D + 2 * D * Fh))
    return pl.pallas_call(
        _attn_ffn_block_kernel(act, final_ln is not None),
        out_shape=jax.ShapeDtypeStruct((B, L, D), F32),
        grid=(B,),
        in_specs=in_specs,
        out_specs=_batched((B, L, D)),
        compiler_params=_par(),
        cost_estimate=ce,
    )(*args)


# ---- fused decoder "self out-proj + residual + LN1 + cross-Q proj + cross-KV proj" ----

def _selfproj_ln_crossqkv_kernel(x_ref, c_ref, enc_ref, wo_ref, bo_ref, g_ref, e_ref,
                                 wq_ref, bq_ref, wkv_ref, bkv_ref,
                                 xn_ref, q_ref, kv_ref):
    delta = jnp.dot(c_ref[0].astype(BF16), wo_ref[...],
                    preferred_element_type=F32) + bo_ref[...]
    xn = _layer_norm_vals(x_ref[0] + delta, g_ref[...], e_ref[...])
    xn_ref[0] = xn
    q_ref[0] = jnp.dot(xn.astype(BF16), wq_ref[...],
                       preferred_element_type=F32) + bq_ref[...]
    kv_ref[0] = jnp.dot(enc_ref[0].astype(BF16), wkv_ref[...],
                        preferred_element_type=F32) + bkv_ref[...]


def pallas_selfproj_ln_crossqkv(x, ctx, enc, Wo, bo, g, e, Wq, bq, Wkv, bkv):
    B, Ld, D = x.shape
    Le = enc.shape[1]
    N2 = Wkv.shape[1]
    out_shape = (jax.ShapeDtypeStruct((B, Ld, D), F32),
                 jax.ShapeDtypeStruct((B, Ld, D), F32),
                 jax.ShapeDtypeStruct((B, Le, N2), F32))
    out_specs = (_batched((B, Ld, D)), _batched((B, Ld, D)), _batched((B, Le, N2)))
    ce = pl.CostEstimate(flops=2 * B * (Ld * D * D + Ld * D * D + Le * D * N2),
                         transcendentals=0,
                         bytes_accessed=4 * B * (3 * Ld * D + Le * D + Le * N2))
    return pl.pallas_call(
        _selfproj_ln_crossqkv_kernel,
        out_shape=out_shape,
        grid=(B,),
        in_specs=[_batched(x.shape), _batched(ctx.shape), _batched(enc.shape),
                  _rep((D, D)), _rep((1, D)), _rep((1, D)), _rep((1, D)),
                  _rep((D, D)), _rep((1, D)), _rep((D, N2)), _rep((1, N2))],
        out_specs=out_specs,
        compiler_params=_par(),
        cost_estimate=ce,
    )(x.astype(F32), ctx.astype(F32), enc.astype(F32),
      Wo.astype(BF16), bo.reshape(1, D).astype(F32),
      g.reshape(1, D).astype(F32), e.reshape(1, D).astype(F32),
      Wq.astype(BF16), bq.reshape(1, D).astype(F32),
      Wkv.astype(BF16), bkv.reshape(1, N2).astype(F32))


# ===================== ProbSparse attention (XLA glue + fused core) =====================

def prob_attention(q, k, v, mask_flag, factor, sample_seed):
    """q: (B, L_Q, H, D); k, v: (B, L_K, H, D) -> (B, L_Q, H, D)."""
    q = jnp.transpose(q, (0, 2, 1, 3))
    k = jnp.transpose(k, (0, 2, 1, 3))
    v = jnp.transpose(v, (0, 2, 1, 3))
    B, H, L_Q, D = q.shape
    L_K = k.shape[2]

    U_part = min(int(factor * math.ceil(math.log(L_K))), L_K)
    u = min(int(factor * math.ceil(math.log(L_Q))), L_Q)

    # TODO(synk): torch.randint sampling RNG cannot be reproduced; static numpy seed
    # (resolved at trace time -> constant-index gather, no in-graph PRNG ops).
    index_sample = np.random.RandomState(sample_seed).randint(0, L_K, size=(L_Q, U_part))

    K_sample = k[:, :, index_sample, :]                          # (B,H,L_Q,U_part,D)
    Q_K_sample = jnp.einsum("bhld,bhlud->bhlu", q, K_sample)     # sparsity scoring
    M = Q_K_sample.max(axis=-1) - Q_K_sample.sum(axis=-1) / L_K
    M_top = lax.top_k(M, u)[1]                                   # (B,H,u)

    Q_reduce = jnp.take_along_axis(q, M_top[..., None], axis=2)  # (B,H,u,D)
    scale = 1.0 / math.sqrt(D)

    ctx_upd = pallas_sparse_attn(Q_reduce, k, v,
                                 M_top if mask_flag else None, scale)

    if mask_flag:
        context = jnp.cumsum(v, axis=2)                          # masked init: cumsum(V)
    else:
        context = jnp.broadcast_to(v.mean(axis=2, keepdims=True), (B, H, L_Q, D))

    b_idx = jnp.arange(B)[:, None, None]
    h_idx = jnp.arange(H)[None, :, None]
    context = context.at[b_idx, h_idx, M_top].set(ctx_upd)
    return jnp.transpose(context, (0, 2, 1, 3))


# ===================== Encoder / Decoder layers =====================

def encoder_layer(p, x, factor, n_heads, activation, seed, final_ln=None):
    a = p["attn"]
    B, L, Dm = x.shape
    dk = Dm // n_heads
    Wqkv = jnp.concatenate([a["Wq"], a["Wk"], a["Wv"]], axis=1)
    bqkv = jnp.concatenate([a["bq"], a["bk"], a["bv"]])
    qkv = pallas_qkv(x, Wqkv, bqkv)
    q, kk, vv = jnp.split(qkv, 3, axis=-1)
    ctx = prob_attention(q.reshape(B, L, n_heads, dk),
                         kk.reshape(B, L, n_heads, dk),
                         vv.reshape(B, L, n_heads, dk),
                         False, factor, seed).reshape(B, L, Dm)
    return pallas_attn_ffn_block(
        x, ctx, a["Wo"], a["bo"],
        p["ff1_W"], p["ff1_b"], p["ff2_W"], p["ff2_b"],
        p["norm1_g"], p["norm1_b"], p["norm2_g"], p["norm2_b"], activation,
        final_ln=final_ln)


def decoder_layer(p, x, cross, factor, n_heads, activation, seed_self, seed_cross,
                  final_ln=None):
    B, Ld, Dm = x.shape
    Le = cross.shape[1]
    dk = Dm // n_heads

    sa = p["self_attn"]
    Wqkv = jnp.concatenate([sa["Wq"], sa["Wk"], sa["Wv"]], axis=1)
    bqkv = jnp.concatenate([sa["bq"], sa["bk"], sa["bv"]])
    qkv = pallas_qkv(x, Wqkv, bqkv)
    q, kk, vv = jnp.split(qkv, 3, axis=-1)
    ctx_self = prob_attention(q.reshape(B, Ld, n_heads, dk),
                              kk.reshape(B, Ld, n_heads, dk),
                              vv.reshape(B, Ld, n_heads, dk),
                              True, factor, seed_self).reshape(B, Ld, Dm)

    ca = p["cross_attn"]
    Wkv = jnp.concatenate([ca["Wk"], ca["Wv"]], axis=1)
    bkv = jnp.concatenate([ca["bk"], ca["bv"]])
    x1, qc, kvc = pallas_selfproj_ln_crossqkv(
        x, ctx_self, cross, sa["Wo"], sa["bo"], p["norm1_g"], p["norm1_b"],
        ca["Wq"], ca["bq"], Wkv, bkv)
    kc, vc = jnp.split(kvc, 2, axis=-1)
    ctx_cross = prob_attention(qc.reshape(B, Ld, n_heads, dk),
                               kc.reshape(B, Le, n_heads, dk),
                               vc.reshape(B, Le, n_heads, dk),
                               False, factor, seed_cross).reshape(B, Ld, Dm)
    return pallas_attn_ffn_block(
        x1, ctx_cross, ca["Wo"], ca["bo"],
        p["ff1_W"], p["ff1_b"], p["ff2_W"], p["ff2_b"],
        p["norm2_g"], p["norm2_b"], p["norm3_g"], p["norm3_b"], activation,
        final_ln=final_ln)


def informer_forward(params, cfg, x_enc, x_mark_enc, x_dec, x_mark_dec):
    factor, n_heads, act = cfg["factor"], cfg["n_heads"], cfg["activation"]

    enc_out = pallas_data_embedding(params["enc_emb"], x_enc, x_mark_enc)
    e_layers = cfg["e_layers"]
    enc_final_ln = (params["enc_norm_g"], params["enc_norm_b"])
    if cfg.get("distil", True):
        for l in range(e_layers - 1):
            enc_out = encoder_layer(params["enc_layers"][l], enc_out, factor,
                                    n_heads, act, 1000 + l)
            enc_out = conv_layer(params["enc_convs"][l], enc_out)
        enc_out = encoder_layer(params["enc_layers"][e_layers - 1], enc_out, factor,
                                n_heads, act, 1000 + e_layers, final_ln=enc_final_ln)
    else:
        for l in range(e_layers):
            fin = enc_final_ln if l == e_layers - 1 else None
            enc_out = encoder_layer(params["enc_layers"][l], enc_out, factor,
                                    n_heads, act, 1000 + l, final_ln=fin)

    dec_out = pallas_data_embedding(params["dec_emb"], x_dec, x_mark_dec)
    d_layers = cfg["d_layers"]
    dec_final_ln = (params["dec_norm_g"], params["dec_norm_b"])
    for l in range(d_layers):
        fin = dec_final_ln if l == d_layers - 1 else None
        dec_out = decoder_layer(params["dec_layers"][l], dec_out, enc_out, factor,
                                n_heads, act, 2000 + 2 * l, 2001 + 2 * l, final_ln=fin)

    # Final (d_model -> c_out=4) projection: lane-sparse, kept in XLA by design.
    dec_out = dec_out[:, -cfg["pred_len"]:, :]
    return jnp.dot(dec_out, params["proj_W"]) + params["proj_b"]   # output_attention=False


# ===================== Deterministic parameter init =====================

def positional_embedding(max_len, d_model):
    position = np.arange(max_len, dtype=np.float32)[:, None]
    div_term = np.exp(np.arange(0, d_model, 2, dtype=np.float32)
                      * -(math.log(10000.0) / d_model))
    pe = np.zeros((max_len, d_model), np.float32)
    pe[:, 0::2] = np.sin(position * div_term)
    pe[:, 1::2] = np.cos(position * div_term)
    return jnp.asarray(pe)


def _keygen(key):
    while True:
        key, sub = jax.random.split(key)
        yield sub


def _nrm(k, shape, scale=0.05):
    return scale * jax.random.normal(k, shape, F32)


def init_attn(kg, d_model, n_heads):
    dk = d_model // n_heads
    return dict(
        Wq=_nrm(next(kg), (d_model, n_heads * dk)), bq=_nrm(next(kg), (n_heads * dk,)),
        Wk=_nrm(next(kg), (d_model, n_heads * dk)), bk=_nrm(next(kg), (n_heads * dk,)),
        Wv=_nrm(next(kg), (d_model, n_heads * dk)), bv=_nrm(next(kg), (n_heads * dk,)),
        Wo=_nrm(next(kg), (n_heads * dk, d_model)), bo=_nrm(next(kg), (d_model,)),
    )


def init_enc_layer(kg, d_model, d_ff, n_heads):
    return dict(
        attn=init_attn(kg, d_model, n_heads),
        ff1_W=_nrm(next(kg), (d_model, d_ff)), ff1_b=_nrm(next(kg), (d_ff,)),
        ff2_W=_nrm(next(kg), (d_ff, d_model)), ff2_b=_nrm(next(kg), (d_model,)),
        norm1_g=jnp.ones((d_model,), F32), norm1_b=jnp.zeros((d_model,), F32),
        norm2_g=jnp.ones((d_model,), F32), norm2_b=jnp.zeros((d_model,), F32),
    )


def init_dec_layer(kg, d_model, d_ff, n_heads):
    p = dict(
        self_attn=init_attn(kg, d_model, n_heads),
        cross_attn=init_attn(kg, d_model, n_heads),
        ff1_W=_nrm(next(kg), (d_model, d_ff)), ff1_b=_nrm(next(kg), (d_ff,)),
        ff2_W=_nrm(next(kg), (d_ff, d_model)), ff2_b=_nrm(next(kg), (d_model,)),
    )
    for n in ("norm1", "norm2", "norm3"):
        p[n + "_g"] = jnp.ones((d_model,), F32)
        p[n + "_b"] = jnp.zeros((d_model,), F32)
    return p


def init_conv_layer(kg, d_model):
    W = _nrm(next(kg), (d_model, d_model, 3))                 # (Cout, Cin, k) torch layout
    return dict(
        W0=jnp.transpose(W[:, :, 0]), W1=jnp.transpose(W[:, :, 1]), W2=jnp.transpose(W[:, :, 2]),
        conv_b=_nrm(next(kg), (d_model,)),
        bn_g=jnp.ones((d_model,), F32),
        bn_b=jnp.zeros((d_model,), F32),
    )


def init_embedding(kg, c_in, d_model, mark_dim, max_len=5000):
    W = _nrm(next(kg), (d_model, c_in, 3))                    # TokenEmbedding conv weight
    return dict(
        W0=jnp.transpose(W[:, :, 0]), W1=jnp.transpose(W[:, :, 1]), W2=jnp.transpose(W[:, :, 2]),
        Wt=_nrm(next(kg), (mark_dim, d_model)),               # TimeFeatureEmbedding (no bias)
        pe=positional_embedding(max_len, d_model),
    )


def init_params(key, cfg):
    kg = _keygen(key)
    d_model, d_ff, n_heads = cfg["d_model"], cfg["d_ff"], cfg["n_heads"]
    return dict(
        enc_emb=init_embedding(kg, cfg["enc_in"], d_model, cfg["mark_dim"]),
        dec_emb=init_embedding(kg, cfg["dec_in"], d_model, cfg["mark_dim"]),
        enc_layers=[init_enc_layer(kg, d_model, d_ff, n_heads) for _ in range(cfg["e_layers"])],
        enc_convs=[init_conv_layer(kg, d_model) for _ in range(cfg["e_layers"] - 1)],
        enc_norm_g=jnp.ones((d_model,), F32), enc_norm_b=jnp.zeros((d_model,), F32),
        dec_layers=[init_dec_layer(kg, d_model, d_ff, n_heads) for _ in range(cfg["d_layers"])],
        dec_norm_g=jnp.ones((d_model,), F32), dec_norm_b=jnp.zeros((d_model,), F32),
        proj_W=_nrm(next(kg), (d_model, cfg["c_out"])), proj_b=_nrm(next(kg), (cfg["c_out"],)),
    )


# ===================== Run =====================

if __name__ == "__main__":
    cfg = dict(enc_in=4, dec_in=4, c_out=4, d_model=32, n_heads=4,
               e_layers=2, d_layers=1, d_ff=64, factor=5, dropout=0.0,
               activation="relu", distil=True, mark_dim=4,   # freq='h' -> 4 time features
               seq_len=16, label_len=8, pred_len=8, output_attention=False)

    _ROLL_MODE = _probe_roll_mode()   # resolve roll availability/direction once, pre-jit

    root = jax.random.PRNGKey(0)
    k_param, k1, k2, k3, k4 = jax.random.split(root, 5)
    params = init_params(k_param, cfg)

    B = 2
    dec_len = cfg["label_len"] + cfg["pred_len"]
    x_enc = jax.random.normal(k1, (B, cfg["seq_len"], cfg["enc_in"]), F32)
    x_mark_enc = jax.random.normal(k2, (B, cfg["seq_len"], cfg["mark_dim"]), F32)
    x_dec = jax.random.normal(k3, (B, dec_len, cfg["dec_in"]), F32)
    x_mark_dec = jax.random.normal(k4, (B, dec_len, cfg["mark_dim"]), F32)

    fwd = jax.jit(lambda p, a, b, c, d: informer_forward(p, cfg, a, b, c, d))
    out = fwd(params, x_enc, x_mark_enc, x_dec, x_mark_dec)
    out = jax.block_until_ready(out)
    assert out.shape == (B, cfg["pred_len"], cfg["c_out"]), out.shape
    assert bool(jnp.all(jnp.isfinite(out)))
    print("KERNEL_OK")
</pallas_src>

<mosaic_0001>
module attributes {stable_mosaic.version = 11 : i64} {
  func.func @k(%arg0: memref<16x128xf32, #tpu.memory_space<vmem>>, %arg1: memref<16x128xf32, #tpu.memory_space<vmem>>) attributes {dimension_semantics = [], scalar_prefetch = 0 : i64, scratch_operands = 0 : i64, tpu.core_type = #tpu.core_type<tc>} {
    %c0 = arith.constant 0 : index
    %c0_0 = arith.constant 0 : index
    %0 = vector.load %arg0[%c0, %c0_0] : memref<16x128xf32, #tpu.memory_space<vmem>>, vector<16x128xf32>
    %c1_i32 = arith.constant 1 : i32
    %1 = tpu.dynamic_rotate %0 by %c1_i32 dim 0 : vector<16x128xf32>, i32 -> vector<16x128xf32>
    %c0_1 = arith.constant 0 : index
    %c0_2 = arith.constant 0 : index
    %2 = vector.load %arg1[%c0_1, %c0_2] : memref<16x128xf32, #tpu.memory_space<vmem>>, vector<16x128xf32>
    tpu.vector_store %arg1[%c0_1, %c0_2], %1 {strides = array<i32>} : memref<16x128xf32, #tpu.memory_space<vmem>>, vector<16x128xf32>,
    return
  }
}

module attributes {stable_mosaic.version = 11 : i64} {
  func.func @_qkv_kernel(%arg0: i32, %arg1: memref<1x16x32xf32, #tpu.memory_space<vmem>>, %arg2: memref<32x96xbf16, #tpu.memory_space<vmem>>, %arg3: memref<1x96xf32, #tpu.memory_space<vmem>>, %arg4: memref<1x16x96xf32, #tpu.memory_space<vmem>>) attributes {dimension_semantics = [#tpu.dimension_semantics<parallel>], iteration_bounds = array<i64: 2>, scalar_prefetch = 0 : i64, scratch_operands = 0 : i64, tpu.core_type = #tpu.core_type<tc>, window_params = [{transform_indices = @transform_0, window_bounds = array<i64: 1, 16, 32>}, {pipeline_mode = #tpu.pipeline_mode<synchronous>, transform_indices = @transform_1, window_bounds = array<i64: 32, 96>}, {pipeline_mode = #tpu.pipeline_mode<synchronous>, transform_indices = @transform_2, window_bounds = array<i64: 1, 96>}, {transform_indices = @transform_3, window_bounds = array<i64: 1, 16, 96>}]} {
    %c0 = arith.constant 0 : index
    %c0_0 = arith.constant 0 : index
    %c0_1 = arith.constant 0 : index
    %0 = vector.load %arg1[%c0, %c0_0, %c0_1] : memref<1x16x32xf32, #tpu.memory_space<vmem>>, vector<1x16x32xf32>
    %1 = vector.shape_cast %0 : vector<1x16x32xf32> to vector<16x32xf32>
    %2 = arith.truncf %1 : vector<16x32xf32> to vector<16x32xbf16>
    %c0_2 = arith.constant 0 : index
    %c0_3 = arith.constant 0 : index
    %3 = vector.load %arg2[%c0_2, %c0_3] : memref<32x96xbf16, #tpu.memory_space<vmem>>, vector<32x96xbf16>
    %cst = arith.constant dense<0.000000e+00> : vector<16x96xf32>
    %4 = tpu.matmul %2, %3, %cst {dimension_numbers = #tpu.dot_dimension_numbers<[1], [0], [0], [1], [0, 0, 1, 1], [], []>} : vector<16x32xbf16>, vector<32x96xbf16>, vector<16x96xf32> -> vector<16x96xf32>
    %c0_4 = arith.constant 0 : index
    %c0_5 = arith.constant 0 : index
    %5 = vector.load %arg3[%c0_4, %c0_5] : memref<1x96xf32, #tpu.memory_space<vmem>>, vector<1x96xf32>
    %6 = vector.broadcast %5 : vector<1x96xf32> to vector<16x96xf32>
    %7 = arith.addf %4, %6 : vector<16x96xf32>
    %c0_6 = arith.constant 0 : index
    %c0_7 = arith.constant 0 : index
    %c0_8 = arith.constant 0 : index
    %8 = vector.load %arg4[%c0_6, %c0_7, %c0_8] : memref<1x16x96xf32, #tpu.memory_space<vmem>>, vector<1x16x96xf32>
    %9 = vector.shape_cast %8 : vector<1x16x96xf32> to vector<16x96xf32>
    %10 = vector.shape_cast %7 : vector<16x96xf32> to vector<1x16x96xf32>
    tpu.vector_store %arg4[%c0_6, %c0_7, %c0_8], %10 {strides = array<i32>} : memref<1x16x96xf32, #tpu.memory_space<vmem>>, vector<1x16x96xf32>,
    return
  }
  func.func @transform_0(%arg0: i32) -> (i32, i32, i32) {
    %c0_i32 = arith.constant 0 : i32
    %c0_i32_0 = arith.constant 0 : i32
    %c0_i32_1 = arith.constant 0 : i32
    return %arg0, %c0_i32, %c0_i32_0 : i32, i32, i32
  }
  func.func @transform_1(%arg0: i32) -> (i32, i32) {
    %c0_i32 = arith.constant 0 : i32
    %c0_i32_0 = arith.constant 0 : i32
    %c0_i32_1 = arith.constant 0 : i32
    return %c0_i32, %c0_i32_0 : i32, i32
  }
  func.func @transform_2(%arg0: i32) -> (i32, i32) {
    %c0_i32 = arith.constant 0 : i32
    %c0_i32_0 = arith.constant 0 : i32
    %c0_i32_1 = arith.constant 0 : i32
    return %c0_i32, %c0_i32_0 : i32, i32
  }
  func.func @transform_3(%arg0: i32) -> (i32, i32, i32) {
    %c0_i32 = arith.constant 0 : i32
    %c0_i32_0 = arith.constant 0 : i32
    %c0_i32_1 = arith.constant 0 : i32
    return %arg0, %c0_i32, %c0_i32_0 : i32, i32, i32
  }
}

module attributes {stable_mosaic.version = 11 : i64} {
  func.func @_embed_kernel(%arg0: i32, %arg1: memref<1x16x4xf32, #tpu.memory_space<vmem>>, %arg2: memref<1x16x4xf32, #tpu.memory_space<vmem>>, %arg3: memref<16x32xf32, #tpu.memory_space<vmem>>, %arg4: memref<16x32xbf16, #tpu.memory_space<vmem>>, %arg5: memref<1x16x32xf32, #tpu.memory_space<vmem>>) attributes {dimension_semantics = [#tpu.dimension_semantics<parallel>], iteration_bounds = array<i64: 2>, scalar_prefetch = 0 : i64, scratch_operands = 0 : i64, tpu.core_type = #tpu.core_type<tc>, window_params = [{transform_indices = @transform_0, window_bounds = array<i64: 1, 16, 4>}, {transform_indices = @transform_1, window_bounds = array<i64: 1, 16, 4>}, {pipeline_mode = #tpu.pipeline_mode<synchronous>, transform_indices = @transform_2, window_bounds = array<i64: 16, 32>}, {pipeline_mode = #tpu.pipeline_mode<synchronous>, transform_indices = @transform_3, window_bounds = array<i64: 16, 32>}, {transform_indices = @transform_4, window_bounds = array<i64: 1, 16, 32>}]} {
    %c0 = arith.constant 0 : index
    %c0_0 = arith.constant 0 : index
    %c0_1 = arith.constant 0 : index
    %0 = vector.load %arg1[%c0, %c0_0, %c0_1] : memref<1x16x4xf32, #tpu.memory_space<vmem>>, vector<1x16x4xf32>
    %1 = vector.shape_cast %0 : vector<1x16x4xf32> to vector<16x4xf32>
    %c0_2 = arith.constant 0 : index
    %c0_3 = arith.constant 0 : index
    %c0_4 = arith.constant 0 : index
    %2 = vector.load %arg2[%c0_2, %c0_3, %c0_4] : memref<1x16x4xf32, #tpu.memory_space<vmem>>, vector<1x16x4xf32>
    %3 = vector.shape_cast %2 : vector<1x16x4xf32> to vector<16x4xf32>
    %4 = vector.extract_strided_slice %1 {offsets = [15, 0], sizes = [1, 4], strides = [1, 1]} : vector<16x4xf32> to vector<1x4xf32>
    %5 = vector.extract_strided_slice %1 {offsets = [0, 0], sizes = [15, 4], strides = [1, 1]} : vector<16x4xf32> to vector<15x4xf32>
    %6 = tpu.concatenate %4, %5 in 0 : vector<1x4xf32>, vector<15x4xf32> -> vector<16x4xf32>
    %7 = vector.extract_strided_slice %1 {offsets = [1, 0], sizes = [15, 4], strides = [1, 1]} : vector<16x4xf32> to vector<15x4xf32>
    %8 = vector.extract_strided_slice %1 {offsets = [0, 0], sizes = [1, 4], strides = [1, 1]} : vector<16x4xf32> to vector<1x4xf32>
    %9 = tpu.concatenate %7, %8 in 0 : vector<15x4xf32>, vector<1x4xf32> -> vector<16x4xf32>
    %10 = tpu.concatenate %6, %1, %9, %3 in 1 : vector<16x4xf32>, vector<16x4xf32>, vector<16x4xf32>, vector<16x4xf32> -> vector<16x16xf32>
    %11 = arith.truncf %10 : vector<16x16xf32> to vector<16x16xbf16>
    %c0_5 = arith.constant 0 : index
    %c0_6 = arith.constant 0 : index
    %12 = vector.load %arg4[%c0_5, %c0_6] : memref<16x32xbf16, #tpu.memory_space<vmem>>, vector<16x32xbf16>
    %cst = arith.constant dense<0.000000e+00> : vector<16x32xf32>
    %13 = tpu.matmul %11, %12, %cst {dimension_numbers = #tpu.dot_dimension_numbers<[1], [0], [0], [1], [0, 0, 1, 1], [], []>} : vector<16x16xbf16>, vector<16x32xbf16>, vector<16x32xf32> -> vector<16x32xf32>
    %c0_7 = arith.constant 0 : index
    %c0_8 = arith.constant 0 : index
    %14 = vector.load %arg3[%c0_7, %c0_8] : memref<16x32xf32, #tpu.memory_space<vmem>>, vector<16x32xf32>
    %15 = arith.addf %13, %14 : vector<16x32xf32>
    %c0_9 = arith.constant 0 : index
    %c0_10 = arith.constant 0 : index
    %c0_11 = arith.constant 0 : index
    %16 = vector.load %arg5[%c0_9, %c0_10, %c0_11] : memref<1x16x32xf32, #tpu.memory_space<vmem>>, vector<1x16x32xf32>
    %17 = vector.shape_cast %16 : vector<1x16x32xf32> to vector<16x32xf32>
    %18 = vector.shape_cast %15 : vector<16x32xf32> to vector<1x16x32xf32>
    tpu.vector_store %arg5[%c0_9, %c0_10, %c0_11], %18 {strides = array<i32>} : memref<1x16x32xf32, #tpu.memory_space<vmem>>, vector<1x16x32xf32>,
    return
  }
  func.func @transform_0(%arg0: i32) -> (i32, i32, i32) {
    %c0_i32 = arith.constant 0 : i32
    %c0_i32_0 = arith.constant 0 : i32
    %c0_i32_1 = arith.constant 0 : i32
    return %arg0, %c0_i32, %c0_i32_0 : i32, i32, i32
  }
  func.func @transform_1(%arg0: i32) -> (i32, i32, i32) {
    %c0_i32 = arith.constant 0 : i32
    %c0_i32_0 = arith.constant 0 : i32
    %c0_i32_1 = arith.constant 0 : i32
    return %arg0, %c0_i32, %c0_i32_0 : i32, i32, i32
  }
  func.func @transform_2(%arg0: i32) -> (i32, i32) {
    %c0_i32 = arith.constant 0 : i32
    %c0_i32_0 = arith.constant 0 : i32
    %c0_i32_1 = arith.constant 0 : i32
    return %c0_i32, %c0_i32_0 : i32, i32
  }
  func.func @transform_3(%arg0: i32) -> (i32, i32) {
    %c0_i32 = arith.constant 0 : i32
    %c0_i32_0 = arith.constant 0 : i32
    %c0_i32_1 = arith.constant 0 : i32
    return %c0_i32, %c0_i32_0 : i32, i32
  }
  func.func @transform_4(%arg0: i32) -> (i32, i32, i32) {
    %c0_i32 = arith.constant 0 : i32
    %c0_i32_0 = arith.constant 0 : i32
    %c0_i32_1 = arith.constant 0 : i32
    return %arg0, %c0_i32, %c0_i32_0 : i32, i32, i32
  }
}

module attributes {stable_mosaic.version = 11 : i64} {
  func.func @kernel(%arg0: i32, %arg1: memref<1x4x15x8xf32, #tpu.memory_space<vmem>>, %arg2: memref<1x4x16x8xf32, #tpu.memory_space<vmem>>, %arg3: memref<1x4x16x8xf32, #tpu.memory_space<vmem>>, %arg4: memref<1x4x15x8xf32, #tpu.memory_space<vmem>>) attributes {dimension_semantics = [#tpu.dimension_semantics<parallel>], iteration_bounds = array<i64: 2>, scalar_prefetch = 0 : i64, scratch_operands = 0 : i64, tpu.core_type = #tpu.core_type<tc>, window_params = [{transform_indices = @transform_0, window_bounds = array<i64: 1, 4, 15, 8>}, {transform_indices = @transform_1, window_bounds = array<i64: 1, 4, 16, 8>}, {transform_indices = @transform_2, window_bounds = array<i64: 1, 4, 16, 8>}, {transform_indices = @transform_3, window_bounds = array<i64: 1, 4, 15, 8>}]} {
    %c0 = arith.constant 0 : index
    %c0_0 = arith.constant 0 : index
    %c0_1 = arith.constant 0 : index
    %c0_2 = arith.constant 0 : index
    %0 = vector.load %arg1[%c0, %c0_0, %c0_1, %c0_2] : memref<1x4x15x8xf32, #tpu.memory_space<vmem>>, vector<1x4x15x8xf32>
    %1 = vector.shape_cast %0 : vector<1x4x15x8xf32> to vector<4x15x8xf32>
    %2 = arith.truncf %1 : vector<4x15x8xf32> to vector<4x15x8xbf16>
    %c0_3 = arith.constant 0 : index
    %c0_4 = arith.constant 0 : index
    %c0_5 = arith.constant 0 : index
    %c0_6 = arith.constant 0 : index
    %3 = vector.load %arg2[%c0_3, %c0_4, %c0_5, %c0_6] : memref<1x4x16x8xf32, #tpu.memory_space<vmem>>, vector<1x4x16x8xf32>
    %4 = vector.shape_cast %3 : vector<1x4x16x8xf32> to vector<4x16x8xf32>
    %5 = arith.truncf %4 : vector<4x16x8xf32> to vector<4x16x8xbf16>
    "tpu.trace_start"() <{level = 10 : i32, message = "hud,hkd->huk"}> : () -> ()
    %cst = arith.constant dense<0.000000e+00> : vector<4x15x16xf32>
    %6 = tpu.matmul %2, %5, %cst {dimension_numbers = #tpu.dot_dimension_numbers<[2], [2], [1], [1], [0, 0, 0, 1, 1, 1], [0], [0]>} : vector<4x15x8xbf16>, vector<4x16x8xbf16>, vector<4x15x16xf32> -> vector<4x15x16xf32>
    "tpu.trace_stop"() : () -> ()
    %cst_7 = arith.constant 0.353553385 : f32
    %7 = vector.broadcast %cst_7 : f32 to vector<4x15x16xf32>
    %8 = arith.mulf %6, %7 : vector<4x15x16xf32>
    %cst_8 = arith.constant dense<0xFF800000> : vector<4x15xf32>
    %9 = vector.multi_reduction <maximumf>, %8, %cst_8 [2] : vector<4x15x16xf32> to vector<4x15xf32>
    %10 = vector.shape_cast %9 : vector<4x15xf32> to vector<4x15x1xf32>
    %11 = vector.broadcast %10 : vector<4x15x1xf32> to vector<4x15x16xf32>
    %12 = arith.subf %8, %11 : vector<4x15x16xf32>
    %13 = math.exp %12 : vector<4x15x16xf32>
    %cst_9 = arith.constant dense<0.000000e+00> : vector<4x15xf32>
    %14 = vector.multi_reduction <add>, %13, %cst_9 [2] : vector<4x15x16xf32> to vector<4x15xf32>
    %15 = vector.shape_cast %14 : vector<4x15xf32> to vector<4x15x1xf32>
    %16 = tpu.reciprocal %15 {approx = true} : vector<4x15x1xf32> -> vector<4x15x1xf32>
    %17 = vector.broadcast %16 : vector<4x15x1xf32> to vector<4x15x16xf32>
    %18 = arith.mulf %13, %17 : vector<4x15x16xf32>
    %19 = arith.truncf %18 : vector<4x15x16xf32> to vector<4x15x16xbf16>
    %c0_10 = arith.constant 0 : index
    %c0_11 = arith.constant 0 : index
    %c0_12 = arith.constant 0 : index
    %c0_13 = arith.constant 0 : index
    %20 = vector.load %arg3[%c0_10, %c0_11, %c0_12, %c0_13] : memref<1x4x16x8xf32, #tpu.memory_space<vmem>>, vector<1x4x16x8xf32>
    %21 = vector.shape_cast %20 : vector<1x4x16x8xf32> to vector<4x16x8xf32>
    %22 = arith.truncf %21 : vector<4x16x8xf32> to vector<4x16x8xbf16>
    "tpu.trace_start"() <{level = 10 : i32, message = "huk,hkd->hud"}> : () -> ()
    %cst_14 = arith.constant dense<0.000000e+00> : vector<4x15x8xf32>
    %23 = tpu.matmul %19, %22, %cst_14 {dimension_numbers = #tpu.dot_dimension_numbers<[2], [1], [1], [2], [0, 0, 0, 1, 1, 2], [0], [0]>} : vector<4x15x16xbf16>, vector<4x16x8xbf16>, vector<4x15x8xf32> -> vector<4x15x8xf32>
    "tpu.trace_stop"() : () -> ()
    %c0_15 = arith.constant 0 : index
    %c0_16 = arith.constant 0 : index
    %c0_17 = arith.constant 0 : index
    %c0_18 = arith.constant 0 : index
    %24 = vector.load %arg4[%c0_15, %c0_16, %c0_17, %c0_18] : memref<1x4x15x8xf32, #tpu.memory_space<vmem>>, vector<1x4x15x8xf32>
    %25 = vector.shape_cast %24 : vector<1x4x15x8xf32> to vector<4x15x8xf32>
    %26 = vector.shape_cast %23 : vector<4x15x8xf32> to vector<1x4x15x8xf32>
    tpu.vector_store %arg4[%c0_15, %c0_16, %c0_17, %c0_18], %26 {strides = array<i32>} : memref<1x4x15x8xf32, #tpu.memory_space<vmem>>, vector<1x4x15x8xf32>,
    return
  }
  func.func @transform_0(%arg0: i32) -> (i32, i32, i32, i32) {
    %c0_i32 = arith.constant 0 : i32
    %c0_i32_0 = arith.constant 0 : i32
    %c0_i32_1 = arith.constant 0 : i32
    %c0_i32_2 = arith.constant 0 : i32
    return %arg0, %c0_i32, %c0_i32_0, %c0_i32_1 : i32, i32, i32, i32
  }
  func.func @transform_1(%arg0: i32) -> (i32, i32, i32, i32) {
    %c0_i32 = arith.constant 0 : i32
    %c0_i32_0 = arith.constant 0 : i32
    %c0_i32_1 = arith.constant 0 : i32
    %c0_i32_2 = arith.constant 0 : i32
    return %arg0, %c0_i32, %c0_i32_0, %c0_i32_1 : i32, i32, i32, i32
  }
  func.func @transform_2(%arg0: i32) -> (i32, i32, i32, i32) {
    %c0_i32 = arith.constant 0 : i32
    %c0_i32_0 = arith.constant 0 : i32
    %c0_i32_1 = arith.constant 0 : i32
    %c0_i32_2 = arith.constant 0 : i32
    return %arg0, %c0_i32, %c0_i32_0, %c0_i32_1 : i32, i32, i32, i32
  }
  func.func @transform_3(%arg0: i32) -> (i32, i32, i32, i32) {
    %c0_i32 = arith.constant 0 : i32
    %c0_i32_0 = arith.constant 0 : i32
    %c0_i32_1 = arith.constant 0 : i32
    %c0_i32_2 = arith.constant 0 : i32
    return %arg0, %c0_i32, %c0_i32_0, %c0_i32_1 : i32, i32, i32, i32
  }
}

module attributes {stable_mosaic.version = 11 : i64} {
  func.func @kernel(%arg0: i32, %arg1: memref<1x16x32xf32, #tpu.memory_space<vmem>>, %arg2: memref<1x16x32xf32, #tpu.memory_space<vmem>>, %arg3: memref<32x32xbf16, #tpu.memory_space<vmem>>, %arg4: memref<1x32xf32, #tpu.memory_space<vmem>>, %arg5: memref<32x64xbf16, #tpu.memory_space<vmem>>, %arg6: memref<1x64xf32, #tpu.memory_space<vmem>>, %arg7: memref<64x32xbf16, #tpu.memory_space<vmem>>, %arg8: memref<1x32xf32, #tpu.memory_space<vmem>>, %arg9: memref<1x32xf32, #tpu.memory_space<vmem>>, %arg10: memref<1x32xf32, #tpu.memory_space<vmem>>, %arg11: memref<1x32xf32, #tpu.memory_space<vmem>>, %arg12: memref<1x32xf32, #tpu.memory_space<vmem>>, %arg13: memref<1x16x32xf32, #tpu.memory_space<vmem>>) attributes {dimension_semantics = [#tpu.dimension_semantics<parallel>], iteration_bounds = array<i64: 2>, scalar_prefetch = 0 : i64, scratch_operands = 0 : i64, tpu.core_type = #tpu.core_type<tc>, window_params = [{transform_indices = @transform_0, window_bounds = array<i64: 1, 16, 32>}, {transform_indices = @transform_1, window_bounds = array<i64: 1, 16, 32>}, {pipeline_mode = #tpu.pipeline_mode<synchronous>, transform_indices = @transform_2, window_bounds = array<i64: 32, 32>}, {pipeline_mode = #tpu.pipeline_mode<synchronous>, transform_indices = @transform_3, window_bounds = array<i64: 1, 32>}, {pipeline_mode = #tpu.pipeline_mode<synchronous>, transform_indices = @transform_4, window_bounds = array<i64: 32, 64>}, {pipeline_mode = #tpu.pipeline_mode<synchronous>, transform_indices = @transform_5, window_bounds = array<i64: 1, 64>}, {pipeline_mode = #tpu.pipeline_mode<synchronous>, transform_indices = @transform_6, window_bounds = array<i64: 64, 32>}, {pipeline_mode = #tpu.pipeline_mode<synchronous>, transform_indices = @transform_7, window_bounds = array<i64: 1, 32>}, {pipeline_mode = #tpu.pipeline_mode<synchronous>, transform_indices = @transform_8, window_bounds = array<i64: 1, 32>}, {pipeline_mode = #tpu.pipeline_mode<synchronous>, transform_indices = @transform_9, window_bounds = array<i64: 1, 32>}, {pipeline_mode = #tpu.pipeline_mode<synchronous>, transform_indices = @transform_10, window_bounds = array<i64: 1, 32>}, {pipeline_mode = #tpu.pipeline_mode<synchronous>, transform_indices = @transform_11, window_bounds = array<i64: 1, 32>}, {transform_indices = @transform_12, window_bounds = array<i64: 1, 16, 32>}]} {
    %c0 = arith.constant 0 : index
    %c0_0 = arith.constant 0 : index
    %c0_1 = arith.constant 0 : index
    %0 = vector.load %arg2[%c0, %c0_0, %c0_1] : memref<1x16x32xf32, #tpu.memory_space<vmem>>, vector<1x16x32xf32>
    %1 = vector.shape_cast %0 : vector<1x16x32xf32> to vector<16x32xf32>
    %2 = arith.truncf %1 : vector<16x32xf32> to vector<16x32xbf16>
    %c0_2 = arith.constant 0 : index
    %c0_3 = arith.constant 0 : index
    %3 = vector.load %arg3[%c0_2, %c0_3] : memref<32x32xbf16, #tpu.memory_space<vmem>>, vector<32x32xbf16>
    %cst = arith.constant dense<0.000000e+00> : vector<16x32xf32>
    %4 = tpu.matmul %2, %3, %cst {dimension_numbers = #tpu.dot_dimension_numbers<[1], [0], [0], [1], [0, 0, 1, 1], [], []>} : vector<16x32xbf16>, vector<32x32xbf16>, vector<16x32xf32> -> vector<16x32xf32>
    %c0_4 = arith.constant 0 : index
    %c0_5 = arith.constant 0 : index
    %5 = vector.load %arg4[%c0_4, %c0_5] : memref<1x32xf32, #tpu.memory_space<vmem>>, vector<1x32xf32>
    %6 = vector.broadcast %5 : vector<1x32xf32> to vector<16x32xf32>
    %7 = arith.addf %4, %6 : vector<16x32xf32>
    %c0_6 = arith.constant 0 : index
    %c0_7 = arith.constant 0 : index
    %c0_8 = arith.constant 0 : index
    %8 = vector.load %arg1[%c0_6, %c0_7, %c0_8] : memref<1x16x32xf32, #tpu.memory_space<vmem>>, vector<1x16x32xf32>
    %9 = vector.shape_cast %8 : vector<1x16x32xf32> to vector<16x32xf32>
    %10 = arith.addf %9, %7 : vector<16x32xf32>
    %c0_9 = arith.constant 0 : index
    %c0_10 = arith.constant 0 : index
    %11 = vector.load %arg9[%c0_9, %c0_10] : memref<1x32xf32, #tpu.memory_space<vmem>>, vector<1x32xf32>
    %c0_11 = arith.constant 0 : index
    %c0_12 = arith.constant 0 : index
    %12 = vector.load %arg10[%c0_11, %c0_12] : memref<1x32xf32, #tpu.memory_space<vmem>>, vector<1x32xf32>
    %cst_13 = arith.constant dense<0.000000e+00> : vector<16xf32>
    %13 = vector.multi_reduction <add>, %10, %cst_13 [1] : vector<16x32xf32> to vector<16xf32>
    %14 = vector.shape_cast %13 : vector<16xf32> to vector<16x1xf32>
    %cst_14 = arith.constant 3.200000e+01 : f32
    %15 = vector.broadcast %cst_14 : f32 to vector<16x1xf32>
    %16 = arith.divf %14, %15 : vector<16x1xf32>
    %17 = vector.broadcast %16 : vector<16x1xf32> to vector<16x32xf32>
    %18 = arith.subf %10, %17 : vector<16x32xf32>
    %19 = arith.mulf %18, %18 : vector<16x32xf32>
    %cst_15 = arith.constant dense<0.000000e+00> : vector<16xf32>
    %20 = vector.multi_reduction <add>, %19, %cst_15 [1] : vector<16x32xf32> to vector<16xf32>
    %21 = vector.shape_cast %20 : vector<16xf32> to vector<16x1xf32>
    %cst_16 = arith.constant 3.200000e+01 : f32
    %22 = vector.broadcast %cst_16 : f32 to vector<16x1xf32>
    %23 = arith.divf %21, %22 : vector<16x1xf32>
    %24 = vector.broadcast %16 : vector<16x1xf32> to vector<16x32xf32>
    %25 = arith.subf %10, %24 : vector<16x32xf32>
    %cst_17 = arith.constant 9.99999974E-6 : f32
    %26 = vector.broadcast %cst_17 : f32 to vector<16x1xf32>
    %27 = arith.addf %23, %26 : vector<16x1xf32>
    %28 = math.rsqrt %27 : vector<16x1xf32>
    %29 = vector.broadcast %28 : vector<16x1xf32> to vector<16x32xf32>
    %30 = arith.mulf %25, %29 : vector<16x32xf32>
    %31 = vector.broadcast %11 : vector<1x32xf32> to vector<16x32xf32>
    %32 = arith.mulf %30, %31 : vector<16x32xf32>
    %33 = vector.broadcast %12 : vector<1x32xf32> to vector<16x32xf32>
    %34 = arith.addf %32, %33 : vector<16x32xf32>
    %35 = arith.truncf %34 : vector<16x32xf32> to vector<16x32xbf16>
    %c0_18 = arith.constant 0 : index
    %c0_19 = arith.constant 0 : index
    %36 = vector.load %arg5[%c0_18, %c0_19] : memref<32x64xbf16, #tpu.memory_space<vmem>>, vector<32x64xbf16>
    %cst_20 = arith.constant dense<0.000000e+00> : vector<16x64xf32>
    %37 = tpu.matmul %35, %36, %cst_20 {dimension_numbers = #tpu.dot_dimension_numbers<[1], [0], [0], [1], [0, 0, 1, 1], [], []>} : vector<16x32xbf16>, vector<32x64xbf16>, vector<16x64xf32> -> vector<16x64xf32>
    %c0_21 = arith.constant 0 : index
    %c0_22 = arith.constant 0 : index
    %38 = vector.load %arg6[%c0_21, %c0_22] : memref<1x64xf32, #tpu.memory_space<vmem>>, vector<1x64xf32>
    %39 = vector.broadcast %38 : vector<1x64xf32> to vector<16x64xf32>
    %40 = arith.addf %37, %39 : vector<16x64xf32>
    %cst_23 = arith.constant 0.000000e+00 : f32
    %41 = vector.broadcast %cst_23 : f32 to vector<16x64xf32>
    %42 = arith.maximumf %40, %41 : vector<16x64xf32>
    %43 = arith.truncf %42 : vector<16x64xf32> to vector<16x64xbf16>
    %c0_24 = arith.constant 0 : index
    %c0_25 = arith.constant 0 : index
    %44 = vector.load %arg7[%c0_24, %c0_25] : memref<64x32xbf16, #tpu.memory_space<vmem>>, vector<64x32xbf16>
    %cst_26 = arith.constant dense<0.000000e+00> : vector<16x32xf32>
    %45 = tpu.matmul %43, %44, %cst_26 {dimension_numbers = #tpu.dot_dimension_numbers<[1], [0], [0], [1], [0, 0, 1, 1], [], []>} : vector<16x64xbf16>, vector<64x32xbf16>, vector<16x32xf32> -> vector<16x32xf32>
    %c0_27 = arith.constant 0 : index
    %c0_28 = arith.constant 0 : index
    %46 = vector.load %arg8[%c0_27, %c0_28] : memref<1x32xf32, #tpu.memory_space<vmem>>, vector<1x32xf32>
    %47 = vector.broadcast %46 : vector<1x32xf32> to vector<16x32xf32>
    %48 = arith.addf %45, %47 : vector<16x32xf32>
    %49 = arith.addf %34, %48 : vector<16x32xf32>
    %c0_29 = arith.constant 0 : index
    %c0_30 = arith.constant 0 : index
    %50 = vector.load %arg11[%c0_29, %c0_30] : memref<1x32xf32, #tpu.memory_space<vmem>>, vector<1x32xf32>
    %c0_31 = arith.constant 0 : index
    %c0_32 = arith.constant 0 : index
    %51 = vector.load %arg12[%c0_31, %c0_32] : memref<1x32xf32, #tpu.memory_space<vmem>>, vector<1x32xf32>
    %cst_33 = arith.constant dense<0.000000e+00> : vector<16xf32>
    %52 = vector.multi_reduction <add>, %49, %cst_33 [1] : vector<16x32xf32> to vector<16xf32>
    %53 = vector.shape_cast %52 : vector<16xf32> to vector<16x1xf32>
    %cst_34 = arith.constant 3.200000e+01 : f32
    %54 = vector.broadcast %cst_34 : f32 to vector<16x1xf32>
    %55 = arith.divf %53, %54 : vector<16x1xf32>
    %56 = vector.broadcast %55 : vector<16x1xf32> to vector<16x32xf32>
    %57 = arith.subf %49, %56 : vector<16x32xf32>
    %58 = arith.mulf %57, %57 : vector<16x32xf32>
    %cst_35 = arith.constant dense<0.000000e+00> : vector<16xf32>
    %59 = vector.multi_reduction <add>, %58, %cst_35 [1] : vector<16x32xf32> to vector<16xf32>
    %60 = vector.shape_cast %59 : vector<16xf32> to vector<16x1xf32>
    %cst_36 = arith.constant 3.200000e+01 : f32
    %61 = vector.broadcast %cst_36 : f32 to vector<16x1xf32>
    %62 = arith.divf %60, %61 : vector<16x1xf32>
    %63 = vector.broadcast %55 : vector<16x1xf32> to vector<16x32xf32>
    %64 = arith.subf %49, %63 : vector<16x32xf32>
    %cst_37 = arith.constant 9.99999974E-6 : f32
    %65 = vector.broadcast %cst_37 : f32 to vector<16x1xf32>
    %66 = arith.addf %62, %65 : vector<16x1xf32>
    %67 = math.rsqrt %66 : vector<16x1xf32>
    %68 = vector.broadcast %67 : vector<16x1xf32> to vector<16x32xf32>
    %69 = arith.mulf %64, %68 : vector<16x32xf32>
    %70 = vector.broadcast %50 : vector<1x32xf32> to vector<16x32xf32>
    %71 = arith.mulf %69, %70 : vector<16x32xf32>
    %72 = vector.broadcast %51 : vector<1x32xf32> to vector<16x32xf32>
    %73 = arith.addf %71, %72 : vector<16x32xf32>
    %c0_38 = arith.constant 0 : index
    %c0_39 = arith.constant 0 : index
    %c0_40 = arith.constant 0 : index
    %74 = vector.load %arg13[%c0_38, %c0_39, %c0_40] : memref<1x16x32xf32, #tpu.memory_space<vmem>>, vector<1x16x32xf32>
    %75 = vector.shape_cast %74 : vector<1x16x32xf32> to vector<16x32xf32>
    %76 = vector.shape_cast %73 : vector<16x32xf32> to vector<1x16x32xf32>
    tpu.vector_store %arg13[%c0_38, %c0_39, %c0_40], %76 {strides = array<i32>} : memref<1x16x32xf32, #tpu.memory_space<vmem>>, vector<1x16x32xf32>,
    return
  }
  func.func @transform_0(%arg0: i32) -> (i32, i32, i32) {
    %c0_i32 = arith.constant 0 : i32
    %c0_i32_0 = arith.constant 0 : i32
    %c0_i32_1 = arith.constant 0 : i32
    return %arg0, %c0_i32, %c0_i32_0 : i32, i32, i32
  }
  func.func @transform_1(%arg0: i32) -> (i32, i32, i32) {
    %c0_i32 = arith.constant 0 : i32
    %c0_i32_0 = arith.constant 0 : i32
    %c0_i32_1 = arith.constant 0 : i32
    return %arg0, %c0_i32, %c0_i32_0 : i32, i32, i32
  }
  func.func @transform_2(%arg0: i32) -> (i32, i32) {
    %c0_i32 = arith.constant 0 : i32
    %c0_i32_0 = arith.constant 0 : i32
    %c0_i32_1 = arith.constant 0 : i32
    return %c0_i32, %c0_i32_0 : i32, i32
  }
  func.func @transform_3(%arg0: i32) -> (i32, i32) {
    %c0_i32 = arith.constant 0 : i32
    %c0_i32_0 = arith.constant 0 : i32
    %c0_i32_1 = arith.constant 0 : i32
    return %c0_i32, %c0_i32_0 : i32, i32
  }
  func.func @transform_4(%arg0: i32) -> (i32, i32) {
    %c0_i32 = arith.constant 0 : i32
    %c0_i32_0 = arith.constant 0 : i32
    %c0_i32_1 = arith.constant 0 : i32
    return %c0_i32, %c0_i32_0 : i32, i32
  }
  func.func @transform_5(%arg0: i32) -> (i32, i32) {
    %c0_i32 = arith.constant 0 : i32
    %c0_i32_0 = arith.constant 0 : i32
    %c0_i32_1 = arith.constant 0 : i32
    return %c0_i32, %c0_i32_0 : i32, i32
  }
  func.func @transform_6(%arg0: i32) -> (i32, i32) {
    %c0_i32 = arith.constant 0 : i32
    %c0_i32_0 = arith.constant 0 : i32
    %c0_i32_1 = arith.constant 0 : i32
    return %c0_i32, %c0_i32_0 : i32, i32
  }
  func.func @transform_7(%arg0: i32) -> (i32, i32) {
    %c0_i32 = arith.constant 0 : i32
    %c0_i32_0 = arith.constant 0 : i32
    %c0_i32_1 = arith.constant 0 : i32
    return %c0_i32, %c0_i32_0 : i32, i32
  }
  func.func @transform_8(%arg0: i32) -> (i32, i32) {
    %c0_i32 = arith.constant 0 : i32
    %c0_i32_0 = arith.constant 0 : i32
    %c0_i32_1 = arith.constant 0 : i32
    return %c0_i32, %c0_i32_0 : i32, i32
  }
  func.func @transform_9(%arg0: i32) -> (i32, i32) {
    %c0_i32 = arith.constant 0 : i32
    %c0_i32_0 = arith.constant 0 : i32
    %c0_i32_1 = arith.constant 0 : i32
    return %c0_i32, %c0_i32_0 : i32, i32
  }
  func.func @transform_10(%arg0: i32) -> (i32, i32) {
    %c0_i32 = arith.constant 0 : i32
    %c0_i32_0 = arith.constant 0 : i32
    %c0_i32_1 = arith.constant 0 : i32
    return %c0_i32, %c0_i32_0 : i32, i32
  }
  func.func @transform_11(%arg0: i32) -> (i32, i32) {
    %c0_i32 = arith.constant 0 : i32
    %c0_i32_0 = arith.constant 0 : i32
    %c0_i32_1 = arith.constant 0 : i32
    return %c0_i32, %c0_i32_0 : i32, i32
  }
  func.func @transform_12(%arg0: i32) -> (i32, i32, i32) {
    %c0_i32 = arith.constant 0 : i32
    %c0_i32_0 = arith.constant 0 : i32
    %c0_i32_1 = arith.constant 0 : i32
    return %arg0, %c0_i32, %c0_i32_0 : i32, i32, i32
  }
}

module attributes {stable_mosaic.version = 11 : i64} {
  func.func @_distil_conv_kernel(%arg0: i32, %arg1: memref<1x16x32xf32, #tpu.memory_space<vmem>>, %arg2: memref<96x32xbf16, #tpu.memory_space<vmem>>, %arg3: memref<1x32xf32, #tpu.memory_space<vmem>>, %arg4: memref<1x32xf32, #tpu.memory_space<vmem>>, %arg5: memref<1x16x32xf32, #tpu.memory_space<vmem>>) attributes {dimension_semantics = [#tpu.dimension_semantics<parallel>], iteration_bounds = array<i64: 2>, scalar_prefetch = 0 : i64, scratch_operands = 0 : i64, tpu.core_type = #tpu.core_type<tc>, window_params = [{transform_indices = @transform_0, window_bounds = array<i64: 1, 16, 32>}, {pipeline_mode = #tpu.pipeline_mode<synchronous>, transform_indices = @transform_1, window_bounds = array<i64: 96, 32>}, {pipeline_mode = #tpu.pipeline_mode<synchronous>, transform_indices = @transform_2, window_bounds = array<i64: 1, 32>}, {pipeline_mode = #tpu.pipeline_mode<synchronous>, transform_indices = @transform_3, window_bounds = array<i64: 1, 32>}, {transform_indices = @transform_4, window_bounds = array<i64: 1, 16, 32>}]} {
    %c0 = arith.constant 0 : index
    %c0_0 = arith.constant 0 : index
    %c0_1 = arith.constant 0 : index
    %0 = vector.load %arg1[%c0, %c0_0, %c0_1] : memref<1x16x32xf32, #tpu.memory_space<vmem>>, vector<1x16x32xf32>
    %1 = vector.shape_cast %0 : vector<1x16x32xf32> to vector<16x32xf32>
    %2 = vector.extract_strided_slice %1 {offsets = [14, 0], sizes = [2, 32], strides = [1, 1]} : vector<16x32xf32> to vector<2x32xf32>
    %3 = vector.extract_strided_slice %1 {offsets = [0, 0], sizes = [14, 32], strides = [1, 1]} : vector<16x32xf32> to vector<14x32xf32>
    %4 = tpu.concatenate %2, %3 in 0 : vector<2x32xf32>, vector<14x32xf32> -> vector<16x32xf32>
    %5 = vector.extract_strided_slice %1 {offsets = [15, 0], sizes = [1, 32], strides = [1, 1]} : vector<16x32xf32> to vector<1x32xf32>
    %6 = vector.extract_strided_slice %1 {offsets = [0, 0], sizes = [15, 32], strides = [1, 1]} : vector<16x32xf32> to vector<15x32xf32>
    %7 = tpu.concatenate %5, %6 in 0 : vector<1x32xf32>, vector<15x32xf32> -> vector<16x32xf32>
    %8 = tpu.concatenate %4, %7, %1 in 1 : vector<16x32xf32>, vector<16x32xf32>, vector<16x32xf32> -> vector<16x96xf32>
    %9 = arith.truncf %8 : vector<16x96xf32> to vector<16x96xbf16>
    %c0_2 = arith.constant 0 : index
    %c0_3 = arith.constant 0 : index
    %10 = vector.load %arg2[%c0_2, %c0_3] : memref<96x32xbf16, #tpu.memory_space<vmem>>, vector<96x32xbf16>
    %cst = arith.constant dense<0.000000e+00> : vector<16x32xf32>
    %11 = tpu.matmul %9, %10, %cst {dimension_numbers = #tpu.dot_dimension_numbers<[1], [0], [0], [1], [0, 0, 1, 1], [], []>} : vector<16x96xbf16>, vector<96x32xbf16>, vector<16x32xf32> -> vector<16x32xf32>
    %c0_4 = arith.constant 0 : index
    %c0_5 = arith.constant 0 : index
    %12 = vector.load %arg3[%c0_4, %c0_5] : memref<1x32xf32, #tpu.memory_space<vmem>>, vector<1x32xf32>
    %13 = vector.broadcast %12 : vector<1x32xf32> to vector<16x32xf32>
    %14 = arith.mulf %11, %13 : vector<16x32xf32>
    %c0_6 = arith.constant 0 : index
    %c0_7 = arith.constant 0 : index
    %15 = vector.load %arg4[%c0_6, %c0_7] : memref<1x32xf32, #tpu.memory_space<vmem>>, vector<1x32xf32>
    %16 = vector.broadcast %15 : vector<1x32xf32> to vector<16x32xf32>
    %17 = arith.addf %14, %16 : vector<16x32xf32>
    %cst_8 = arith.constant 0.000000e+00 : f32
    %18 = vector.broadcast %cst_8 : f32 to vector<16x32xf32>
    %19 = arith.cmpf ogt, %17, %18 : vector<16x32xf32>
    %cst_9 = arith.constant 0.000000e+00 : f32
    %20 = vector.broadcast %cst_9 : f32 to vector<16x32xf32>
    %21 = arith.minimumf %17, %20 : vector<16x32xf32>
    %22 = math.exp %21 : vector<16x32xf32>
    %cst_10 = arith.constant 1.000000e+00 : f32
    %23 = vector.broadcast %cst_10 : f32 to vector<16x32xf32>
    %24 = arith.subf %22, %23 : vector<16x32xf32>
    %25 = arith.select %19, %17, %24 : vector<16x32xi1>, vector<16x32xf32>
    %c0_11 = arith.constant 0 : index
    %c0_12 = arith.constant 0 : index
    %c0_13 = arith.constant 0 : index
    %26 = vector.load %arg5[%c0_11, %c0_12, %c0_13] : memref<1x16x32xf32, #tpu.memory_space<vmem>>, vector<1x16x32xf32>
    %27 = vector.shape_cast %26 : vector<1x16x32xf32> to vector<16x32xf32>
    %28 = vector.shape_cast %25 : vector<16x32xf32> to vector<1x16x32xf32>
    tpu.vector_store %arg5[%c0_11, %c0_12, %c0_13], %28 {strides = array<i32>} : memref<1x16x32xf32, #tpu.memory_space<vmem>>, vector<1x16x32xf32>,
    return
  }
  func.func @transform_0(%arg0: i32) -> (i32, i32, i32) {
    %c0_i32 = arith.constant 0 : i32
    %c0_i32_0 = arith.constant 0 : i32
    %c0_i32_1 = arith.constant 0 : i32
    return %arg0, %c0_i32, %c0_i32_0 : i32, i32, i32
  }
  func.func @transform_1(%arg0: i32) -> (i32, i32) {
    %c0_i32 = arith.constant 0 : i32
    %c0_i32_0 = arith.constant 0 : i32
    %c0_i32_1 = arith.constant 0 : i32
    return %c0_i32, %c0_i32_0 : i32, i32
  }
  func.func @transform_2(%arg0: i32) -> (i32, i32) {
    %c0_i32 = arith.constant 0 : i32
    %c0_i32_0 = arith.constant 0 : i32
    %c0_i32_1 = arith.constant 0 : i32
    return %c0_i32, %c0_i32_0 : i32, i32
  }
  func.func @transform_3(%arg0: i32) -> (i32, i32) {
    %c0_i32 = arith.constant 0 : i32
    %c0_i32_0 = arith.constant 0 : i32
    %c0_i32_1 = arith.constant 0 : i32
    return %c0_i32, %c0_i32_0 : i32, i32
  }
  func.func @transform_4(%arg0: i32) -> (i32, i32, i32) {
    %c0_i32 = arith.constant 0 : i32
    %c0_i32_0 = arith.constant 0 : i32
    %c0_i32_1 = arith.constant 0 : i32
    return %arg0, %c0_i32, %c0_i32_0 : i32, i32, i32
  }
}

module attributes {stable_mosaic.version = 11 : i64} {
  func.func @_qkv_kernel(%arg0: i32, %arg1: memref<1x9x32xf32, #tpu.memory_space<vmem>>, %arg2: memref<32x96xbf16, #tpu.memory_space<vmem>>, %arg3: memref<1x96xf32, #tpu.memory_space<vmem>>, %arg4: memref<1x9x96xf32, #tpu.memory_space<vmem>>) attributes {dimension_semantics = [#tpu.dimension_semantics<parallel>], iteration_bounds = array<i64: 2>, scalar_prefetch = 0 : i64, scratch_operands = 0 : i64, tpu.core_type = #tpu.core_type<tc>, window_params = [{transform_indices = @transform_0, window_bounds = array<i64: 1, 9, 32>}, {pipeline_mode = #tpu.pipeline_mode<synchronous>, transform_indices = @transform_1, window_bounds = array<i64: 32, 96>}, {pipeline_mode = #tpu.pipeline_mode<synchronous>, transform_indices = @transform_2, window_bounds = array<i64: 1, 96>}, {transform_indices = @transform_3, window_bounds = array<i64: 1, 9, 96>}]} {
    %c0 = arith.constant 0 : index
    %c0_0 = arith.constant 0 : index
    %c0_1 = arith.constant 0 : index
    %0 = vector.load %arg1[%c0, %c0_0, %c0_1] : memref<1x9x32xf32, #tpu.memory_space<vmem>>, vector<1x9x32xf32>
    %1 = vector.shape_cast %0 : vector<1x9x32xf32> to vector<9x32xf32>
    %2 = arith.truncf %1 : vector<9x32xf32> to vector<9x32xbf16>
    %c0_2 = arith.constant 0 : index
    %c0_3 = arith.constant 0 : index
    %3 = vector.load %arg2[%c0_2, %c0_3] : memref<32x96xbf16, #tpu.memory_space<vmem>>, vector<32x96xbf16>
    %cst = arith.constant dense<0.000000e+00> : vector<9x96xf32>
    %4 = tpu.matmul %2, %3, %cst {dimension_numbers = #tpu.dot_dimension_numbers<[1], [0], [0], [1], [0, 0, 1, 1], [], []>} : vector<9x32xbf16>, vector<32x96xbf16>, vector<9x96xf32> -> vector<9x96xf32>
    %c0_4 = arith.constant 0 : index
    %c0_5 = arith.constant 0 : index
    %5 = vector.load %arg3[%c0_4, %c0_5] : memref<1x96xf32, #tpu.memory_space<vmem>>, vector<1x96xf32>
    %6 = vector.broadcast %5 : vector<1x96xf32> to vector<9x96xf32>
    %7 = arith.addf %4, %6 : vector<9x96xf32>
    %c0_6 = arith.constant 0 : index
    %c0_7 = arith.constant 0 : index
    %c0_8 = arith.constant 0 : index
    %8 = vector.load %arg4[%c0_6, %c0_7, %c0_8] : memref<1x9x96xf32, #tpu.memory_space<vmem>>, vector<1x9x96xf32>
    %9 = vector.shape_cast %8 : vector<1x9x96xf32> to vector<9x96xf32>
    %10 = vector.shape_cast %7 : vector<9x96xf32> to vector<1x9x96xf32>
    tpu.vector_store %arg4[%c0_6, %c0_7, %c0_8], %10 {strides = array<i32>} : memref<1x9x96xf32, #tpu.memory_space<vmem>>, vector<1x9x96xf32>,
    return
  }
  func.func @transform_0(%arg0: i32) -> (i32, i32, i32) {
    %c0_i32 = arith.constant 0 : i32
    %c0_i32_0 = arith.constant 0 : i32
    %c0_i32_1 = arith.constant 0 : i32
    return %arg0, %c0_i32, %c0_i32_0 : i32, i32, i32
  }
  func.func @transform_1(%arg0: i32) -> (i32, i32) {
    %c0_i32 = arith.constant 0 : i32
    %c0_i32_0 = arith.constant 0 : i32
    %c0_i32_1 = arith.constant 0 : i32
    return %c0_i32, %c0_i32_0 : i32, i32
  }
  func.func @transform_2(%arg0: i32) -> (i32, i32) {
    %c0_i32 = arith.constant 0 : i32
    %c0_i32_0 = arith.constant 0 : i32
    %c0_i32_1 = arith.constant 0 : i32
    return %c0_i32, %c0_i32_0 : i32, i32
  }
  func.func @transform_3(%arg0: i32) -> (i32, i32, i32) {
    %c0_i32 = arith.constant 0 : i32
    %c0_i32_0 = arith.constant 0 : i32
    %c0_i32_1 = arith.constant 0 : i32
    return %arg0, %c0_i32, %c0_i32_0 : i32, i32, i32
  }
}

module attributes {stable_mosaic.version = 11 : i64} {
  func.func @kernel(%arg0: i32, %arg1: memref<1x4x9x8xf32, #tpu.memory_space<vmem>>, %arg2: memref<1x4x9x8xf32, #tpu.memory_space<vmem>>, %arg3: memref<1x4x9x8xf32, #tpu.memory_space<vmem>>, %arg4: memref<1x4x9x8xf32, #tpu.memory_space<vmem>>) attributes {dimension_semantics = [#tpu.dimension_semantics<parallel>], iteration_bounds = array<i64: 2>, scalar_prefetch = 0 : i64, scratch_operands = 0 : i64, tpu.core_type = #tpu.core_type<tc>, window_params = [{transform_indices = @transform_0, window_bounds = array<i64: 1, 4, 9, 8>}, {transform_indices = @transform_1, window_bounds = array<i64: 1, 4, 9, 8>}, {transform_indices = @transform_2, window_bounds = array<i64: 1, 4, 9, 8>}, {transform_indices = @transform_3, window_bounds = array<i64: 1, 4, 9, 8>}]} {
    %c0 = arith.constant 0 : index
    %c0_0 = arith.constant 0 : index
    %c0_1 = arith.constant 0 : index
    %c0_2 = arith.constant 0 : index
    %0 = vector.load %arg1[%c0, %c0_0, %c0_1, %c0_2] : memref<1x4x9x8xf32, #tpu.memory_space<vmem>>, vector<1x4x9x8xf32>
    %1 = vector.shape_cast %0 : vector<1x4x9x8xf32> to vector<4x9x8xf32>
    %2 = arith.truncf %1 : vector<4x9x8xf32> to vector<4x9x8xbf16>
    %c0_3 = arith.constant 0 : index
    %c0_4 = arith.constant 0 : index
    %c0_5 = arith.constant 0 : index
    %c0_6 = arith.constant 0 : index
    %3 = vector.load %arg2[%c0_3, %c0_4, %c0_5, %c0_6] : memref<1x4x9x8xf32, #tpu.memory_space<vmem>>, vector<1x4x9x8xf32>
    %4 = vector.shape_cast %3 : vector<1x4x9x8xf32> to vector<4x9x8xf32>
    %5 = arith.truncf %4 : vector<4x9x8xf32> to vector<4x9x8xbf16>
    "tpu.trace_start"() <{level = 10 : i32, message = "hud,hkd->huk"}> : () -> ()
    %cst = arith.constant dense<0.000000e+00> : vector<4x9x9xf32>
    %6 = tpu.matmul %2, %5, %cst {dimension_numbers = #tpu.dot_dimension_numbers<[2], [2], [1], [1], [0, 0, 0, 1, 1, 1], [0], [0]>} : vector<4x9x8xbf16>, vector<4x9x8xbf16>, vector<4x9x9xf32> -> vector<4x9x9xf32>
    "tpu.trace_stop"() : () -> ()
    %cst_7 = arith.constant 0.353553385 : f32
    %7 = vector.broadcast %cst_7 : f32 to vector<4x9x9xf32>
    %8 = arith.mulf %6, %7 : vector<4x9x9xf32>
    %cst_8 = arith.constant dense<0xFF800000> : vector<4x9xf32>
    %9 = vector.multi_reduction <maximumf>, %8, %cst_8 [2] : vector<4x9x9xf32> to vector<4x9xf32>
    %10 = vector.shape_cast %9 : vector<4x9xf32> to vector<4x9x1xf32>
    %11 = vector.broadcast %10 : vector<4x9x1xf32> to vector<4x9x9xf32>
    %12 = arith.subf %8, %11 : vector<4x9x9xf32>
    %13 = math.exp %12 : vector<4x9x9xf32>
    %cst_9 = arith.constant dense<0.000000e+00> : vector<4x9xf32>
    %14 = vector.multi_reduction <add>, %13, %cst_9 [2] : vector<4x9x9xf32> to vector<4x9xf32>
    %15 = vector.shape_cast %14 : vector<4x9xf32> to vector<4x9x1xf32>
    %16 = tpu.reciprocal %15 {approx = true} : vector<4x9x1xf32> -> vector<4x9x1xf32>
    %17 = vector.broadcast %16 : vector<4x9x1xf32> to vector<4x9x9xf32>
    %18 = arith.mulf %13, %17 : vector<4x9x9xf32>
    %19 = arith.truncf %18 : vector<4x9x9xf32> to vector<4x9x9xbf16>
    %c0_10 = arith.constant 0 : index
    %c0_11 = arith.constant 0 : index
    %c0_12 = arith.constant 0 : index
    %c0_13 = arith.constant 0 : index
    %20 = vector.load %arg3[%c0_10, %c0_11, %c0_12, %c0_13] : memref<1x4x9x8xf32, #tpu.memory_space<vmem>>, vector<1x4x9x8xf32>
    %21 = vector.shape_cast %20 : vector<1x4x9x8xf32> to vector<4x9x8xf32>
    %22 = arith.truncf %21 : vector<4x9x8xf32> to vector<4x9x8xbf16>
    "tpu.trace_start"() <{level = 10 : i32, message = "huk,hkd->hud"}> : () -> ()
    %cst_14 = arith.constant dense<0.000000e+00> : vector<4x9x8xf32>
    %23 = tpu.matmul %19, %22, %cst_14 {dimension_numbers = #tpu.dot_dimension_numbers<[2], [1], [1], [2], [0, 0, 0, 1, 1, 2], [0], [0]>} : vector<4x9x9xbf16>, vector<4x9x8xbf16>, vector<4x9x8xf32> -> vector<4x9x8xf32>
    "tpu.trace_stop"() : () -> ()
    %c0_15 = arith.constant 0 : index
    %c0_16 = arith.constant 0 : index
    %c0_17 = arith.constant 0 : index
    %c0_18 = arith.constant 0 : index
    %24 = vector.load %arg4[%c0_15, %c0_16, %c0_17, %c0_18] : memref<1x4x9x8xf32, #tpu.memory_space<vmem>>, vector<1x4x9x8xf32>
    %25 = vector.shape_cast %24 : vector<1x4x9x8xf32> to vector<4x9x8xf32>
    %26 = vector.shape_cast %23 : vector<4x9x8xf32> to vector<1x4x9x8xf32>
    tpu.vector_store %arg4[%c0_15, %c0_16, %c0_17, %c0_18], %26 {strides = array<i32>} : memref<1x4x9x8xf32, #tpu.memory_space<vmem>>, vector<1x4x9x8xf32>,
    return
  }
  func.func @transform_0(%arg0: i32) -> (i32, i32, i32, i32) {
    %c0_i32 = arith.constant 0 : i32
    %c0_i32_0 = arith.constant 0 : i32
    %c0_i32_1 = arith.constant 0 : i32
    %c0_i32_2 = arith.constant 0 : i32
    return %arg0, %c0_i32, %c0_i32_0, %c0_i32_1 : i32, i32, i32, i32
  }
  func.func @transform_1(%arg0: i32) -> (i32, i32, i32, i32) {
    %c0_i32 = arith.constant 0 : i32
    %c0_i32_0 = arith.constant 0 : i32
    %c0_i32_1 = arith.constant 0 : i32
    %c0_i32_2 = arith.constant 0 : i32
    return %arg0, %c0_i32, %c0_i32_0, %c0_i32_1 : i32, i32, i32, i32
  }
  func.func @transform_2(%arg0: i32) -> (i32, i32, i32, i32) {
    %c0_i32 = arith.constant 0 : i32
    %c0_i32_0 = arith.constant 0 : i32
    %c0_i32_1 = arith.constant 0 : i32
    %c0_i32_2 = arith.constant 0 : i32
    return %arg0, %c0_i32, %c0_i32_0, %c0_i32_1 : i32, i32, i32, i32
  }
  func.func @transform_3(%arg0: i32) -> (i32, i32, i32, i32) {
    %c0_i32 = arith.constant 0 : i32
    %c0_i32_0 = arith.constant 0 : i32
    %c0_i32_1 = arith.constant 0 : i32
    %c0_i32_2 = arith.constant 0 : i32
    return %arg0, %c0_i32, %c0_i32_0, %c0_i32_1 : i32, i32, i32, i32
  }
}

module attributes {stable_mosaic.version = 11 : i64} {
  func.func @kernel(%arg0: i32, %arg1: memref<1x9x32xf32, #tpu.memory_space<vmem>>, %arg2: memref<1x9x32xf32, #tpu.memory_space<vmem>>, %arg3: memref<32x32xbf16, #tpu.memory_space<vmem>>, %arg4: memref<1x32xf32, #tpu.memory_space<vmem>>, %arg5: memref<32x64xbf16, #tpu.memory_space<vmem>>, %arg6: memref<1x64xf32, #tpu.memory_space<vmem>>, %arg7: memref<64x32xbf16, #tpu.memory_space<vmem>>, %arg8: memref<1x32xf32, #tpu.memory_space<vmem>>, %arg9: memref<1x32xf32, #tpu.memory_space<vmem>>, %arg10: memref<1x32xf32, #tpu.memory_space<vmem>>, %arg11: memref<1x32xf32, #tpu.memory_space<vmem>>, %arg12: memref<1x32xf32, #tpu.memory_space<vmem>>, %arg13: memref<1x32xf32, #tpu.memory_space<vmem>>, %arg14: memref<1x32xf32, #tpu.memory_space<vmem>>, %arg15: memref<1x9x32xf32, #tpu.memory_space<vmem>>) attributes {dimension_semantics = [#tpu.dimension_semantics<parallel>], iteration_bounds = array<i64: 2>, scalar_prefetch = 0 : i64, scratch_operands = 0 : i64, tpu.core_type = #tpu.core_type<tc>, window_params = [{transform_indices = @transform_0, window_bounds = array<i64: 1, 9, 32>}, {transform_indices = @transform_1, window_bounds = array<i64: 1, 9, 32>}, {pipeline_mode = #tpu.pipeline_mode<synchronous>, transform_indices = @transform_2, window_bounds = array<i64: 32, 32>}, {pipeline_mode = #tpu.pipeline_mode<synchronous>, transform_indices = @transform_3, window_bounds = array<i64: 1, 32>}, {pipeline_mode = #tpu.pipeline_mode<synchronous>, transform_indices = @transform_4, window_bounds = array<i64: 32, 64>}, {pipeline_mode = #tpu.pipeline_mode<synchronous>, transform_indices = @transform_5, window_bounds = array<i64: 1, 64>}, {pipeline_mode = #tpu.pipeline_mode<synchronous>, transform_indices = @transform_6, window_bounds = array<i64: 64, 32>}, {pipeline_mode = #tpu.pipeline_mode<synchronous>, transform_indices = @transform_7, window_bounds = array<i64: 1, 32>}, {pipeline_mode = #tpu.pipeline_mode<synchronous>, transform_indices = @transform_8, window_bounds = array<i64: 1, 32>}, {pipeline_mode = #tpu.pipeline_mode<synchronous>, transform_indices = @transform_9, window_bounds = array<i64: 1, 32>}, {pipeline_mode = #tpu.pipeline_mode<synchronous>, transform_indices = @transform_10, window_bounds = array<i64: 1, 32>}, {pipeline_mode = #tpu.pipeline_mode<synchronous>, transform_indices = @transform_11, window_bounds = array<i64: 1, 32>}, {pipeline_mode = #tpu.pipeline_mode<synchronous>, transform_indices = @transform_12, window_bounds = array<i64: 1, 32>}, {pipeline_mode = #tpu.pipeline_mode<synchronous>, transform_indices = @transform_13, window_bounds = array<i64: 1, 32>}, {transform_indices = @transform_14, window_bounds = array<i64: 1, 9, 32>}]} {
    %c0 = arith.constant 0 : index
    %c0_0 = arith.constant 0 : index
    %c0_1 = arith.constant 0 : index
    %0 = vector.load %arg2[%c0, %c0_0, %c0_1] : memref<1x9x32xf32, #tpu.memory_space<vmem>>, vector<1x9x32xf32>
    %1 = vector.shape_cast %0 : vector<1x9x32xf32> to vector<9x32xf32>
    %2 = arith.truncf %1 : vector<9x32xf32> to vector<9x32xbf16>
    %c0_2 = arith.constant 0 : index
    %c0_3 = arith.constant 0 : index
    %3 = vector.load %arg3[%c0_2, %c0_3] : memref<32x32xbf16, #tpu.memory_space<vmem>>, vector<32x32xbf16>
    %cst = arith.constant dense<0.000000e+00> : vector<9x32xf32>
    %4 = tpu.matmul %2, %3, %cst {dimension_numbers = #tpu.dot_dimension_numbers<[1], [0], [0], [1], [0, 0, 1, 1], [], []>} : vector<9x32xbf16>, vector<32x32xbf16>, vector<9x32xf32> -> vector<9x32xf32>
    %c0_4 = arith.constant 0 : index
    %c0_5 = arith.constant 0 : index
    %5 = vector.load %arg4[%c0_4, %c0_5] : memref<1x32xf32, #tpu.memory_space<vmem>>, vector<1x32xf32>
    %6 = vector.broadcast %5 : vector<1x32xf32> to vector<9x32xf32>
    %7 = arith.addf %4, %6 : vector<9x32xf32>
    %c0_6 = arith.constant 0 : index
    %c0_7 = arith.constant 0 : index
    %c0_8 = arith.constant 0 : index
    %8 = vector.load %arg1[%c0_6, %c0_7, %c0_8] : memref<1x9x32xf32, #tpu.memory_space<vmem>>, vector<1x9x32xf32>
    %9 = vector.shape_cast %8 : vector<1x9x32xf32> to vector<9x32xf32>
    %10 = arith.addf %9, %7 : vector<9x32xf32>
    %c0_9 = arith.constant 0 : index
    %c0_10 = arith.constant 0 : index
    %11 = vector.load %arg9[%c0_9, %c0_10] : memref<1x32xf32, #tpu.memory_space<vmem>>, vector<1x32xf32>
    %c0_11 = arith.constant 0 : index
    %c0_12 = arith.constant 0 : index
    %12 = vector.load %arg10[%c0_11, %c0_12] : memref<1x32xf32, #tpu.memory_space<vmem>>, vector<1x32xf32>
    %cst_13 = arith.constant dense<0.000000e+00> : vector<9xf32>
    %13 = vector.multi_reduction <add>, %10, %cst_13 [1] : vector<9x32xf32> to vector<9xf32>
    %14 = vector.shape_cast %13 : vector<9xf32> to vector<9x1xf32>
    %cst_14 = arith.constant 3.200000e+01 : f32
    %15 = vector.broadcast %cst_14 : f32 to vector<9x1xf32>
    %16 = arith.divf %14, %15 : vector<9x1xf32>
    %17 = vector.broadcast %16 : vector<9x1xf32> to vector<9x32xf32>
    %18 = arith.subf %10, %17 : vector<9x32xf32>
    %19 = arith.mulf %18, %18 : vector<9x32xf32>
    %cst_15 = arith.constant dense<0.000000e+00> : vector<9xf32>
    %20 = vector.multi_reduction <add>, %19, %cst_15 [1] : vector<9x32xf32> to vector<9xf32>
    %21 = vector.shape_cast %20 : vector<9xf32> to vector<9x1xf32>
    %cst_16 = arith.constant 3.200000e+01 : f32
    %22 = vector.broadcast %cst_16 : f32 to vector<9x1xf32>
    %23 = arith.divf %21, %22 : vector<9x1xf32>
    %24 = vector.broadcast %16 : vector<9x1xf32> to vector<9x32xf32>
    %25 = arith.subf %10, %24 : vector<9x32xf32>
    %cst_17 = arith.constant 9.99999974E-6 : f32
    %26 = vector.broadcast %cst_17 : f32 to vector<9x1xf32>
    %27 = arith.addf %23, %26 : vector<9x1xf32>
    %28 = math.rsqrt %27 : vector<9x1xf32>
    %29 = vector.broadcast %28 : vector<9x1xf32> to vector<9x32xf32>
    %30 = arith.mulf %25, %29 : vector<9x32xf32>
    %31 = vector.broadcast %11 : vector<1x32xf32> to vector<9x32xf32>
    %32 = arith.mulf %30, %31 : vector<9x32xf32>
    %33 = vector.broadcast %12 : vector<1x32xf32> to vector<9x32xf32>
    %34 = arith.addf %32, %33 : vector<9x32xf32>
    %35 = arith.truncf %34 : vector<9x32xf32> to vector<9x32xbf16>
    %c0_18 = arith.constant 0 : index
    %c0_19 = arith.constant 0 : index
    %36 = vector.load %arg5[%c0_18, %c0_19] : memref<32x64xbf16, #tpu.memory_space<vmem>>, vector<32x64xbf16>
    %cst_20 = arith.constant dense<0.000000e+00> : vector<9x64xf32>
    %37 = tpu.matmul %35, %36, %cst_20 {dimension_numbers = #tpu.dot_dimension_numbers<[1], [0], [0], [1], [0, 0, 1, 1], [], []>} : vector<9x32xbf16>, vector<32x64xbf16>, vector<9x64xf32> -> vector<9x64xf32>
    %c0_21 = arith.constant 0 : index
    %c0_22 = arith.constant 0 : index
    %38 = vector.load %arg6[%c0_21, %c0_22] : memref<1x64xf32, #tpu.memory_space<vmem>>, vector<1x64xf32>
    %39 = vector.broadcast %38 : vector<1x64xf32> to vector<9x64xf32>
    %40 = arith.addf %37, %39 : vector<9x64xf32>
    %cst_23 = arith.constant 0.000000e+00 : f32
    %41 = vector.broadcast %cst_23 : f32 to vector<9x64xf32>
    %42 = arith.maximumf %40, %41 : vector<9x64xf32>
    %43 = arith.truncf %42 : vector<9x64xf32> to vector<9x64xbf16>
    %c0_24 = arith.constant 0 : index
    %c0_25 = arith.constant 0 : index
    %44 = vector.load %arg7[%c0_24, %c0_25] : memref<64x32xbf16, #tpu.memory_space<vmem>>, vector<64x32xbf16>
    %cst_26 = arith.constant dense<0.000000e+00> : vector<9x32xf32>
    %45 = tpu.matmul %43, %44, %cst_26 {dimension_numbers = #tpu.dot_dimension_numbers<[1], [0], [0], [1], [0, 0, 1, 1], [], []>} : vector<9x64xbf16>, vector<64x32xbf16>, vector<9x32xf32> -> vector<9x32xf32>
    %c0_27 = arith.constant 0 : index
    %c0_28 = arith.constant 0 : index
    %46 = vector.load %arg8[%c0_27, %c0_28] : memref<1x32xf32, #tpu.memory_space<vmem>>, vector<1x32xf32>
    %47 = vector.broadcast %46 : vector<1x32xf32> to vector<9x32xf32>
    %48 = arith.addf %45, %47 : vector<9x32xf32>
    %49 = arith.addf %34, %48 : vector<9x32xf32>
    %c0_29 = arith.constant 0 : index
    %c0_30 = arith.constant 0 : index
    %50 = vector.load %arg11[%c0_29, %c0_30] : memref<1x32xf32, #tpu.memory_space<vmem>>, vector<1x32xf32>
    %c0_31 = arith.constant 0 : index
    %c0_32 = arith.constant 0 : index
    %51 = vector.load %arg12[%c0_31, %c0_32] : memref<1x32xf32, #tpu.memory_space<vmem>>, vector<1x32xf32>
    %cst_33 = arith.constant dense<0.000000e+00> : vector<9xf32>
    %52 = vector.multi_reduction <add>, %49, %cst_33 [1] : vector<9x32xf32> to vector<9xf32>
    %53 = vector.shape_cast %52 : vector<9xf32> to vector<9x1xf32>
    %cst_34 = arith.constant 3.200000e+01 : f32
    %54 = vector.broadcast %cst_34 : f32 to vector<9x1xf32>
    %55 = arith.divf %53, %54 : vector<9x1xf32>
    %56 = vector.broadcast %55 : vector<9x1xf32> to vector<9x32xf32>
    %57 = arith.subf %49, %56 : vector<9x32xf32>
    %58 = arith.mulf %57, %57 : vector<9x32xf32>
    %cst_35 = arith.constant dense<0.000000e+00> : vector<9xf32>
    %59 = vector.multi_reduction <add>, %58, %cst_35 [1] : vector<9x32xf32> to vector<9xf32>
    %60 = vector.shape_cast %59 : vector<9xf32> to vector<9x1xf32>
    %cst_36 = arith.constant 3.200000e+01 : f32
    %61 = vector.broadcast %cst_36 : f32 to vector<9x1xf32>
    %62 = arith.divf %60, %61 : vector<9x1xf32>
    %63 = vector.broadcast %55 : vector<9x1xf32> to vector<9x32xf32>
    %64 = arith.subf %49, %63 : vector<9x32xf32>
    %cst_37 = arith.constant 9.99999974E-6 : f32
    %65 = vector.broadcast %cst_37 : f32 to vector<9x1xf32>
    %66 = arith.addf %62, %65 : vector<9x1xf32>
    %67 = math.rsqrt %66 : vector<9x1xf32>
    %68 = vector.broadcast %67 : vector<9x1xf32> to vector<9x32xf32>
    %69 = arith.mulf %64, %68 : vector<9x32xf32>
    %70 = vector.broadcast %50 : vector<1x32xf32> to vector<9x32xf32>
    %71 = arith.mulf %69, %70 : vector<9x32xf32>
    %72 = vector.broadcast %51 : vector<1x32xf32> to vector<9x32xf32>
    %73 = arith.addf %71, %72 : vector<9x32xf32>
    %c0_38 = arith.constant 0 : index
    %c0_39 = arith.constant 0 : index
    %74 = vector.load %arg13[%c0_38, %c0_39] : memref<1x32xf32, #tpu.memory_space<vmem>>, vector<1x32xf32>
    %c0_40 = arith.constant 0 : index
    %c0_41 = arith.constant 0 : index
    %75 = vector.load %arg14[%c0_40, %c0_41] : memref<1x32xf32, #tpu.memory_space<vmem>>, vector<1x32xf32>
    %cst_42 = arith.constant dense<0.000000e+00> : vector<9xf32>
    %76 = vector.multi_reduction <add>, %73, %cst_42 [1] : vector<9x32xf32> to vector<9xf32>
    %77 = vector.shape_cast %76 : vector<9xf32> to vector<9x1xf32>
    %cst_43 = arith.constant 3.200000e+01 : f32
    %78 = vector.broadcast %cst_43 : f32 to vector<9x1xf32>
    %79 = arith.divf %77, %78 : vector<9x1xf32>
    %80 = vector.broadcast %79 : vector<9x1xf32> to vector<9x32xf32>
    %81 = arith.subf %73, %80 : vector<9x32xf32>
    %82 = arith.mulf %81, %81 : vector<9x32xf32>
    %cst_44 = arith.constant dense<0.000000e+00> : vector<9xf32>
    %83 = vector.multi_reduction <add>, %82, %cst_44 [1] : vector<9x32xf32> to vector<9xf32>
    %84 = vector.shape_cast %83 : vector<9xf32> to vector<9x1xf32>
    %cst_45 = arith.constant 3.200000e+01 : f32
    %85 = vector.broadcast %cst_45 : f32 to vector<9x1xf32>
    %86 = arith.divf %84, %85 : vector<9x1xf32>
    %87 = vector.broadcast %79 : vector<9x1xf32> to vector<9x32xf32>
    %88 = arith.subf %73, %87 : vector<9x32xf32>
    %cst_46 = arith.constant 9.99999974E-6 : f32
    %89 = vector.broadcast %cst_46 : f32 to vector<9x1xf32>
    %90 = arith.addf %86, %89 : vector<9x1xf32>
    %91 = math.rsqrt %90 : vector<9x1xf32>
    %92 = vector.broadcast %91 : vector<9x1xf32> to vector<9x32xf32>
    %93 = arith.mulf %88, %92 : vector<9x32xf32>
    %94 = vector.broadcast %74 : vector<1x32xf32> to vector<9x32xf32>
    %95 = arith.mulf %93, %94 : vector<9x32xf32>
    %96 = vector.broadcast %75 : vector<1x32xf32> to vector<9x32xf32>
    %97 = arith.addf %95, %96 : vector<9x32xf32>
    %c0_47 = arith.constant 0 : index
    %c0_48 = arith.constant 0 : index
    %c0_49 = arith.constant 0 : index
    %98 = vector.load %arg15[%c0_47, %c0_48, %c0_49] : memref<1x9x32xf32, #tpu.memory_space<vmem>>, vector<1x9x32xf32>
    %99 = vector.shape_cast %98 : vector<1x9x32xf32> to vector<9x32xf32>
    %100 = vector.shape_cast %97 : vector<9x32xf32> to vector<1x9x32xf32>
    tpu.vector_store %arg15[%c0_47, %c0_48, %c0_49], %100 {strides = array<i32>} : memref<1x9x32xf32, #tpu.memory_space<vmem>>, vector<1x9x32xf32>,
    return
  }
  func.func @transform_0(%arg0: i32) -> (i32, i32, i32) {
    %c0_i32 = arith.constant 0 : i32
    %c0_i32_0 = arith.constant 0 : i32
    %c0_i32_1 = arith.constant 0 : i32
    return %arg0, %c0_i32, %c0_i32_0 : i32, i32, i32
  }
  func.func @transform_1(%arg0: i32) -> (i32, i32, i32) {
    %c0_i32 = arith.constant 0 : i32
    %c0_i32_0 = arith.constant 0 : i32
    %c0_i32_1 = arith.constant 0 : i32
    return %arg0, %c0_i32, %c0_i32_0 : i32, i32, i32
  }
  func.func @transform_2(%arg0: i32) -> (i32, i32) {
    %c0_i32 = arith.constant 0 : i32
    %c0_i32_0 = arith.constant 0 : i32
    %c0_i32_1 = arith.constant 0 : i32
    return %c0_i32, %c0_i32_0 : i32, i32
  }
  func.func @transform_3(%arg0: i32) -> (i32, i32) {
    %c0_i32 = arith.constant 0 : i32
    %c0_i32_0 = arith.constant 0 : i32
    %c0_i32_1 = arith.constant 0 : i32
    return %c0_i32, %c0_i32_0 : i32, i32
  }
  func.func @transform_4(%arg0: i32) -> (i32, i32) {
    %c0_i32 = arith.constant 0 : i32
    %c0_i32_0 = arith.constant 0 : i32
    %c0_i32_1 = arith.constant 0 : i32
    return %c0_i32, %c0_i32_0 : i32, i32
  }
  func.func @transform_5(%arg0: i32) -> (i32, i32) {
    %c0_i32 = arith.constant 0 : i32
    %c0_i32_0 = arith.constant 0 : i32
    %c0_i32_1 = arith.constant 0 : i32
    return %c0_i32, %c0_i32_0 : i32, i32
  }
  func.func @transform_6(%arg0: i32) -> (i32, i32) {
    %c0_i32 = arith.constant 0 : i32
    %c0_i32_0 = arith.constant 0 : i32
    %c0_i32_1 = arith.constant 0 : i32
    return %c0_i32, %c0_i32_0 : i32, i32
  }
  func.func @transform_7(%arg0: i32) -> (i32, i32) {
    %c0_i32 = arith.constant 0 : i32
    %c0_i32_0 = arith.constant 0 : i32
    %c0_i32_1 = arith.constant 0 : i32
    return %c0_i32, %c0_i32_0 : i32, i32
  }
  func.func @transform_8(%arg0: i32) -> (i32, i32) {
    %c0_i32 = arith.constant 0 : i32
    %c0_i32_0 = arith.constant 0 : i32
    %c0_i32_1 = arith.constant 0 : i32
    return %c0_i32, %c0_i32_0 : i32, i32
  }
  func.func @transform_9(%arg0: i32) -> (i32, i32) {
    %c0_i32 = arith.constant 0 : i32
    %c0_i32_0 = arith.constant 0 : i32
    %c0_i32_1 = arith.constant 0 : i32
    return %c0_i32, %c0_i32_0 : i32, i32
  }
  func.func @transform_10(%arg0: i32) -> (i32, i32) {
    %c0_i32 = arith.constant 0 : i32
    %c0_i32_0 = arith.constant 0 : i32
    %c0_i32_1 = arith.constant 0 : i32
    return %c0_i32, %c0_i32_0 : i32, i32
  }
  func.func @transform_11(%arg0: i32) -> (i32, i32) {
    %c0_i32 = arith.constant 0 : i32
    %c0_i32_0 = arith.constant 0 : i32
    %c0_i32_1 = arith.constant 0 : i32
    return %c0_i32, %c0_i32_0 : i32, i32
  }
  func.func @transform_12(%arg0: i32) -> (i32, i32) {
    %c0_i32 = arith.constant 0 : i32
    %c0_i32_0 = arith.constant 0 : i32
    %c0_i32_1 = arith.constant 0 : i32
    return %c0_i32, %c0_i32_0 : i32, i32
  }
  func.func @transform_13(%arg0: i32) -> (i32, i32) {
    %c0_i32 = arith.constant 0 : i32
    %c0_i32_0 = arith.constant 0 : i32
    %c0_i32_1 = arith.constant 0 : i32
    return %c0_i32, %c0_i32_0 : i32, i32
  }
  func.func @transform_14(%arg0: i32) -> (i32, i32, i32) {
    %c0_i32 = arith.constant 0 : i32
    %c0_i32_0 = arith.constant 0 : i32
    %c0_i32_1 = arith.constant 0 : i32
    return %arg0, %c0_i32, %c0_i32_0 : i32, i32, i32
  }
}

module attributes {stable_mosaic.version = 11 : i64} {
  func.func @kernel(%arg0: i32, %arg1: memref<1x4x15x8xf32, #tpu.memory_space<vmem>>, %arg2: memref<1x4x16x8xf32, #tpu.memory_space<vmem>>, %arg3: memref<1x4x16x8xf32, #tpu.memory_space<vmem>>, %arg4: memref<1x4x15x1xi32, #tpu.memory_space<vmem>>, %arg5: memref<1x4x15x8xf32, #tpu.memory_space<vmem>>) attributes {dimension_semantics = [#tpu.dimension_semantics<parallel>], iteration_bounds = array<i64: 2>, scalar_prefetch = 0 : i64, scratch_operands = 0 : i64, tpu.core_type = #tpu.core_type<tc>, window_params = [{transform_indices = @transform_0, window_bounds = array<i64: 1, 4, 15, 8>}, {transform_indices = @transform_1, window_bounds = array<i64: 1, 4, 16, 8>}, {transform_indices = @transform_2, window_bounds = array<i64: 1, 4, 16, 8>}, {transform_indices = @transform_3, window_bounds = array<i64: 1, 4, 15, 1>}, {transform_indices = @transform_4, window_bounds = array<i64: 1, 4, 15, 8>}]} {
    %c0 = arith.constant 0 : index
    %c0_0 = arith.constant 0 : index
    %c0_1 = arith.constant 0 : index
    %c0_2 = arith.constant 0 : index
    %0 = vector.load %arg1[%c0, %c0_0, %c0_1, %c0_2] : memref<1x4x15x8xf32, #tpu.memory_space<vmem>>, vector<1x4x15x8xf32>
    %1 = vector.shape_cast %0 : vector<1x4x15x8xf32> to vector<4x15x8xf32>
    %2 = arith.truncf %1 : vector<4x15x8xf32> to vector<4x15x8xbf16>
    %c0_3 = arith.constant 0 : index
    %c0_4 = arith.constant 0 : index
    %c0_5 = arith.constant 0 : index
    %c0_6 = arith.constant 0 : index
    %3 = vector.load %arg2[%c0_3, %c0_4, %c0_5, %c0_6] : memref<1x4x16x8xf32, #tpu.memory_space<vmem>>, vector<1x4x16x8xf32>
    %4 = vector.shape_cast %3 : vector<1x4x16x8xf32> to vector<4x16x8xf32>
    %5 = arith.truncf %4 : vector<4x16x8xf32> to vector<4x16x8xbf16>
    "tpu.trace_start"() <{level = 10 : i32, message = "hud,hkd->huk"}> : () -> ()
    %cst = arith.constant dense<0.000000e+00> : vector<4x15x16xf32>
    %6 = tpu.matmul %2, %5, %cst {dimension_numbers = #tpu.dot_dimension_numbers<[2], [2], [1], [1], [0, 0, 0, 1, 1, 1], [0], [0]>} : vector<4x15x8xbf16>, vector<4x16x8xbf16>, vector<4x15x16xf32> -> vector<4x15x16xf32>
    "tpu.trace_stop"() : () -> ()
    %cst_7 = arith.constant 0.353553385 : f32
    %7 = vector.broadcast %cst_7 : f32 to vector<4x15x16xf32>
    %8 = arith.mulf %6, %7 : vector<4x15x16xf32>
    %9 = tpu.iota {dimensions = array<i32: 2>} : vector<4x15x16xi32>
    %c0_8 = arith.constant 0 : index
    %c0_9 = arith.constant 0 : index
    %c0_10 = arith.constant 0 : index
    %c0_11 = arith.constant 0 : index
    %10 = vector.load %arg4[%c0_8, %c0_9, %c0_10, %c0_11] : memref<1x4x15x1xi32, #tpu.memory_space<vmem>>, vector<1x4x15x1xi32>
    %11 = vector.shape_cast %10 : vector<1x4x15x1xi32> to vector<4x15x1xi32>
    %12 = vector.broadcast %11 : vector<4x15x1xi32> to vector<4x15x16xi32>
    %13 = arith.cmpi sgt, %9, %12 : vector<4x15x16xi32>
    %cst_12 = arith.constant -1.000000e+30 : f32
    %14 = vector.broadcast %cst_12 : f32 to vector<4x15x16xf32>
    %15 = arith.select %13, %14, %8 : vector<4x15x16xi1>, vector<4x15x16xf32>
    %cst_13 = arith.constant dense<0xFF800000> : vector<4x15xf32>
    %16 = vector.multi_reduction <maximumf>, %15, %cst_13 [2] : vector<4x15x16xf32> to vector<4x15xf32>
    %17 = vector.shape_cast %16 : vector<4x15xf32> to vector<4x15x1xf32>
    %18 = vector.broadcast %17 : vector<4x15x1xf32> to vector<4x15x16xf32>
    %19 = arith.subf %15, %18 : vector<4x15x16xf32>
    %20 = math.exp %19 : vector<4x15x16xf32>
    %cst_14 = arith.constant dense<0.000000e+00> : vector<4x15xf32>
    %21 = vector.multi_reduction <add>, %20, %cst_14 [2] : vector<4x15x16xf32> to vector<4x15xf32>
    %22 = vector.shape_cast %21 : vector<4x15xf32> to vector<4x15x1xf32>
    %23 = tpu.reciprocal %22 {approx = true} : vector<4x15x1xf32> -> vector<4x15x1xf32>
    %24 = vector.broadcast %23 : vector<4x15x1xf32> to vector<4x15x16xf32>
    %25 = arith.mulf %20, %24 : vector<4x15x16xf32>
    %26 = arith.truncf %25 : vector<4x15x16xf32> to vector<4x15x16xbf16>
    %c0_15 = arith.constant 0 : index
    %c0_16 = arith.constant 0 : index
    %c0_17 = arith.constant 0 : index
    %c0_18 = arith.constant 0 : index
    %27 = vector.load %arg3[%c0_15, %c0_16, %c0_17, %c0_18] : memref<1x4x16x8xf32, #tpu.memory_space<vmem>>, vector<1x4x16x8xf32>
    %28 = vector.shape_cast %27 : vector<1x4x16x8xf32> to vector<4x16x8xf32>
    %29 = arith.truncf %28 : vector<4x16x8xf32> to vector<4x16x8xbf16>
    "tpu.trace_start"() <{level = 10 : i32, message = "huk,hkd->hud"}> : () -> ()
    %cst_19 = arith.constant dense<0.000000e+00> : vector<4x15x8xf32>
    %30 = tpu.matmul %26, %29, %cst_19 {dimension_numbers = #tpu.dot_dimension_numbers<[2], [1], [1], [2], [0, 0, 0, 1, 1, 2], [0], [0]>} : vector<4x15x16xbf16>, vector<4x16x8xbf16>, vector<4x15x8xf32> -> vector<4x15x8xf32>
    "tpu.trace_stop"() : () -> ()
    %c0_20 = arith.constant 0 : index
    %c0_21 = arith.constant 0 : index
    %c0_22 = arith.constant 0 : index
    %c0_23 = arith.constant 0 : index
    %31 = vector.load %arg5[%c0_20, %c0_21, %c0_22, %c0_23] : memref<1x4x15x8xf32, #tpu.memory_space<vmem>>, vector<1x4x15x8xf32>
    %32 = vector.shape_cast %31 : vector<1x4x15x8xf32> to vector<4x15x8xf32>
    %33 = vector.shape_cast %30 : vector<4x15x8xf32> to vector<1x4x15x8xf32>
    tpu.vector_store %arg5[%c0_20, %c0_21, %c0_22, %c0_23], %33 {strides = array<i32>} : memref<1x4x15x8xf32, #tpu.memory_space<vmem>>, vector<1x4x15x8xf32>,
    return
  }
  func.func @transform_0(%arg0: i32) -> (i32, i32, i32, i32) {
    %c0_i32 = arith.constant 0 : i32
    %c0_i32_0 = arith.constant 0 : i32
    %c0_i32_1 = arith.constant 0 : i32
    %c0_i32_2 = arith.constant 0 : i32
    return %arg0, %c0_i32, %c0_i32_0, %c0_i32_1 : i32, i32, i32, i32
  }
  func.func @transform_1(%arg0: i32) -> (i32, i32, i32, i32) {
    %c0_i32 = arith.constant 0 : i32
    %c0_i32_0 = arith.constant 0 : i32
    %c0_i32_1 = arith.constant 0 : i32
    %c0_i32_2 = arith.constant 0 : i32
    return %arg0, %c0_i32, %c0_i32_0, %c0_i32_1 : i32, i32, i32, i32
  }
  func.func @transform_2(%arg0: i32) -> (i32, i32, i32, i32) {
    %c0_i32 = arith.constant 0 : i32
    %c0_i32_0 = arith.constant 0 : i32
    %c0_i32_1 = arith.constant 0 : i32
    %c0_i32_2 = arith.constant 0 : i32
    return %arg0, %c0_i32, %c0_i32_0, %c0_i32_1 : i32, i32, i32, i32
  }
  func.func @transform_3(%arg0: i32) -> (i32, i32, i32, i32) {
    %c0_i32 = arith.constant 0 : i32
    %c0_i32_0 = arith.constant 0 : i32
    %c0_i32_1 = arith.constant 0 : i32
    %c0_i32_2 = arith.constant 0 : i32
    return %arg0, %c0_i32, %c0_i32_0, %c0_i32_1 : i32, i32, i32, i32
  }
  func.func @transform_4(%arg0: i32) -> (i32, i32, i32, i32) {
    %c0_i32 = arith.constant 0 : i32
    %c0_i32_0 = arith.constant 0 : i32
    %c0_i32_1 = arith.constant 0 : i32
    %c0_i32_2 = arith.constant 0 : i32
    return %arg0, %c0_i32, %c0_i32_0, %c0_i32_1 : i32, i32, i32, i32
  }
}

module attributes {stable_mosaic.version = 11 : i64} {
  func.func @_selfproj_ln_crossqkv_kernel(%arg0: i32, %arg1: memref<1x16x32xf32, #tpu.memory_space<vmem>>, %arg2: memref<1x16x32xf32, #tpu.memory_space<vmem>>, %arg3: memref<1x9x32xf32, #tpu.memory_space<vmem>>, %arg4: memref<32x32xbf16, #tpu.memory_space<vmem>>, %arg5: memref<1x32xf32, #tpu.memory_space<vmem>>, %arg6: memref<1x32xf32, #tpu.memory_space<vmem>>, %arg7: memref<1x32xf32, #tpu.memory_space<vmem>>, %arg8: memref<32x32xbf16, #tpu.memory_space<vmem>>, %arg9: memref<1x32xf32, #tpu.memory_space<vmem>>, %arg10: memref<32x64xbf16, #tpu.memory_space<vmem>>, %arg11: memref<1x64xf32, #tpu.memory_space<vmem>>, %arg12: memref<1x16x32xf32, #tpu.memory_space<vmem>>, %arg13: memref<1x16x32xf32, #tpu.memory_space<vmem>>, %arg14: memref<1x9x64xf32, #tpu.memory_space<vmem>>) attributes {dimension_semantics = [#tpu.dimension_semantics<parallel>], iteration_bounds = array<i64: 2>, scalar_prefetch = 0 : i64, scratch_operands = 0 : i64, tpu.core_type = #tpu.core_type<tc>, window_params = [{transform_indices = @transform_0, window_bounds = array<i64: 1, 16, 32>}, {transform_indices = @transform_1, window_bounds = array<i64: 1, 16, 32>}, {transform_indices = @transform_2, window_bounds = array<i64: 1, 9, 32>}, {pipeline_mode = #tpu.pipeline_mode<synchronous>, transform_indices = @transform_3, window_bounds = array<i64: 32, 32>}, {pipeline_mode = #tpu.pipeline_mode<synchronous>, transform_indices = @transform_4, window_bounds = array<i64: 1, 32>}, {pipeline_mode = #tpu.pipeline_mode<synchronous>, transform_indices = @transform_5, window_bounds = array<i64: 1, 32>}, {pipeline_mode = #tpu.pipeline_mode<synchronous>, transform_indices = @transform_6, window_bounds = array<i64: 1, 32>}, {pipeline_mode = #tpu.pipeline_mode<synchronous>, transform_indices = @transform_7, window_bounds = array<i64: 32, 32>}, {pipeline_mode = #tpu.pipeline_mode<synchronous>, transform_indices = @transform_8, window_bounds = array<i64: 1, 32>}, {pipeline_mode = #tpu.pipeline_mode<synchronous>, transform_indices = @transform_9, window_bounds = array<i64: 32, 64>}, {pipeline_mode = #tpu.pipeline_mode<synchronous>, transform_indices = @transform_10, window_bounds = array<i64: 1, 64>}, {transform_indices = @transform_11, window_bounds = array<i64: 1, 16, 32>}, {transform_indices = @transform_12, window_bounds = array<i64: 1, 16, 32>}, {transform_indices = @transform_13, window_bounds = array<i64: 1, 9, 64>}]} {
    %c0 = arith.constant 0 : index
    %c0_0 = arith.constant 0 : index
    %c0_1 = arith.constant 0 : index
    %0 = vector.load %arg2[%c0, %c0_0, %c0_1] : memref<1x16x32xf32, #tpu.memory_space<vmem>>, vector<1x16x32xf32>
    %1 = vector.shape_cast %0 : vector<1x16x32xf32> to vector<16x32xf32>
    %2 = arith.truncf %1 : vector<16x32xf32> to vector<16x32xbf16>
    %c0_2 = arith.constant 0 : index
    %c0_3 = arith.constant 0 : index
    %3 = vector.load %arg4[%c0_2, %c0_3] : memref<32x32xbf16, #tpu.memory_space<vmem>>, vector<32x32xbf16>
    %cst = arith.constant dense<0.000000e+00> : vector<16x32xf32>
    %4 = tpu.matmul %2, %3, %cst {dimension_numbers = #tpu.dot_dimension_numbers<[1], [0], [0], [1], [0, 0, 1, 1], [], []>} : vector<16x32xbf16>, vector<32x32xbf16>, vector<16x32xf32> -> vector<16x32xf32>
    %c0_4 = arith.constant 0 : index
    %c0_5 = arith.constant 0 : index
    %5 = vector.load %arg5[%c0_4, %c0_5] : memref<1x32xf32, #tpu.memory_space<vmem>>, vector<1x32xf32>
    %6 = vector.broadcast %5 : vector<1x32xf32> to vector<16x32xf32>
    %7 = arith.addf %4, %6 : vector<16x32xf32>
    %c0_6 = arith.constant 0 : index
    %c0_7 = arith.constant 0 : index
    %c0_8 = arith.constant 0 : index
    %8 = vector.load %arg1[%c0_6, %c0_7, %c0_8] : memref<1x16x32xf32, #tpu.memory_space<vmem>>, vector<1x16x32xf32>
    %9 = vector.shape_cast %8 : vector<1x16x32xf32> to vector<16x32xf32>
    %10 = arith.addf %9, %7 : vector<16x32xf32>
    %c0_9 = arith.constant 0 : index
    %c0_10 = arith.constant 0 : index
    %11 = vector.load %arg6[%c0_9, %c0_10] : memref<1x32xf32, #tpu.memory_space<vmem>>, vector<1x32xf32>
    %c0_11 = arith.constant 0 : index
    %c0_12 = arith.constant 0 : index
    %12 = vector.load %arg7[%c0_11, %c0_12] : memref<1x32xf32, #tpu.memory_space<vmem>>, vector<1x32xf32>
    %cst_13 = arith.constant dense<0.000000e+00> : vector<16xf32>
    %13 = vector.multi_reduction <add>, %10, %cst_13 [1] : vector<16x32xf32> to vector<16xf32>
    %14 = vector.shape_cast %13 : vector<16xf32> to vector<16x1xf32>
    %cst_14 = arith.constant 3.200000e+01 : f32
    %15 = vector.broadcast %cst_14 : f32 to vector<16x1xf32>
    %16 = arith.divf %14, %15 : vector<16x1xf32>
    %17 = vector.broadcast %16 : vector<16x1xf32> to vector<16x32xf32>
    %18 = arith.subf %10, %17 : vector<16x32xf32>
    %19 = arith.mulf %18, %18 : vector<16x32xf32>
    %cst_15 = arith.constant dense<0.000000e+00> : vector<16xf32>
    %20 = vector.multi_reduction <add>, %19, %cst_15 [1] : vector<16x32xf32> to vector<16xf32>
    %21 = vector.shape_cast %20 : vector<16xf32> to vector<16x1xf32>
    %cst_16 = arith.constant 3.200000e+01 : f32
    %22 = vector.broadcast %cst_16 : f32 to vector<16x1xf32>
    %23 = arith.divf %21, %22 : vector<16x1xf32>
    %24 = vector.broadcast %16 : vector<16x1xf32> to vector<16x32xf32>
    %25 = arith.subf %10, %24 : vector<16x32xf32>
    %cst_17 = arith.constant 9.99999974E-6 : f32
    %26 = vector.broadcast %cst_17 : f32 to vector<16x1xf32>
    %27 = arith.addf %23, %26 : vector<16x1xf32>
    %28 = math.rsqrt %27 : vector<16x1xf32>
    %29 = vector.broadcast %28 : vector<16x1xf32> to vector<16x32xf32>
    %30 = arith.mulf %25, %29 : vector<16x32xf32>
    %31 = vector.broadcast %11 : vector<1x32xf32> to vector<16x32xf32>
    %32 = arith.mulf %30, %31 : vector<16x32xf32>
    %33 = vector.broadcast %12 : vector<1x32xf32> to vector<16x32xf32>
    %34 = arith.addf %32, %33 : vector<16x32xf32>
    %c0_18 = arith.constant 0 : index
    %c0_19 = arith.constant 0 : index
    %c0_20 = arith.constant 0 : index
    %35 = vector.load %arg12[%c0_18, %c0_19, %c0_20] : memref<1x16x32xf32, #tpu.memory_space<vmem>>, vector<1x16x32xf32>
    %36 = vector.shape_cast %35 : vector<1x16x32xf32> to vector<16x32xf32>
    %37 = vector.shape_cast %34 : vector<16x32xf32> to vector<1x16x32xf32>
    tpu.vector_store %arg12[%c0_18, %c0_19, %c0_20], %37 {strides = array<i32>} : memref<1x16x32xf32, #tpu.memory_space<vmem>>, vector<1x16x32xf32>,
    %38 = arith.truncf %34 : vector<16x32xf32> to vector<16x32xbf16>
    %c0_21 = arith.constant 0 : index
    %c0_22 = arith.constant 0 : index
    %39 = vector.load %arg8[%c0_21, %c0_22] : memref<32x32xbf16, #tpu.memory_space<vmem>>, vector<32x32xbf16>
    %cst_23 = arith.constant dense<0.000000e+00> : vector<16x32xf32>
    %40 = tpu.matmul %38, %39, %cst_23 {dimension_numbers = #tpu.dot_dimension_numbers<[1], [0], [0], [1], [0, 0, 1, 1], [], []>} : vector<16x32xbf16>, vector<32x32xbf16>, vector<16x32xf32> -> vector<16x32xf32>
    %c0_24 = arith.constant 0 : index
    %c0_25 = arith.constant 0 : index
    %41 = vector.load %arg9[%c0_24, %c0_25] : memref<1x32xf32, #tpu.memory_space<vmem>>, vector<1x32xf32>
    %42 = vector.broadcast %41 : vector<1x32xf32> to vector<16x32xf32>
    %43 = arith.addf %40, %42 : vector<16x32xf32>
    %c0_26 = arith.constant 0 : index
    %c0_27 = arith.constant 0 : index
    %c0_28 = arith.constant 0 : index
    %44 = vector.load %arg13[%c0_26, %c0_27, %c0_28] : memref<1x16x32xf32, #tpu.memory_space<vmem>>, vector<1x16x32xf32>
    %45 = vector.shape_cast %44 : vector<1x16x32xf32> to vector<16x32xf32>
    %46 = vector.shape_cast %43 : vector<16x32xf32> to vector<1x16x32xf32>
    tpu.vector_store %arg13[%c0_26, %c0_27, %c0_28], %46 {strides = array<i32>} : memref<1x16x32xf32, #tpu.memory_space<vmem>>, vector<1x16x32xf32>,
    %c0_29 = arith.constant 0 : index
    %c0_30 = arith.constant 0 : index
    %c0_31 = arith.constant 0 : index
    %47 = vector.load %arg3[%c0_29, %c0_30, %c0_31] : memref<1x9x32xf32, #tpu.memory_space<vmem>>, vector<1x9x32xf32>
    %48 = vector.shape_cast %47 : vector<1x9x32xf32> to vector<9x32xf32>
    %49 = arith.truncf %48 : vector<9x32xf32> to vector<9x32xbf16>
    %c0_32 = arith.constant 0 : index
    %c0_33 = arith.constant 0 : index
    %50 = vector.load %arg10[%c0_32, %c0_33] : memref<32x64xbf16, #tpu.memory_space<vmem>>, vector<32x64xbf16>
    %cst_34 = arith.constant dense<0.000000e+00> : vector<9x64xf32>
    %51 = tpu.matmul %49, %50, %cst_34 {dimension_numbers = #tpu.dot_dimension_numbers<[1], [0], [0], [1], [0, 0, 1, 1], [], []>} : vector<9x32xbf16>, vector<32x64xbf16>, vector<9x64xf32> -> vector<9x64xf32>
    %c0_35 = arith.constant 0 : index
    %c0_36 = arith.constant 0 : index
    %52 = vector.load %arg11[%c0_35, %c0_36] : memref<1x64xf32, #tpu.memory_space<vmem>>, vector<1x64xf32>
    %53 = vector.broadcast %52 : vector<1x64xf32> to vector<9x64xf32>
    %54 = arith.addf %51, %53 : vector<9x64xf32>
    %c0_37 = arith.constant 0 : index
    %c0_38 = arith.constant 0 : index
    %c0_39 = arith.constant 0 : index
    %55 = vector.load %arg14[%c0_37, %c0_38, %c0_39] : memref<1x9x64xf32, #tpu.memory_space<vmem>>, vector<1x9x64xf32>
    %56 = vector.shape_cast %55 : vector<1x9x64xf32> to vector<9x64xf32>
    %57 = vector.shape_cast %54 : vector<9x64xf32> to vector<1x9x64xf32>
    tpu.vector_store %arg14[%c0_37, %c0_38, %c0_39], %57 {strides = array<i32>} : memref<1x9x64xf32, #tpu.memory_space<vmem>>, vector<1x9x64xf32>,
    return
  }
  func.func @transform_0(%arg0: i32) -> (i32, i32, i32) {
    %c0_i32 = arith.constant 0 : i32
    %c0_i32_0 = arith.constant 0 : i32
    %c0_i32_1 = arith.constant 0 : i32
    return %arg0, %c0_i32, %c0_i32_0 : i32, i32, i32
  }
  func.func @transform_1(%arg0: i32) -> (i32, i32, i32) {
    %c0_i32 = arith.constant 0 : i32
    %c0_i32_0 = arith.constant 0 : i32
    %c0_i32_1 = arith.constant 0 : i32
    return %arg0, %c0_i32, %c0_i32_0 : i32, i32, i32
  }
  func.func @transform_2(%arg0: i32) -> (i32, i32, i32) {
    %c0_i32 = arith.constant 0 : i32
    %c0_i32_0 = arith.constant 0 : i32
    %c0_i32_1 = arith.constant 0 : i32
    return %arg0, %c0_i32, %c0_i32_0 : i32, i32, i32
  }
  func.func @transform_3(%arg0: i32) -> (i32, i32) {
    %c0_i32 = arith.constant 0 : i32
    %c0_i32_0 = arith.constant 0 : i32
    %c0_i32_1 = arith.constant 0 : i32
    return %c0_i32, %c0_i32_0 : i32, i32
  }
  func.func @transform_4(%arg0: i32) -> (i32, i32) {
    %c0_i32 = arith.constant 0 : i32
    %c0_i32_0 = arith.constant 0 : i32
    %c0_i32_1 = arith.constant 0 : i32
    return %c0_i32, %c0_i32_0 : i32, i32
  }
  func.func @transform_5(%arg0: i32) -> (i32, i32) {
    %c0_i32 = arith.constant 0 : i32
    %c0_i32_0 = arith.constant 0 : i32
    %c0_i32_1 = arith.constant 0 : i32
    return %c0_i32, %c0_i32_0 : i32, i32
  }
  func.func @transform_6(%arg0: i32) -> (i32, i32) {
    %c0_i32 = arith.constant 0 : i32
    %c0_i32_0 = arith.constant 0 : i32
    %c0_i32_1 = arith.constant 0 : i32
    return %c0_i32, %c0_i32_0 : i32, i32
  }
  func.func @transform_7(%arg0: i32) -> (i32, i32) {
    %c0_i32 = arith.constant 0 : i32
    %c0_i32_0 = arith.constant 0 : i32
    %c0_i32_1 = arith.constant 0 : i32
    return %c0_i32, %c0_i32_0 : i32, i32
  }
  func.func @transform_8(%arg0: i32) -> (i32, i32) {
    %c0_i32 = arith.constant 0 : i32
    %c0_i32_0 = arith.constant 0 : i32
    %c0_i32_1 = arith.constant 0 : i32
    return %c0_i32, %c0_i32_0 : i32, i32
  }
  func.func @transform_9(%arg0: i32) -> (i32, i32) {
    %c0_i32 = arith.constant 0 : i32
    %c0_i32_0 = arith.constant 0 : i32
    %c0_i32_1 = arith.constant 0 : i32
    return %c0_i32, %c0_i32_0 : i32, i32
  }
  func.func @transform_10(%arg0: i32) -> (i32, i32) {
    %c0_i32 = arith.constant 0 : i32
    %c0_i32_0 = arith.constant 0 : i32
    %c0_i32_1 = arith.constant 0 : i32
    return %c0_i32, %c0_i32_0 : i32, i32
  }
  func.func @transform_11(%arg0: i32) -> (i32, i32, i32) {
    %c0_i32 = arith.constant 0 : i32
    %c0_i32_0 = arith.constant 0 : i32
    %c0_i32_1 = arith.constant 0 : i32
    return %arg0, %c0_i32, %c0_i32_0 : i32, i32, i32
  }
  func.func @transform_12(%arg0: i32) -> (i32, i32, i32) {
    %c0_i32 = arith.constant 0 : i32
    %c0_i32_0 = arith.constant 0 : i32
    %c0_i32_1 = arith.constant 0 : i32
    return %arg0, %c0_i32, %c0_i32_0 : i32, i32, i32
  }
  func.func @transform_13(%arg0: i32) -> (i32, i32, i32) {
    %c0_i32 = arith.constant 0 : i32
    %c0_i32_0 = arith.constant 0 : i32
    %c0_i32_1 = arith.constant 0 : i32
    return %arg0, %c0_i32, %c0_i32_0 : i32, i32, i32
  }
}

module attributes {stable_mosaic.version = 11 : i64} {
  func.func @kernel(%arg0: i32, %arg1: memref<1x4x15x8xf32, #tpu.memory_space<vmem>>, %arg2: memref<1x4x9x8xf32, #tpu.memory_space<vmem>>, %arg3: memref<1x4x9x8xf32, #tpu.memory_space<vmem>>, %arg4: memref<1x4x15x8xf32, #tpu.memory_space<vmem>>) attributes {dimension_semantics = [#tpu.dimension_semantics<parallel>], iteration_bounds = array<i64: 2>, scalar_prefetch = 0 : i64, scratch_operands = 0 : i64, tpu.core_type = #tpu.core_type<tc>, window_params = [{transform_indices = @transform_0, window_bounds = array<i64: 1, 4, 15, 8>}, {transform_indices = @transform_1, window_bounds = array<i64: 1, 4, 9, 8>}, {transform_indices = @transform_2, window_bounds = array<i64: 1, 4, 9, 8>}, {transform_indices = @transform_3, window_bounds = array<i64: 1, 4, 15, 8>}]} {
    %c0 = arith.constant 0 : index
    %c0_0 = arith.constant 0 : index
    %c0_1 = arith.constant 0 : index
    %c0_2 = arith.constant 0 : index
    %0 = vector.load %arg1[%c0, %c0_0, %c0_1, %c0_2] : memref<1x4x15x8xf32, #tpu.memory_space<vmem>>, vector<1x4x15x8xf32>
    %1 = vector.shape_cast %0 : vector<1x4x15x8xf32> to vector<4x15x8xf32>
    %2 = arith.truncf %1 : vector<4x15x8xf32> to vector<4x15x8xbf16>
    %c0_3 = arith.constant 0 : index
    %c0_4 = arith.constant 0 : index
    %c0_5 = arith.constant 0 : index
    %c0_6 = arith.constant 0 : index
    %3 = vector.load %arg2[%c0_3, %c0_4, %c0_5, %c0_6] : memref<1x4x9x8xf32, #tpu.memory_space<vmem>>, vector<1x4x9x8xf32>
    %4 = vector.shape_cast %3 : vector<1x4x9x8xf32> to vector<4x9x8xf32>
    %5 = arith.truncf %4 : vector<4x9x8xf32> to vector<4x9x8xbf16>
    "tpu.trace_start"() <{level = 10 : i32, message = "hud,hkd->huk"}> : () -> ()
    %cst = arith.constant dense<0.000000e+00> : vector<4x15x9xf32>
    %6 = tpu.matmul %2, %5, %cst {dimension_numbers = #tpu.dot_dimension_numbers<[2], [2], [1], [1], [0, 0, 0, 1, 1, 1], [0], [0]>} : vector<4x15x8xbf16>, vector<4x9x8xbf16>, vector<4x15x9xf32> -> vector<4x15x9xf32>
    "tpu.trace_stop"() : () -> ()
    %cst_7 = arith.constant 0.353553385 : f32
    %7 = vector.broadcast %cst_7 : f32 to vector<4x15x9xf32>
    %8 = arith.mulf %6, %7 : vector<4x15x9xf32>
    %cst_8 = arith.constant dense<0xFF800000> : vector<4x15xf32>
    %9 = vector.multi_reduction <maximumf>, %8, %cst_8 [2] : vector<4x15x9xf32> to vector<4x15xf32>
    %10 = vector.shape_cast %9 : vector<4x15xf32> to vector<4x15x1xf32>
    %11 = vector.broadcast %10 : vector<4x15x1xf32> to vector<4x15x9xf32>
    %12 = arith.subf %8, %11 : vector<4x15x9xf32>
    %13 = math.exp %12 : vector<4x15x9xf32>
    %cst_9 = arith.constant dense<0.000000e+00> : vector<4x15xf32>
    %14 = vector.multi_reduction <add>, %13, %cst_9 [2] : vector<4x15x9xf32> to vector<4x15xf32>
    %15 = vector.shape_cast %14 : vector<4x15xf32> to vector<4x15x1xf32>
    %16 = tpu.reciprocal %15 {approx = true} : vector<4x15x1xf32> -> vector<4x15x1xf32>
    %17 = vector.broadcast %16 : vector<4x15x1xf32> to vector<4x15x9xf32>
    %18 = arith.mulf %13, %17 : vector<4x15x9xf32>
    %19 = arith.truncf %18 : vector<4x15x9xf32> to vector<4x15x9xbf16>
    %c0_10 = arith.constant 0 : index
    %c0_11 = arith.constant 0 : index
    %c0_12 = arith.constant 0 : index
    %c0_13 = arith.constant 0 : index
    %20 = vector.load %arg3[%c0_10, %c0_11, %c0_12, %c0_13] : memref<1x4x9x8xf32, #tpu.memory_space<vmem>>, vector<1x4x9x8xf32>
    %21 = vector.shape_cast %20 : vector<1x4x9x8xf32> to vector<4x9x8xf32>
    %22 = arith.truncf %21 : vector<4x9x8xf32> to vector<4x9x8xbf16>
    "tpu.trace_start"() <{level = 10 : i32, message = "huk,hkd->hud"}> : () -> ()
    %cst_14 = arith.constant dense<0.000000e+00> : vector<4x15x8xf32>
    %23 = tpu.matmul %19, %22, %cst_14 {dimension_numbers = #tpu.dot_dimension_numbers<[2], [1], [1], [2], [0, 0, 0, 1, 1, 2], [0], [0]>} : vector<4x15x9xbf16>, vector<4x9x8xbf16>, vector<4x15x8xf32> -> vector<4x15x8xf32>
    "tpu.trace_stop"() : () -> ()
    %c0_15 = arith.constant 0 : index
    %c0_16 = arith.constant 0 : index
    %c0_17 = arith.constant 0 : index
    %c0_18 = arith.constant 0 : index
    %24 = vector.load %arg4[%c0_15, %c0_16, %c0_17, %c0_18] : memref<1x4x15x8xf32, #tpu.memory_space<vmem>>, vector<1x4x15x8xf32>
    %25 = vector.shape_cast %24 : vector<1x4x15x8xf32> to vector<4x15x8xf32>
    %26 = vector.shape_cast %23 : vector<4x15x8xf32> to vector<1x4x15x8xf32>
    tpu.vector_store %arg4[%c0_15, %c0_16, %c0_17, %c0_18], %26 {strides = array<i32>} : memref<1x4x15x8xf32, #tpu.memory_space<vmem>>, vector<1x4x15x8xf32>,
    return
  }
  func.func @transform_0(%arg0: i32) -> (i32, i32, i32, i32) {
    %c0_i32 = arith.constant 0 : i32
    %c0_i32_0 = arith.constant 0 : i32
    %c0_i32_1 = arith.constant 0 : i32
    %c0_i32_2 = arith.constant 0 : i32
    return %arg0, %c0_i32, %c0_i32_0, %c0_i32_1 : i32, i32, i32, i32
  }
  func.func @transform_1(%arg0: i32) -> (i32, i32, i32, i32) {
    %c0_i32 = arith.constant 0 : i32
    %c0_i32_0 = arith.constant 0 : i32
    %c0_i32_1 = arith.constant 0 : i32
    %c0_i32_2 = arith.constant 0 : i32
    return %arg0, %c0_i32, %c0_i32_0, %c0_i32_1 : i32, i32, i32, i32
  }
  func.func @transform_2(%arg0: i32) -> (i32, i32, i32, i32) {
    %c0_i32 = arith.constant 0 : i32
    %c0_i32_0 = arith.constant 0 : i32
    %c0_i32_1 = arith.constant 0 : i32
    %c0_i32_2 = arith.constant 0 : i32
    return %arg0, %c0_i32, %c0_i32_0, %c0_i32_1 : i32, i32, i32, i32
  }
  func.func @transform_3(%arg0: i32) -> (i32, i32, i32, i32) {
    %c0_i32 = arith.constant 0 : i32
    %c0_i32_0 = arith.constant 0 : i32
    %c0_i32_1 = arith.constant 0 : i32
    %c0_i32_2 = arith.constant 0 : i32
    return %arg0, %c0_i32, %c0_i32_0, %c0_i32_1 : i32, i32, i32, i32
  }
}

module attributes {stable_mosaic.version = 11 : i64} {
  func.func @kernel(%arg0: i32, %arg1: memref<1x16x32xf32, #tpu.memory_space<vmem>>, %arg2: memref<1x16x32xf32, #tpu.memory_space<vmem>>, %arg3: memref<32x32xbf16, #tpu.memory_space<vmem>>, %arg4: memref<1x32xf32, #tpu.memory_space<vmem>>, %arg5: memref<32x64xbf16, #tpu.memory_space<vmem>>, %arg6: memref<1x64xf32, #tpu.memory_space<vmem>>, %arg7: memref<64x32xbf16, #tpu.memory_space<vmem>>, %arg8: memref<1x32xf32, #tpu.memory_space<vmem>>, %arg9: memref<1x32xf32, #tpu.memory_space<vmem>>, %arg10: memref<1x32xf32, #tpu.memory_space<vmem>>, %arg11: memref<1x32xf32, #tpu.memory_space<vmem>>, %arg12: memref<1x32xf32, #tpu.memory_space<vmem>>, %arg13: memref<1x32xf32, #tpu.memory_space<vmem>>, %arg14: memref<1x32xf32, #tpu.memory_space<vmem>>, %arg15: memref<1x16x32xf32, #tpu.memory_space<vmem>>) attributes {dimension_semantics = [#tpu.dimension_semantics<parallel>], iteration_bounds = array<i64: 2>, scalar_prefetch = 0 : i64, scratch_operands = 0 : i64, tpu.core_type = #tpu.core_type<tc>, window_params = [{transform_indices = @transform_0, window_bounds = array<i64: 1, 16, 32>}, {transform_indices = @transform_1, window_bounds = array<i64: 1, 16, 32>}, {pipeline_mode = #tpu.pipeline_mode<synchronous>, transform_indices = @transform_2, window_bounds = array<i64: 32, 32>}, {pipeline_mode = #tpu.pipeline_mode<synchronous>, transform_indices = @transform_3, window_bounds = array<i64: 1, 32>}, {pipeline_mode = #tpu.pipeline_mode<synchronous>, transform_indices = @transform_4, window_bounds = array<i64: 32, 64>}, {pipeline_mode = #tpu.pipeline_mode<synchronous>, transform_indices = @transform_5, window_bounds = array<i64: 1, 64>}, {pipeline_mode = #tpu.pipeline_mode<synchronous>, transform_indices = @transform_6, window_bounds = array<i64: 64, 32>}, {pipeline_mode = #tpu.pipeline_mode<synchronous>, transform_indices = @transform_7, window_bounds = array<i64: 1, 32>}, {pipeline_mode = #tpu.pipeline_mode<synchronous>, transform_indices = @transform_8, window_bounds = array<i64: 1, 32>}, {pipeline_mode = #tpu.pipeline_mode<synchronous>, transform_indices = @transform_9, window_bounds = array<i64: 1, 32>}, {pipeline_mode = #tpu.pipeline_mode<synchronous>, transform_indices = @transform_10, window_bounds = array<i64: 1, 32>}, {pipeline_mode = #tpu.pipeline_mode<synchronous>, transform_indices = @transform_11, window_bounds = array<i64: 1, 32>}, {pipeline_mode = #tpu.pipeline_mode<synchronous>, transform_indices = @transform_12, window_bounds = array<i64: 1, 32>}, {pipeline_mode = #tpu.pipeline_mode<synchronous>, transform_indices = @transform_13, window_bounds = array<i64: 1, 32>}, {transform_indices = @transform_14, window_bounds = array<i64: 1, 16, 32>}]} {
    %c0 = arith.constant 0 : index
    %c0_0 = arith.constant 0 : index
    %c0_1 = arith.constant 0 : index
    %0 = vector.load %arg2[%c0, %c0_0, %c0_1] : memref<1x16x32xf32, #tpu.memory_space<vmem>>, vector<1x16x32xf32>
    %1 = vector.shape_cast %0 : vector<1x16x32xf32> to vector<16x32xf32>
    %2 = arith.truncf %1 : vector<16x32xf32> to vector<16x32xbf16>
    %c0_2 = arith.constant 0 : index
    %c0_3 = arith.constant 0 : index
    %3 = vector.load %arg3[%c0_2, %c0_3] : memref<32x32xbf16, #tpu.memory_space<vmem>>, vector<32x32xbf16>
    %cst = arith.constant dense<0.000000e+00> : vector<16x32xf32>
    %4 = tpu.matmul %2, %3, %cst {dimension_numbers = #tpu.dot_dimension_numbers<[1], [0], [0], [1], [0, 0, 1, 1], [], []>} : vector<16x32xbf16>, vector<32x32xbf16>, vector<16x32xf32> -> vector<16x32xf32>
    %c0_4 = arith.constant 0 : index
    %c0_5 = arith.constant 0 : index
    %5 = vector.load %arg4[%c0_4, %c0_5] : memref<1x32xf32, #tpu.memory_space<vmem>>, vector<1x32xf32>
    %6 = vector.broadcast %5 : vector<1x32xf32> to vector<16x32xf32>
    %7 = arith.addf %4, %6 : vector<16x32xf32>
    %c0_6 = arith.constant 0 : index
    %c0_7 = arith.constant 0 : index
    %c0_8 = arith.constant 0 : index
    %8 = vector.load %arg1[%c0_6, %c0_7, %c0_8] : memref<1x16x32xf32, #tpu.memory_space<vmem>>, vector<1x16x32xf32>
    %9 = vector.shape_cast %8 : vector<1x16x32xf32> to vector<16x32xf32>
    %10 = arith.addf %9, %7 : vector<16x32xf32>
    %c0_9 = arith.constant 0 : index
    %c0_10 = arith.constant 0 : index
    %11 = vector.load %arg9[%c0_9, %c0_10] : memref<1x32xf32, #tpu.memory_space<vmem>>, vector<1x32xf32>
    %c0_11 = arith.constant 0 : index
    %c0_12 = arith.constant 0 : index
    %12 = vector.load %arg10[%c0_11, %c0_12] : memref<1x32xf32, #tpu.memory_space<vmem>>, vector<1x32xf32>
    %cst_13 = arith.constant dense<0.000000e+00> : vector<16xf32>
    %13 = vector.multi_reduction <add>, %10, %cst_13 [1] : vector<16x32xf32> to vector<16xf32>
    %14 = vector.shape_cast %13 : vector<16xf32> to vector<16x1xf32>
    %cst_14 = arith.constant 3.200000e+01 : f32
    %15 = vector.broadcast %cst_14 : f32 to vector<16x1xf32>
    %16 = arith.divf %14, %15 : vector<16x1xf32>
    %17 = vector.broadcast %16 : vector<16x1xf32> to vector<16x32xf32>
    %18 = arith.subf %10, %17 : vector<16x32xf32>
    %19 = arith.mulf %18, %18 : vector<16x32xf32>
    %cst_15 = arith.constant dense<0.000000e+00> : vector<16xf32>
    %20 = vector.multi_reduction <add>, %19, %cst_15 [1] : vector<16x32xf32> to vector<16xf32>
    %21 = vector.shape_cast %20 : vector<16xf32> to vector<16x1xf32>
    %cst_16 = arith.constant 3.200000e+01 : f32
    %22 = vector.broadcast %cst_16 : f32 to vector<16x1xf32>
    %23 = arith.divf %21, %22 : vector<16x1xf32>
    %24 = vector.broadcast %16 : vector<16x1xf32> to vector<16x32xf32>
    %25 = arith.subf %10, %24 : vector<16x32xf32>
    %cst_17 = arith.constant 9.99999974E-6 : f32
    %26 = vector.broadcast %cst_17 : f32 to vector<16x1xf32>
    %27 = arith.addf %23, %26 : vector<16x1xf32>
    %28 = math.rsqrt %27 : vector<16x1xf32>
    %29 = vector.broadcast %28 : vector<16x1xf32> to vector<16x32xf32>
    %30 = arith.mulf %25, %29 : vector<16x32xf32>
    %31 = vector.broadcast %11 : vector<1x32xf32> to vector<16x32xf32>
    %32 = arith.mulf %30, %31 : vector<16x32xf32>
    %33 = vector.broadcast %12 : vector<1x32xf32> to vector<16x32xf32>
    %34 = arith.addf %32, %33 : vector<16x32xf32>
    %35 = arith.truncf %34 : vector<16x32xf32> to vector<16x32xbf16>
    %c0_18 = arith.constant 0 : index
    %c0_19 = arith.constant 0 : index
    %36 = vector.load %arg5[%c0_18, %c0_19] : memref<32x64xbf16, #tpu.memory_space<vmem>>, vector<32x64xbf16>
    %cst_20 = arith.constant dense<0.000000e+00> : vector<16x64xf32>
    %37 = tpu.matmul %35, %36, %cst_20 {dimension_numbers = #tpu.dot_dimension_numbers<[1], [0], [0], [1], [0, 0, 1, 1], [], []>} : vector<16x32xbf16>, vector<32x64xbf16>, vector<16x64xf32> -> vector<16x64xf32>
    %c0_21 = arith.constant 0 : index
    %c0_22 = arith.constant 0 : index
    %38 = vector.load %arg6[%c0_21, %c0_22] : memref<1x64xf32, #tpu.memory_space<vmem>>, vector<1x64xf32>
    %39 = vector.broadcast %38 : vector<1x64xf32> to vector<16x64xf32>
    %40 = arith.addf %37, %39 : vector<16x64xf32>
    %cst_23 = arith.constant 0.000000e+00 : f32
    %41 = vector.broadcast %cst_23 : f32 to vector<16x64xf32>
    %42 = arith.maximumf %40, %41 : vector<16x64xf32>
    %43 = arith.truncf %42 : vector<16x64xf32> to vector<16x64xbf16>
    %c0_24 = arith.constant 0 : index
    %c0_25 = arith.constant 0 : index
    %44 = vector.load %arg7[%c0_24, %c0_25] : memref<64x32xbf16, #tpu.memory_space<vmem>>, vector<64x32xbf16>
    %cst_26 = arith.constant dense<0.000000e+00> : vector<16x32xf32>
    %45 = tpu.matmul %43, %44, %cst_26 {dimension_numbers = #tpu.dot_dimension_numbers<[1], [0], [0], [1], [0, 0, 1, 1], [], []>} : vector<16x64xbf16>, vector<64x32xbf16>, vector<16x32xf32> -> vector<16x32xf32>
    %c0_27 = arith.constant 0 : index
    %c0_28 = arith.constant 0 : index
    %46 = vector.load %arg8[%c0_27, %c0_28] : memref<1x32xf32, #tpu.memory_space<vmem>>, vector<1x32xf32>
    %47 = vector.broadcast %46 : vector<1x32xf32> to vector<16x32xf32>
    %48 = arith.addf %45, %47 : vector<16x32xf32>
    %49 = arith.addf %34, %48 : vector<16x32xf32>
    %c0_29 = arith.constant 0 : index
    %c0_30 = arith.constant 0 : index
    %50 = vector.load %arg11[%c0_29, %c0_30] : memref<1x32xf32, #tpu.memory_space<vmem>>, vector<1x32xf32>
    %c0_31 = arith.constant 0 : index
    %c0_32 = arith.constant 0 : index
    %51 = vector.load %arg12[%c0_31, %c0_32] : memref<1x32xf32, #tpu.memory_space<vmem>>, vector<1x32xf32>
    %cst_33 = arith.constant dense<0.000000e+00> : vector<16xf32>
    %52 = vector.multi_reduction <add>, %49, %cst_33 [1] : vector<16x32xf32> to vector<16xf32>
    %53 = vector.shape_cast %52 : vector<16xf32> to vector<16x1xf32>
    %cst_34 = arith.constant 3.200000e+01 : f32
    %54 = vector.broadcast %cst_34 : f32 to vector<16x1xf32>
    %55 = arith.divf %53, %54 : vector<16x1xf32>
    %56 = vector.broadcast %55 : vector<16x1xf32> to vector<16x32xf32>
    %57 = arith.subf %49, %56 : vector<16x32xf32>
    %58 = arith.mulf %57, %57 : vector<16x32xf32>
    %cst_35 = arith.constant dense<0.000000e+00> : vector<16xf32>
    %59 = vector.multi_reduction <add>, %58, %cst_35 [1] : vector<16x32xf32> to vector<16xf32>
    %60 = vector.shape_cast %59 : vector<16xf32> to vector<16x1xf32>
    %cst_36 = arith.constant 3.200000e+01 : f32
    %61 = vector.broadcast %cst_36 : f32 to vector<16x1xf32>
    %62 = arith.divf %60, %61 : vector<16x1xf32>
    %63 = vector.broadcast %55 : vector<16x1xf32> to vector<16x32xf32>
    %64 = arith.subf %49, %63 : vector<16x32xf32>
    %cst_37 = arith.constant 9.99999974E-6 : f32
    %65 = vector.broadcast %cst_37 : f32 to vector<16x1xf32>
    %66 = arith.addf %62, %65 : vector<16x1xf32>
    %67 = math.rsqrt %66 : vector<16x1xf32>
    %68 = vector.broadcast %67 : vector<16x1xf32> to vector<16x32xf32>
    %69 = arith.mulf %64, %68 : vector<16x32xf32>
    %70 = vector.broadcast %50 : vector<1x32xf32> to vector<16x32xf32>
    %71 = arith.mulf %69, %70 : vector<16x32xf32>
    %72 = vector.broadcast %51 : vector<1x32xf32> to vector<16x32xf32>
    %73 = arith.addf %71, %72 : vector<16x32xf32>
    %c0_38 = arith.constant 0 : index
    %c0_39 = arith.constant 0 : index
    %74 = vector.load %arg13[%c0_38, %c0_39] : memref<1x32xf32, #tpu.memory_space<vmem>>, vector<1x32xf32>
    %c0_40 = arith.constant 0 : index
    %c0_41 = arith.constant 0 : index
    %75 = vector.load %arg14[%c0_40, %c0_41] : memref<1x32xf32, #tpu.memory_space<vmem>>, vector<1x32xf32>
    %cst_42 = arith.constant dense<0.000000e+00> : vector<16xf32>
    %76 = vector.multi_reduction <add>, %73, %cst_42 [1] : vector<16x32xf32> to vector<16xf32>
    %77 = vector.shape_cast %76 : vector<16xf32> to vector<16x1xf32>
    %cst_43 = arith.constant 3.200000e+01 : f32
    %78 = vector.broadcast %cst_43 : f32 to vector<16x1xf32>
    %79 = arith.divf %77, %78 : vector<16x1xf32>
    %80 = vector.broadcast %79 : vector<16x1xf32> to vector<16x32xf32>
    %81 = arith.subf %73, %80 : vector<16x32xf32>
    %82 = arith.mulf %81, %81 : vector<16x32xf32>
    %cst_44 = arith.constant dense<0.000000e+00> : vector<16xf32>
    %83 = vector.multi_reduction <add>, %82, %cst_44 [1] : vector<16x32xf32> to vector<16xf32>
    %84 = vector.shape_cast %83 : vector<16xf32> to vector<16x1xf32>
    %cst_45 = arith.constant 3.200000e+01 : f32
    %85 = vector.broadcast %cst_45 : f32 to vector<16x1xf32>
    %86 = arith.divf %84, %85 : vector<16x1xf32>
    %87 = vector.broadcast %79 : vector<16x1xf32> to vector<16x32xf32>
    %88 = arith.subf %73, %87 : vector<16x32xf32>
    %cst_46 = arith.constant 9.99999974E-6 : f32
    %89 = vector.broadcast %cst_46 : f32 to vector<16x1xf32>
    %90 = arith.addf %86, %89 : vector<16x1xf32>
    %91 = math.rsqrt %90 : vector<16x1xf32>
    %92 = vector.broadcast %91 : vector<16x1xf32> to vector<16x32xf32>
    %93 = arith.mulf %88, %92 : vector<16x32xf32>
    %94 = vector.broadcast %74 : vector<1x32xf32> to vector<16x32xf32>
    %95 = arith.mulf %93, %94 : vector<16x32xf32>
    %96 = vector.broadcast %75 : vector<1x32xf32> to vector<16x32xf32>
    %97 = arith.addf %95, %96 : vector<16x32xf32>
    %c0_47 = arith.constant 0 : index
    %c0_48 = arith.constant 0 : index
    %c0_49 = arith.constant 0 : index
    %98 = vector.load %arg15[%c0_47, %c0_48, %c0_49] : memref<1x16x32xf32, #tpu.memory_space<vmem>>, vector<1x16x32xf32>
    %99 = vector.shape_cast %98 : vector<1x16x32xf32> to vector<16x32xf32>
    %100 = vector.shape_cast %97 : vector<16x32xf32> to vector<1x16x32xf32>
    tpu.vector_store %arg15[%c0_47, %c0_48, %c0_49], %100 {strides = array<i32>} : memref<1x16x32xf32, #tpu.memory_space<vmem>>, vector<1x16x32xf32>,
    return
  }
  func.func @transform_0(%arg0: i32) -> (i32, i32, i32) {
    %c0_i32 = arith.constant 0 : i32
    %c0_i32_0 = arith.constant 0 : i32
    %c0_i32_1 = arith.constant 0 : i32
    return %arg0, %c0_i32, %c0_i32_0 : i32, i32, i32
  }
  func.func @transform_1(%arg0: i32) -> (i32, i32, i32) {
    %c0_i32 = arith.constant 0 : i32
    %c0_i32_0 = arith.constant 0 : i32
    %c0_i32_1 = arith.constant 0 : i32
    return %arg0, %c0_i32, %c0_i32_0 : i32, i32, i32
  }
  func.func @transform_2(%arg0: i32) -> (i32, i32) {
    %c0_i32 = arith.constant 0 : i32
    %c0_i32_0 = arith.constant 0 : i32
    %c0_i32_1 = arith.constant 0 : i32
    return %c0_i32, %c0_i32_0 : i32, i32
  }
  func.func @transform_3(%arg0: i32) -> (i32, i32) {
    %c0_i32 = arith.constant 0 : i32
    %c0_i32_0 = arith.constant 0 : i32
    %c0_i32_1 = arith.constant 0 : i32
    return %c0_i32, %c0_i32_0 : i32, i32
  }
  func.func @transform_4(%arg0: i32) -> (i32, i32) {
    %c0_i32 = arith.constant 0 : i32
    %c0_i32_0 = arith.constant 0 : i32
    %c0_i32_1 = arith.constant 0 : i32
    return %c0_i32, %c0_i32_0 : i32, i32
  }
  func.func @transform_5(%arg0: i32) -> (i32, i32) {
    %c0_i32 = arith.constant 0 : i32
    %c0_i32_0 = arith.constant 0 : i32
    %c0_i32_1 = arith.constant 0 : i32
    return %c0_i32, %c0_i32_0 : i32, i32
  }
  func.func @transform_6(%arg0: i32) -> (i32, i32) {
    %c0_i32 = arith.constant 0 : i32
    %c0_i32_0 = arith.constant 0 : i32
    %c0_i32_1 = arith.constant 0 : i32
    return %c0_i32, %c0_i32_0 : i32, i32
  }
  func.func @transform_7(%arg0: i32) -> (i32, i32) {
    %c0_i32 = arith.constant 0 : i32
    %c0_i32_0 = arith.constant 0 : i32
    %c0_i32_1 = arith.constant 0 : i32
    return %c0_i32, %c0_i32_0 : i32, i32
  }
  func.func @transform_8(%arg0: i32) -> (i32, i32) {
    %c0_i32 = arith.constant 0 : i32
    %c0_i32_0 = arith.constant 0 : i32
    %c0_i32_1 = arith.constant 0 : i32
    return %c0_i32, %c0_i32_0 : i32, i32
  }
  func.func @transform_9(%arg0: i32) -> (i32, i32) {
    %c0_i32 = arith.constant 0 : i32
    %c0_i32_0 = arith.constant 0 : i32
    %c0_i32_1 = arith.constant 0 : i32
    return %c0_i32, %c0_i32_0 : i32, i32
  }
  func.func @transform_10(%arg0: i32) -> (i32, i32) {
    %c0_i32 = arith.constant 0 : i32
    %c0_i32_0 = arith.constant 0 : i32
    %c0_i32_1 = arith.constant 0 : i32
    return %c0_i32, %c0_i32_0 : i32, i32
  }
  func.func @transform_11(%arg0: i32) -> (i32, i32) {
    %c0_i32 = arith.constant 0 : i32
    %c0_i32_0 = arith.constant 0 : i32
    %c0_i32_1 = arith.constant 0 : i32
    return %c0_i32, %c0_i32_0 : i32, i32
  }
  func.func @transform_12(%arg0: i32) -> (i32, i32) {
    %c0_i32 = arith.constant 0 : i32
    %c0_i32_0 = arith.constant 0 : i32
    %c0_i32_1 = arith.constant 0 : i32
    return %c0_i32, %c0_i32_0 : i32, i32
  }
  func.func @transform_13(%arg0: i32) -> (i32, i32) {
    %c0_i32 = arith.constant 0 : i32
    %c0_i32_0 = arith.constant 0 : i32
    %c0_i32_1 = arith.constant 0 : i32
    return %c0_i32, %c0_i32_0 : i32, i32
  }
  func.func @transform_14(%arg0: i32) -> (i32, i32, i32) {
    %c0_i32 = arith.constant 0 : i32
    %c0_i32_0 = arith.constant 0 : i32
    %c0_i32_1 = arith.constant 0 : i32
    return %arg0, %c0_i32, %c0_i32_0 : i32, i32, i32
  }
}

</mosaic_0001>

<bundles_post_ra>
// kernel: tpu_custom_call.1
= control target key start
LH: loop header
LB: loop body
LE: loop exit
PB: predicated region body
PF: predicated region fallthrough
CT: control target
= control target key end

     0   :  { %6 = vsyncpa [#allocation3], 0  ;;  %s119_s0 = inlined_call_operand.hbm [shape: f32[16,128], index: 0, kind: input, shape index: {}]   ;;  %s120_s1 = inlined_call_operand.hbm [shape: f32[16,128], index: 1, kind: output, shape index: {}]  }
   0x1   :  { %7 = vsyncpa [#allocation4], 0  ;;  %s99_s6 = smov [#allocation2]  }
   0x2   :  { %s13_s7 = sshll.u32 %s99_s6, 4  ;;  %s14_s7 = int_to_ptr.vmem [resolvable:$true] %s13_s7 }
   0x3   :  { %s63_s8 = scalar_lea.vmem %s14_s7, 256  ;;  %p68_p1 = scmp.lt.s32.totalorder %s14_s7, %s14_s7 }
   0x4   :  { %p64_p0 = scmp.ne.s32.totalorder %s14_s7, %s63_s8  ;;  %p69_p2 = scmp.lt.s32.totalorder %s63_s8, %s63_s8 }
   0x6   :  { %p70_p3 = por %p69_p2, %p68_p1 }
   0x8   :  { %p71_p4 = pnand %p70_p3, %p64_p0 }
   0xa   :  { %74 = shalt.err (!%p71_p4)
}
   0xb   :  { %s100_s9 = smov 128   ;;  %s101_s10 = smov 8  }
   0xc   :  { %19 = dma.hbm_to_vmem [thread:$0]  %s119_s0, 256, %s14_s7, [#allocation3], %s100_s9, %s100_s9, %s101_s10  }
   0xd   :  { %95 = dma.done.wait [#allocation3], 256  }
   0xe   :  { %96 = vsyncadd [#allocation3], 4294967040  ;;  %v27_v0 = vlaneseq  ;;  %s102_s13 = smov [#allocation5]   ;;  %v23_v2 = vld [vmem:[#allocation2] sm:$0xff]  ;;  %v24_v3 = vld [vmem:[#allocation2 + $0x8] sm:$0xff] }
   0xf   :  { %s39_s14 = sshll.u32 %s102_s13, 4  ;;  %v25_v4 = vrot.slane %v23_v2, 7  ;;  %v26_v5 = vrot.slane %v24_v3, 7  ;;  %s40_s14 = int_to_ptr.vmem [resolvable:$true] %s39_s14 }
  0x10   :  { %v28_v1 = vshrl.u32 %v27_v0, 7  ;;  %s75_s15 = scalar_lea.vmem %s40_s14, 256  ;;  %p80_p6 = scmp.lt.s32.totalorder %s40_s14, %s40_s14 }
  0x11   :  { %p76_p5 = scmp.ne.s32.totalorder %s40_s14, %s75_s15  ;;  %p81_p7 = scmp.lt.s32.totalorder %s75_s15, %s75_s15 }
  0x12   :  { %vm29_vm0 = vcmp.lt.s32.totalorder %v28_v1, 1 }
  0x13   :  { %v31_v6 = vsel %vm29_vm0, %v26_v5, %v25_v4  ;;  %v30_v7 = vsel %vm29_vm0, %v25_v4, %v26_v5  ;;  %p82_p8 = por %p81_p7, %p80_p6 }
  0x14   :  { %32 = vst [vmem:[#allocation5] sm:$0xff] %v31_v6  ;;  %33 = vst [vmem:[#allocation5 + $0x8] sm:$0xff] %v30_v7 }
  0x15   :  { %p83_p9 = pnand %p82_p8, %p76_p5 }
  0x17   :  { %86 = shalt.err (!%p83_p9)
}
  0x18   :  { %45 = dma.vmem_to_hbm [thread:$0]  %s40_s14, 256, %s120_s1, [#allocation4], %s100_s9, %s100_s9, %s101_s10  }
  0x19   :  { %97 = dma.done.wait [#allocation4], 256  }
  0x1a   :  { %98 = vsyncadd [#allocation4], 4294967040 }
  0x1b   :  { %49 = vsyncpa [#allocation3], 1 }
  0x1c   :  { %50 = vsyncpa [#allocation4], 1 }

// kernel: _lambda_.15
= control target key start
LH: loop header
LB: loop body
LE: loop exit
PB: predicated region body
PF: predicated region fallthrough
CT: control target
= control target key end

     0   :  { %s371_s12 = smov 0   ;;  %s397_s0 = inlined_call_operand.vmem [shape: f32[2,16,32], index: 0, kind: input, shape index: {}]   ;;  %s398_s1 = inlined_call_operand.vmem [shape: bf16[32,96], index: 1, kind: input, shape index: {}]   ;;  %s399_s2 = inlined_call_operand.vmem [shape: f32[1,96], index: 2, kind: input, shape index: {}]   ;;  %s400_s3 = inlined_call_operand.vmem [shape: f32[2,16,96], index: 3, kind: output, shape index: {}]  }
   0x1 LB: > { %s301_s13 = sadd.s32 4294967295, %s347_s12   ;;  %p305_p0 = scmp.ge.s32.totalorder %s347_s12, 1  ;;  %s347_s12 = sphi %s371_s12, %s13_s12  }
   0x2   : > { %p137_p1 = scmp.lt.s32.totalorder %s347_s12, 3 }
   0x4   : > { %p138_p2 = pnand %p305_p0, %p137_p1 }
   0x5   : > { %p161_p3 = scmp.lt.s32.totalorder (!%p138_p2), %s301_s13, 1 }
   0x6   : > { %141 = sbr.rel (%p138_p2) target bundleno = 220 (0xdc), region = 32 }
   0xb   : > { %v339_v0 = vld [vmem:[%s398_s1 + $0x8] sm:$0xff]   ;;  %v349_v1 = vmov 0.0   ;;  %v340_v2 = vld [vmem:[%s398_s1] sm:$0xff]   ;;  %vm350_vm0 = vmmov 0   ;;  %s402_s13 = smov (!%p161_p3, %s301_s13), 1  ;;  %vm198_vm1 = vcmask 261120  }
   0xc   : > { %321 = vmatprep.subr.bf16.mxu0 %v349_v1  ;;  %325 = vmatprep.mubr.msk.bf16.mxu0 %vm350_vm0, %v349_v1  ;;  %s316_s18 = sshll.u32 %s402_s13, 4  ;;  %v310_v6 = vld [vmem:[%s399_s2] ss:$0 sm:$0xff]  ;;  %vm243_vm2 = vcmask 785408  }
   0xd   : > { %322 = vmatpush3.bf16.msra.mxu0 %v339_v0  ;;  %s165_s21 = scalar_lea.vmem %s397_s0, %s316_s18  ;;  %s170_s26 = scalar_lea.vmem %s400_s3, %s316_s18 }
   0xe   : > { %323 = vmatprep.subr.bf16.mxu0 %v349_v1  ;;  %v172_v3 = vld [vmem:[%s165_s21] sm:$0xff]  ;;  %v173_v4 = vld [vmem:[%s165_s21 + $0x8] sm:$0xff] }
   0xf   : > { %v174_v5 = vpack.c.bf16 %v173_v4, %v172_v3 }
  0x11   : > { %324 = vmatpush3.bf16.msra.mxu0 %v340_v2 }
  0x14   : > { %326 = vmatmul.mubr.msk.bf16.vlgmr.msra.gmra.mxu0 %vm198_vm1, %v174_v5 }
  0xd4   : > { %v236_v7 = vpop.f32.mrf.mxu0 }
  0xd5   : > { %v237_v8 = vadd.f32 %v310_v6, %v236_v7 }
  0xd6   : > { %v327_v9 = vpop.f32.mrf.mxu0 }
  0xd7   : > { %244 = vst.msk [vmem:[%s170_s26] sm:$0xff] %vm243_vm2, %v237_v8 }
  0xd8   : > { %v239_v10 = vpop.f32.mrf.mxu0 }
  0xd9   : > { %v240_v11 = vadd.f32 %v310_v6, %v239_v10 }
  0xda   : > { %v328_v12 = vpop.f32.mrf.mxu0 }
  0xdb   : > { %245 = vst.msk [vmem:[%s170_s26 + $0x8] sm:$0xff] %vm243_vm2, %v240_v11 }
  0xdc PF: > { %s13_s12 = sadd.s32 1, %s347_s12  }
  0xdd   : > { %p10_p4 = scmp.ge.s32.totalorder %s13_s12, 4  }
  0xdf   :  { %12 = sbr.rel (!%p10_p4) target bundleno = 1 (0x1), region = 62 }

// kernel: _lambda_.14
= control target key start
LH: loop header
LB: loop body
LE: loop exit
PB: predicated region body
PF: predicated region fallthrough
CT: control target
= control target key end

     0   :  { %s489_s15 = smov 0   ;;  %s523_s0 = inlined_call_operand.vmem [shape: f32[2,16,4], index: 0, kind: input, shape index: {}]   ;;  %s524_s1 = inlined_call_operand.vmem [shape: f32[2,16,4], index: 1, kind: input, shape index: {}]   ;;  %s525_s2 = inlined_call_operand.vmem [shape: f32[16,32], index: 2, kind: input, shape index: {}]   ;;  %s526_s3 = inlined_call_operand.vmem [shape: bf16[16,32], index: 3, kind: input, shape index: {}]   ;;  %s527_s4 = inlined_call_operand.vmem [shape: f32[2,16,32], index: 4, kind: output, shape index: {}]  }
   0x1 LB: > { %s396_s16 = sadd.s32 4294967295, %s457_s15   ;;  %p400_p0 = scmp.ge.s32.totalorder %s457_s15, 1  ;;  %s457_s15 = sphi %s489_s15, %s14_s15  }
   0x2   : > { %p172_p1 = scmp.lt.s32.totalorder %s457_s15, 3 }
   0x4   : > { %p173_p2 = pnand %p400_p0, %p172_p1 }
   0x5   : > { %p203_p3 = scmp.lt.s32.totalorder (!%p173_p2), %s396_s16, 1  ;;  %s461_s26 = smov (!%p173_p2), 4  }
   0x6   : > { %176 = sbr.rel (%p173_p2) target bundleno = 342 (0x156), region = 36  ;;  %s462_s27 = smov (!%p173_p2), 12  }
   0x7   : > { %s463_s28 = smov (!%p173_p2), 8  }
   0xb   : > { %v450_v0 = vld [vmem:[%s526_s3] sm:$0xff]   ;;  %s529_s16 = smov (!%p203_p3, %s396_s16), 1  ;;  %v459_v1 = vmov 0.0   ;;  %vm460_vm0 = vmmov 0   ;;  %vm233_vm1 = vcmask 1046528   ;;  %vm227_vm2 = vcmask 1040384  }
   0xc   : > { %416 = vmatprep.subr.bf16.mxu0 %v459_v1  ;;  %s500_s19 = sshll.u32 %s529_s16, 4  ;;  %418 = vmatprep.mubr.msk.bf16.mxu0 %vm460_vm0, %v459_v1  ;;  %vm261_vm3 = vcmask 31744   ;;  %vm264_vm4 = vcmask 64512   ;;  %vm267_vm5 = vcmask 97280   ;;  %vm281_vm6 = vcmask 130048   ;;  %v273_v33 = vld [vmem:[%s525_s2] sm:$0xff] }
   0xd   : > { %417 = vmatpush3.bf16.msra.mxu0 %v450_v0  ;;  %s207_s22 = scalar_lea.vmem %s523_s0, %s500_s19  ;;  %s212_s25 = scalar_lea.vmem %s524_s1, %s500_s19  ;;  %vm326_vm7 = vcmask 261120   ;;  %v274_v37 = vld [vmem:[%s525_s2 + $0x8] sm:$0xff] }
   0xe   : > { %v219_v2 = vld [vmem:[%s207_s22] sm:$0xff]  ;;  %v220_v3 = vld [vmem:[%s207_s22 + $0x8] sm:$0xff]  ;;  %s217_s7 = scalar_lea.vmem %s527_s4, %s500_s19 }
   0xf   : > { %v221_v4 = vld [vmem:[%s212_s25] sm:$0xff]  ;;  %v224_v5 = vrot.slane %v220_v3, 7  ;;  %v235_v6 = vrot.slane %v220_v3, 1  ;;  %v435_v7 = vpack.i.bf16 %v220_v3, %v219_v2  ;;  %v228_v8 = vrot.slane %v219_v2, 7  ;;  %v222_v9 = vld [vmem:[%s212_s25 + $0x8] sm:$0xff] }
  0x10   : > { %v234_v10 = vrot.slane %v219_v2, 1  ;;  %v445_v11 = vpack.i.bf16 %v222_v9, %v221_v4 }
  0x11   : > { %436 = vrot.lane.b32.xlu0 %v435_v7, %s461_s26  ;;  %v229_v12 = vsel %vm227_vm2, %v228_v8, %v224_v5  ;;  %v232_v13 = vsel %vm227_vm2, %v224_v5, %v228_v8 }
  0x12   : > { %v236_v14 = vsel %vm233_vm1, %v234_v10, %v235_v6  ;;  %v239_v15 = vsel %vm233_vm1, %v235_v6, %v234_v10  ;;  %446 = vrot.lane.b32.xlu1 %v445_v11, %s462_s27 }
  0x13   : > { %v440_v16 = vpack.i.bf16 %v239_v15, %v236_v14 }
  0x15   : > { %441 = vrot.lane.b32.xlu0 %v440_v16, %s463_s28 }
  0x83   : > { %v437_v17 = vpop.permute.xlu0 %436 }
  0x84   : > { %v447_v18 = vpop.permute.xlu1 %446  ;;  %v439_v19 = vunpack.i.h.bf16 %v437_v17  ;;  %v438_v20 = vunpack.i.l.bf16 %v437_v17 }
  0x85   : > { %v449_v22 = vunpack.i.h.bf16 %v447_v18  ;;  %v448_v23 = vunpack.i.l.bf16 %v447_v18 }
  0x86   : > { %v262_v26 = vsel %vm261_vm3, %v232_v13, %v438_v20  ;;  %v263_v27 = vsel %vm261_vm3, %v229_v12, %v439_v19 }
  0x87   : > { %v442_v21 = vpop.permute.xlu0 %441 }
  0x88   : > { %v444_v24 = vunpack.i.h.bf16 %v442_v21  ;;  %v443_v25 = vunpack.i.l.bf16 %v442_v21 }
  0x8a   : > { %v265_v28 = vsel %vm264_vm4, %v262_v26, %v443_v25  ;;  %v266_v29 = vsel %vm264_vm4, %v263_v27, %v444_v24 }
  0x8b   : > { %v268_v30 = vsel %vm267_vm5, %v265_v28, %v448_v23  ;;  %v269_v31 = vsel %vm267_vm5, %v266_v29, %v449_v22 }
  0x8c   : > { %v270_v32 = vpack.c.bf16 %v269_v31, %v268_v30 }
  0x8e   : > { %419 = vmatmul.mubr.msk.bf16.vlgmr.msra.gmra.mxu0 %vm281_vm6, %v270_v32 }
 0x14e   : > { %v319_v34 = vpop.f32.mrf.mxu0 }
 0x14f   : > { %v320_v35 = vadd.f32 %v319_v34, %v273_v33 }
 0x150   : > { %v420_v36 = vpop.f32.mrf.mxu0 }
 0x151   : > { %327 = vst.msk [vmem:[%s217_s7] sm:$0xff] %vm326_vm7, %v320_v35 }
 0x152   : > { %v322_v38 = vpop.f32.mrf.mxu0 }
 0x153   : > { %v323_v39 = vadd.f32 %v322_v38, %v274_v37 }
 0x154   : > { %v421_v40 = vpop.f32.mrf.mxu0 }
 0x155   : > { %328 = vst.msk [vmem:[%s217_s7 + $0x8] sm:$0xff] %vm326_vm7, %v323_v39 }
 0x156 PF: > { %s14_s15 = sadd.s32 1, %s457_s15  }
 0x157   : > { %p11_p4 = scmp.ge.s32.totalorder %s14_s15, 4  }
 0x159   :  { %13 = sbr.rel (!%p11_p4) target bundleno = 1 (0x1), region = 69 }

// kernel: _lambda_.16
= control target key start
LH: loop header
LB: loop body
LE: loop exit
PB: predicated region body
PF: predicated region fallthrough
CT: control target
= control target key end

     0   :  { %s966_s12 = smov 0   ;;  %s1077_s0 = inlined_call_operand.vmem [shape: f32[2,4,15,8], index: 0, kind: input, shape index: {}]   ;;  %s1078_s1 = inlined_call_operand.vmem [shape: f32[2,4,16,8], index: 1, kind: input, shape index: {}]   ;;  %s1079_s2 = inlined_call_operand.vmem [shape: f32[2,4,16,8], index: 2, kind: input, shape index: {}]   ;;  %s1080_s3 = inlined_call_operand.vmem [shape: f32[2,4,15,8], index: 3, kind: output, shape index: {}]  }
   0x1 LB: > { %s803_s13 = sadd.s32 4294967295, %s942_s12   ;;  %p807_p0 = scmp.ge.s32.totalorder %s942_s12, 1  ;;  %s942_s12 = sphi %s966_s12, %s13_s12  }
   0x2   : > { %p157_p1 = scmp.lt.s32.totalorder %s942_s12, 3 }
   0x4   : > { %p158_p2 = pnand %p807_p0, %p157_p1 }
   0x5   : > { %p191_p3 = scmp.lt.s32.totalorder (!%p158_p2), %s803_s13, 1 }
   0x6   : > { %161 = sbr.rel (%p158_p2) target bundleno = 750 (0x2ee), region = 32 }
   0xb   : > { %v944_v0 = vmov 0.0   ;;  %s1082_s13 = smov (!%p191_p3, %s803_s13), 1  ;;  %vm945_vm0 = vmmov 0   ;;  %vm236_vm1 = vcmask 64512   ;;  %vm433_vm2 = vcmask 130048  }
   0xc   : > { %846 = vmatprep.subr.bf16.mxu0 %v944_v0  ;;  %852 = vmatprep.subr.bf16.mxu1 %v944_v0  ;;  %s980_s14 = sshll.u32 %s1082_s13, 6  ;;  %vm437_vm3 = vcmask 129024   ;;  %vm716_vm4 = vcmask 63488  }
   0xd   : > { %848 = vmatprep.mubr.msk.bf16.mxu0 %vm945_vm0, %v944_v0  ;;  %854 = vmatprep.mubr.msk.bf16.mxu1 %vm945_vm0, %v944_v0  ;;  %s200_s17 = scalar_lea.vmem %s1078_s1, %s980_s14  ;;  %s195_s20 = scalar_lea.vmem %s1077_s0, %s980_s14 }
   0xe   : > { %v224_v1 = vld [vmem:[%s200_s17] sm:$0xff]  ;;  %v225_v2 = vld [vmem:[%s200_s17 + $0x8] sm:$0xff]  ;;  %v226_v3 = vld [vmem:[%s200_s17 + $0x10] sm:$0xff]  ;;  %s1039_s23 = scalar_lea.vmem %s1079_s2, %s980_s14  ;;  %s210_s26 = scalar_lea.vmem %s1080_s3, %s980_s14 }
   0xf   : > { %v232_v4 = vpack.c.bf16 %v225_v2, %v224_v1  ;;  %v227_v5 = vld [vmem:[%s200_s17 + $0x18] sm:$0xff]  ;;  %v228_v7 = vld [vmem:[%s200_s17 + $0x20] sm:$0xff]  ;;  %v229_v9 = vld [vmem:[%s200_s17 + $0x28] sm:$0xff] }
  0x10   : > { %v233_v6 = vpack.c.bf16 %v227_v5, %v226_v3  ;;  %v230_v10 = vld [vmem:[%s200_s17 + $0x30] sm:$0xff]  ;;  %v231_v11 = vld [vmem:[%s200_s17 + $0x38] sm:$0xff]  ;;  %v212_v13 = vld [vmem:[%s195_s20] sm:$0xff]  ;;  %v234_v17 = vpack.c.bf16 %v229_v9, %v228_v7 }
  0x11   : > { %v241_v8 = vsel %vm236_vm1, %v232_v4, 0  ;;  %v213_v14 = vld [vmem:[%s195_s20 + $0x8] sm:$0x7f]  ;;  %v214_v15 = vld [vmem:[%s195_s20 + $0x10] sm:$0xff]  ;;  %v215_v16 = vld [vmem:[%s195_s20 + $0x18] sm:$0x7f]  ;;  %v235_v18 = vpack.c.bf16 %v231_v11, %v230_v10 }
  0x12   : > { %847 = vmatpush3.bf16.xpose.msra.mxu0 %v241_v8  ;;  %v288_v12 = vsel %vm236_vm1, %v233_v6, 0  ;;  %v220_v19 = vpack.c.bf16 %v213_v14, %v212_v13  ;;  %v221_v20 = vpack.c.bf16 %v215_v16, %v214_v15  ;;  %v335_v21 = vsel %vm236_vm1, %v234_v17, 0  ;;  %v216_v23 = vld [vmem:[%s195_s20 + $0x20] sm:$0xff]  ;;  %v217_v24 = vld [vmem:[%s195_s20 + $0x28] sm:$0x7f]  ;;  %v218_v25 = vld [vmem:[%s195_s20 + $0x30] sm:$0xff] }
  0x13   : > { %853 = vmatpush3.bf16.xpose.msra.mxu1 %v288_v12  ;;  %858 = vmatprep.subr.bf16.mxu0 %v944_v0  ;;  %v382_v22 = vsel %vm236_vm1, %v235_v18, 0  ;;  %v219_v26 = vld [vmem:[%s195_s20 + $0x38] sm:$0x7f]  ;;  %v222_v27 = vpack.c.bf16 %v217_v24, %v216_v23 }
  0x14   : > { %864 = vmatprep.subr.bf16.mxu1 %v944_v0  ;;  %v223_v28 = vpack.c.bf16 %v219_v26, %v218_v25 }
  0x19   : > { %849 = vmatmul.mubr.msk.bf16.vlgmr.msra.gmra.mxu0 %vm236_vm1, %v220_v19 }
  0x1a   : > { %855 = vmatmul.mubr.msk.bf16.vlgmr.msra.gmra.mxu1 %vm236_vm1, %v221_v20  ;;  %859 = vmatpush3.bf16.xpose.msra.mxu0 %v335_v21 }
  0x1b   : > { %865 = vmatpush3.bf16.xpose.msra.mxu1 %v382_v22  ;;  %860 = vmatprep.mubr.msk.bf16.mxu0 %vm945_vm0, %v944_v0 }
  0x1c   : > { %866 = vmatprep.mubr.msk.bf16.mxu1 %vm945_vm0, %v944_v0  ;;  %870 = vmatprep.subr.bf16.mxu0 %v944_v0 }
  0x1d   : > { %876 = vmatprep.subr.bf16.mxu1 %v944_v0 }
  0x21   : > { %861 = vmatmul.mubr.msk.bf16.vlgmr.msra.gmra.mxu0 %vm236_vm1, %v222_v27 }
  0x22   : > { %867 = vmatmul.mubr.msk.bf16.vlgmr.msra.gmra.mxu1 %vm236_vm1, %v223_v28  ;;  %872 = vmatprep.mubr.msk.bf16.mxu0 %vm945_vm0, %v944_v0 }
  0x23   : > { %878 = vmatprep.mubr.msk.bf16.mxu1 %vm945_vm0, %v944_v0 }
  0xd9   : > { %v277_v29 = vpop.f32.mrf.mxu0 }
  0xda   : > { %v425_v30 = vmul.f32 0.35355338, %v277_v29  ;;  %v324_v31 = vpop.f32.mrf.mxu1 }
  0xdb   : > { %v427_v32 = vmul.f32 0.35355338, %v324_v31  ;;  %v850_v33 = vpop.f32.mrf.mxu0 }
  0xdc   : > { %v856_v34 = vpop.f32.mrf.mxu1  ;;  %v434_v35 = vsel %vm433_vm2, %v425_v30, -inf }
  0xdd   : > { %v441_v36 = vsel %vm433_vm2, %v427_v32, -inf  ;;  %435 = vmax.xlane.f32.xlu0 %v434_v35  ;;  %v280_v37 = vpop.f32.mrf.mxu0 }
  0xde   : > { %442 = vmax.xlane.f32.xlu1 %v441_v36  ;;  %v327_v38 = vpop.f32.mrf.mxu1  ;;  %v426_v39 = vmul.f32 0.35355338, %v280_v37 }
  0xdf   : > { %v428_v40 = vmul.f32 0.35355338, %v327_v38  ;;  %v851_v41 = vpop.f32.mrf.mxu0  ;;  %v527_v38 = vld [vmem:[%s1039_s23] sm:$0xff] }
  0xe0   : > { %v857_v42 = vpop.f32.mrf.mxu1  ;;  %v438_v43 = vsel %vm437_vm3, %v426_v39, -inf  ;;  %v529_v41 = vld [vmem:[%s1039_s23 + $0x10] sm:$0xff] }
  0xe1   : > { %v444_v44 = vsel %vm437_vm3, %v428_v40, -inf  ;;  %439 = vmax.xlane.f32.xlu0 %v438_v43  ;;  %v371_v45 = vpop.f32.mrf.mxu0  ;;  %v530_v42 = vld [vmem:[%s1039_s23 + $0x18] sm:$0xff] }
  0xe2   : > { %445 = vmax.xlane.f32.xlu1 %v444_v44  ;;  %v418_v46 = vpop.f32.mrf.mxu1  ;;  %v429_v47 = vmul.f32 0.35355338, %v371_v45  ;;  %v536_v43 = vpack.c.bf16 %v530_v42, %v529_v41 }
  0xe3   : > { %v431_v48 = vmul.f32 0.35355338, %v418_v46  ;;  %v862_v49 = vpop.f32.mrf.mxu0 }
  0xe4   : > { %v868_v50 = vpop.f32.mrf.mxu1  ;;  %v447_v51 = vsel %vm433_vm2, %v429_v47, -inf  ;;  %877 = vmatpush3.bf16.msra.mxu1 %v536_v43 }
  0xe5   : > { %448 = vmax.xlane.f32.xlu0 %v447_v51  ;;  %v374_v52 = vpop.f32.mrf.mxu0  ;;  %v453_v55 = vsel %vm433_vm2, %v431_v48, -inf  ;;  %888 = vmatprep.subr.bf16.mxu1 %v944_v0 }
  0xe6   : > { %v421_v53 = vpop.f32.mrf.mxu1  ;;  %v430_v54 = vmul.f32 0.35355338, %v374_v52 }
  0xe7   : > { %v863_v56 = vpop.f32.mrf.mxu0  ;;  %v432_v57 = vmul.f32 0.35355338, %v421_v53  ;;  %v531_v53 = vld [vmem:[%s1039_s23 + $0x20] sm:$0xff] }
  0xe8   : > { %v869_v58 = vpop.f32.mrf.mxu1  ;;  %v450_v59 = vsel %vm437_vm3, %v430_v54, -inf }
  0xe9   : > { %454 = vmax.xlane.f32.xlu0 %v453_v55  ;;  %451 = vmax.xlane.f32.xlu1 %v450_v59  ;;  %v456_v60 = vsel %vm437_vm3, %v432_v57, -inf }
  0xed   : > { %457 = vmax.xlane.f32.xlu1 %v456_v60 }
 0x166   : > { %v436_v61 = vpop.xlane.xlu0 %435 }
 0x167   : > { %v443_v62 = vpop.xlane.xlu1 %442  ;;  %v459_v63 = vsub.f32 %v425_v30, %v436_v61  ;;  %v533_v61 = vld [vmem:[%s1039_s23 + $0x30] sm:$0xff] }
 0x168   : > { %v461_v1 = vsub.f32 %v427_v32, %v443_v62  ;;  %v534_v62 = vld [vmem:[%s1039_s23 + $0x38] sm:$0xff] }
 0x169   : > { %v467_v2 = vmul.f32 1.442695, %v459_v63 }
 0x16a   : > { %v471_v3 = vmul.f32 1.442695, %v461_v1  ;;  %v440_v4 = vpop.xlane.xlu0 %439 }
 0x16b   : > { %904 = vpow2.f32 %v467_v2  ;;  %v446_v5 = vpop.xlane.xlu1 %445  ;;  %v460_v6 = vsub.f32 %v426_v39, %v440_v4  ;;  %v528_v39 = vld [vmem:[%s1039_s23 + $0x8] sm:$0xff]  ;;  %v538_v4 = vpack.c.bf16 %v534_v62, %v533_v61 }
 0x16c   : > { %v462_v7 = vsub.f32 %v428_v40, %v446_v5  ;;  %906 = vpow2.f32 %v471_v3  ;;  %v535_v40 = vpack.c.bf16 %v528_v39, %v527_v38 }
 0x16d   : > { %v469_v8 = vmul.f32 1.442695, %v460_v6 }
 0x16e   : > { %v473_v9 = vmul.f32 1.442695, %v462_v7  ;;  %v449_v10 = vpop.xlane.xlu0 %448  ;;  %871 = vmatpush3.bf16.msra.mxu0 %v535_v40 }
 0x16f   : > { %908 = vpow2.f32 %v469_v8  ;;  %v463_v11 = vsub.f32 %v429_v47, %v449_v10  ;;  %882 = vmatprep.subr.bf16.mxu0 %v944_v0 }
 0x170   : > { %910 = vpow2.f32 %v473_v9 }
 0x171   : > { %v475_v12 = vmul.f32 1.442695, %v463_v11 }
 0x172   : > { %v455_v13 = vpop.xlane.xlu0 %454  ;;  %v452_v14 = vpop.xlane.xlu1 %451 }
 0x173   : > { %912 = vpow2.f32 %v475_v12  ;;  %v465_v15 = vsub.f32 %v431_v48, %v455_v13  ;;  %v464_v16 = vsub.f32 %v430_v54, %v452_v14  ;;  %v532_v54 = vld [vmem:[%s1039_s23 + $0x28] sm:$0xff] }
 0x174   : > { %v537_v59 = vpack.c.bf16 %v532_v54, %v531_v53 }
 0x175   : > { %v479_v17 = vmul.f32 1.442695, %v465_v15  ;;  %v477_v18 = vmul.f32 1.442695, %v464_v16 }
 0x176   : > { %v458_v19 = vpop.xlane.xlu1 %457 }
 0x177   : > { %914 = vpow2.f32 %v479_v17  ;;  %v466_v20 = vsub.f32 %v432_v57, %v458_v19 }
 0x178   : > { %v905_v21 = vpop.eup %904  ;;  %916 = vpow2.f32 %v477_v18 }
 0x179   : > { %v481_v22 = vmul.f32 1.442695, %v466_v20  ;;  %v483_v23 = vsel %vm433_vm2, %v905_v21, 0.0  ;;  %v1019_v24 = vpop.eup %906 }
 0x17a   : > { %484 = vadd.xlane.f32.xlu0 %v483_v23  ;;  %v489_v26 = vsel %vm433_vm2, %v1019_v24, 0.0 }
 0x17b   : > { %918 = vpow2.f32 %v481_v22 }
 0x17c   : > { %v909_v25 = vpop.eup %908 }
 0x17d   : > { %v486_v27 = vsel %vm437_vm3, %v909_v25, 0.0  ;;  %v911_v28 = vpop.eup %910 }
 0x17e   : > { %490 = vadd.xlane.f32.xlu0 %v489_v26  ;;  %487 = vadd.xlane.f32.xlu1 %v486_v27  ;;  %v492_v31 = vsel %vm437_vm3, %v911_v28, 0.0 }
 0x180   : > { %v1024_v29 = vpop.eup %912 }
 0x181   : > { %v495_v30 = vsel %vm433_vm2, %v1024_v29, 0.0 }
 0x182   : > { %496 = vadd.xlane.f32.xlu0 %v495_v30  ;;  %493 = vadd.xlane.f32.xlu1 %v492_v31 }
 0x184   : > { %v1029_v32 = vpop.eup %914 }
 0x185   : > { %v917_v33 = vpop.eup %916  ;;  %v501_v34 = vsel %vm433_vm2, %v1029_v32, 0.0 }
 0x186   : > { %502 = vadd.xlane.f32.xlu0 %v501_v34  ;;  %v498_v35 = vsel %vm437_vm3, %v917_v33, 0.0 }
 0x187   : > { %499 = vadd.xlane.f32.xlu1 %v498_v35 }
 0x188   : > { %v919_v36 = vpop.eup %918 }
 0x189   : > { %v504_v37 = vsel %vm437_vm3, %v919_v36, 0.0 }
 0x18b   : > { %505 = vadd.xlane.f32.xlu1 %v504_v37 }
 0x203   : > { %v485_v44 = vpop.xlane.xlu0 %484 }
 0x204   : > { %920 = vrcp.f32 %v485_v44 }
 0x207   : > { %v491_v45 = vpop.xlane.xlu0 %490  ;;  %v488_v46 = vpop.xlane.xlu1 %487 }
 0x208   : > { %922 = vrcp.f32 %v488_v46 }
 0x209   : > { %924 = vrcp.f32 %v491_v45 }
 0x20b   : > { %v497_v47 = vpop.xlane.xlu0 %496  ;;  %v494_v48 = vpop.xlane.xlu1 %493 }
 0x20c   : > { %926 = vrcp.f32 %v494_v48 }
 0x20d   : > { %928 = vrcp.f32 %v497_v47 }
 0x20f   : > { %v503_v49 = vpop.xlane.xlu0 %502 }
 0x210   : > { %v500_v50 = vpop.xlane.xlu1 %499 }
 0x211   : > { %930 = vrcp.f32 %v500_v50  ;;  %v921_v51 = vpop.eup %920 }
 0x212   : > { %932 = vrcp.f32 %v503_v49  ;;  %v515_v56 = vmul.f32 %v921_v51, %v905_v21 }
 0x214   : > { %v506_v52 = vpop.xlane.xlu1 %505 }
 0x215   : > { %934 = vrcp.f32 %v506_v52  ;;  %v923_v55 = vpop.eup %922 }
 0x216   : > { %v516_v57 = vmul.f32 %v923_v55, %v909_v25  ;;  %v925_v58 = vpop.eup %924 }
 0x217   : > { %v517_v1 = vmul.f32 %v925_v58, %v1019_v24 }
 0x218   : > { %v523_v60 = vpack.c.bf16 %v516_v57, %v515_v56 }
 0x219   : > { %v927_v63 = vpop.eup %926 }
 0x21a   : > { %873 = vmatmul.mubr.msk.bf16.vlgmr.msra.gmra.mxu0 %vm433_vm2, %v523_v60  ;;  %v518_v2 = vmul.f32 %v927_v63, %v911_v28  ;;  %v929_v3 = vpop.eup %928 }
 0x21b   : > { %883 = vmatpush3.bf16.msra.mxu0 %v537_v59  ;;  %884 = vmatprep.mubr.msk.bf16.mxu0 %vm945_vm0, %v944_v0  ;;  %v519_v7 = vmul.f32 %v929_v3, %v1024_v29 }
 0x21c   : > { %v524_v5 = vpack.c.bf16 %v518_v2, %v517_v1 }
 0x21e   : > { %v931_v6 = vpop.eup %930  ;;  %879 = vmatmul.mubr.msk.bf16.vlgmr.msra.gmra.mxu1 %vm433_vm2, %v524_v5 }
 0x21f   : > { %v520_v8 = vmul.f32 %v931_v6, %v917_v33  ;;  %v933_v9 = vpop.eup %932  ;;  %889 = vmatpush3.bf16.msra.mxu1 %v538_v4  ;;  %890 = vmatprep.mubr.msk.bf16.mxu1 %vm945_vm0, %v944_v0 }
 0x220   : > { %v521_v12 = vmul.f32 %v933_v9, %v1029_v32 }
 0x221   : > { %v525_v10 = vpack.c.bf16 %v520_v8, %v519_v7 }
 0x222   : > { %v935_v11 = vpop.eup %934 }
 0x223   : > { %v522_v13 = vmul.f32 %v935_v11, %v919_v36  ;;  %885 = vmatmul.mubr.msk.bf16.vlgmr.msra.gmra.mxu0 %vm433_vm2, %v525_v10 }
 0x225   : > { %v526_v14 = vpack.c.bf16 %v522_v13, %v521_v12 }
 0x227   : > { %891 = vmatmul.mubr.msk.bf16.vlgmr.msra.gmra.mxu1 %vm433_vm2, %v526_v14 }
 0x2da   : > { %v576_v15 = vpop.f32.mrf.mxu0 }
 0x2db   : > { %715 = vst.msk [vmem:[%s210_s26] sm:$0xff] %vm236_vm1, %v576_v15 }
 0x2dc   : > { %v874_v16 = vpop.f32.mrf.mxu0 }
 0x2de   : > { %v579_v0 = vpop.f32.mrf.mxu0  ;;  %v620_v17 = vpop.f32.mrf.mxu1 }
 0x2df   : > { %717 = vst.msk [vmem:[%s210_s26 + $0x8] sm:$0x7f] %vm716_vm4, %v579_v0 }
 0x2e0   : > { %718 = vst.msk [vmem:[%s210_s26 + $0x10] sm:$0xff] %vm236_vm1, %v620_v17  ;;  %v875_v18 = vpop.f32.mrf.mxu0  ;;  %v880_v19 = vpop.f32.mrf.mxu1 }
 0x2e2   : > { %v623_v20 = vpop.f32.mrf.mxu1 }
 0x2e3   : > { %v664_v21 = vpop.f32.mrf.mxu0  ;;  %719 = vst.msk [vmem:[%s210_s26 + $0x18] sm:$0x7f] %vm716_vm4, %v623_v20 }
 0x2e4   : > { %720 = vst.msk [vmem:[%s210_s26 + $0x20] sm:$0xff] %vm236_vm1, %v664_v21  ;;  %v881_v22 = vpop.f32.mrf.mxu1 }
 0x2e5   : > { %v886_v23 = vpop.f32.mrf.mxu0 }
 0x2e7   : > { %v667_v24 = vpop.f32.mrf.mxu0  ;;  %v708_v25 = vpop.f32.mrf.mxu1 }
 0x2e8   : > { %721 = vst.msk [vmem:[%s210_s26 + $0x28] sm:$0x7f] %vm716_vm4, %v667_v24 }
 0x2e9   : > { %722 = vst.msk [vmem:[%s210_s26 + $0x30] sm:$0xff] %vm236_vm1, %v708_v25  ;;  %v887_v26 = vpop.f32.mrf.mxu0  ;;  %v892_v27 = vpop.f32.mrf.mxu1 }
 0x2eb   : > { %v711_v28 = vpop.f32.mrf.mxu1 }
 0x2ec   : > { %723 = vst.msk [vmem:[%s210_s26 + $0x38] sm:$0x7f] %vm716_vm4, %v711_v28 }
 0x2ed   : > { %v893_v29 = vpop.f32.mrf.mxu1 }
 0x2ee PF: > { %s13_s12 = sadd.s32 1, %s942_s12  }
 0x2ef   : > { %p10_p4 = scmp.ge.s32.totalorder %s13_s12, 4  }
 0x2f1   :  { %12 = sbr.rel (!%p10_p4) target bundleno = 1 (0x1), region = 68 }

// kernel: _lambda_.17
= control target key start
LH: loop header
LB: loop body
LE: loop exit
PB: predicated region body
PF: predicated region fallthrough
CT: control target
= control target key end

     0   :  { %s999_s21 = smov 0   ;;  %s1092_s0 = inlined_call_operand.vmem [shape: f32[2,16,32], index: 0, kind: input, shape index: {}]   ;;  %s1093_s1 = inlined_call_operand.vmem [shape: f32[2,16,32], index: 1, kind: input, shape index: {}]   ;;  %s1094_s2 = inlined_call_operand.vmem [shape: bf16[32,32], index: 2, kind: input, shape index: {}]   ;;  %s1095_s3 = inlined_call_operand.vmem [shape: f32[1,32], index: 3, kind: input, shape index: {}]   ;;  %s1096_s4 = inlined_call_operand.vmem [shape: bf16[32,64], index: 4, kind: input, shape index: {}]   ;;  %s1097_s5 = inlined_call_operand.vmem [shape: f32[1,64], index: 5, kind: input, shape index: {}]   ;;  %s1098_s6 = inlined_call_operand.vmem [shape: bf16[64,32], index: 6, kind: input, shape index: {}]   ;;  %s1099_s7 = inlined_call_operand.vmem [shape: f32[1,32], index: 7, kind: input, shape index: {}]   ;;  %s1100_s8 = inlined_call_operand.vmem [shape: f32[1,32], index: 8, kind: input, shape index: {}]   ;;  %s1101_s9 = inlined_call_operand.vmem [shape: f32[1,32], index: 9, kind: input, shape index: {}]   ;;  %s1102_s10 = inlined_call_operand.vmem [shape: f32[1,32], index: 10, kind: input, shape index: {}]   ;;  %s1103_s11 = inlined_call_operand.vmem [shape: f32[1,32], index: 11, kind: input, shape index: {}]   ;;  %s1104_s12 = inlined_call_operand.vmem [shape: f32[2,16,32], index: 12, kind: output, shape index: {}]  }
   0x1 LB: > { %s825_s22 = sadd.s32 4294967295, %s930_s21   ;;  %p829_p0 = scmp.ge.s32.totalorder %s930_s21, 1  ;;  %s930_s21 = sphi %s999_s21, %s22_s21  }
   0x2   : > { %p372_p1 = scmp.lt.s32.totalorder %s930_s21, 3 }
   0x4   : > { %p373_p2 = pnand %p829_p0, %p372_p1 }
   0x5   : > { %p419_p3 = scmp.lt.s32.totalorder (!%p373_p2), %s825_s22, 1 }
   0x6   : > { %376 = sbr.rel (%p373_p2) target bundleno = 1244 (0x4dc), region = 68 }
   0xb   : > { %v908_v0 = vld [vmem:[%s1094_s2 + $0x8] sm:$0xff]   ;;  %v932_v1 = vmov 0.0   ;;  %v909_v2 = vld [vmem:[%s1094_s2] sm:$0xff]   ;;  %vm933_vm0 = vmmov 0   ;;  %s1106_s22 = smov (!%p419_p3, %s825_s22), 1  ;;  %vm461_vm1 = vcmask 261120  }
   0xc   : > { %870 = vmatprep.subr.bf16.mxu1 %v932_v1  ;;  %886 = vmatprep.subr.bf16.mxu0 %v932_v1  ;;  %s1018_s27 = sshll.u32 %s1106_s22, 4  ;;  %v836_v6 = vld [vmem:[%s1095_s3] ss:$0 sm:$0xff]  ;;  %v910_v29 = vld [vmem:[%s1096_s4 + $0x8] sm:$0xff]   ;;  %v912_v31 = vld [vmem:[%s1098_s6 + $0x18] sm:$0xff]   ;;  %vm665_vm2 = vcmask 523264  }
   0xd   : > { %871 = vmatpush3.bf16.msra.mxu1 %v908_v0  ;;  %874 = vmatprep.mubr.msk.bf16.mxu1 %vm933_vm0, %v932_v1  ;;  %s428_s30 = scalar_lea.vmem %s1093_s1, %s1018_s27  ;;  %s423_s15 = scalar_lea.vmem %s1092_s0, %s1018_s27  ;;  %v911_v30 = vld [vmem:[%s1096_s4] sm:$0xff]   ;;  %v913_v49 = vld [vmem:[%s1098_s6 + $0x10] sm:$0xff]   ;;  %v914_v50 = vld [vmem:[%s1098_s6 + $0x8] sm:$0xff]  }
   0xe   : > { %872 = vmatprep.subr.bf16.mxu1 %v932_v1  ;;  %894 = vmatprep.mubr.msk.bf16.mxu0 %vm933_vm0, %v932_v1  ;;  %v435_v3 = vld [vmem:[%s428_s30] sm:$0xff]  ;;  %v436_v4 = vld [vmem:[%s428_s30 + $0x8] sm:$0xff]  ;;  %s433_s30 = scalar_lea.vmem %s1104_s12, %s1018_s27 }
   0xf   : > { %v437_v5 = vpack.c.bf16 %v436_v4, %v435_v3  ;;  %v506_v8 = vld [vmem:[%s423_s15] sm:$0xff]  ;;  %v507_v13 = vld [vmem:[%s423_s15 + $0x8] sm:$0xff]  ;;  %887 = vmatpush3.bf16.msra.mxu0 %v912_v31 }
  0x10   : > { %888 = vmatprep.subr.bf16.mxu0 %v932_v1  ;;  %v840_v40 = vld [vmem:[%s1100_s8] ss:$0 sm:$0xff] }
  0x11   : > { %873 = vmatpush3.bf16.msra.mxu1 %v909_v2  ;;  %v841_v44 = vld [vmem:[%s1101_s9] ss:$0 sm:$0xff] }
  0x12   : > { %878 = vmatprep.subr.bf16.mxu1 %v932_v1  ;;  %v915_v51 = vld [vmem:[%s1098_s6] sm:$0xff]  }
  0x13   : > { %889 = vmatpush3.bf16.msra.mxu0 %v913_v49  ;;  %v842_v52 = vld [vmem:[%s1097_s5] ss:$0 sm:$0xff] }
  0x14   : > { %875 = vmatmul.mubr.msk.bf16.vlgmr.msra.gmra.mxu1 %vm461_vm1, %v437_v5  ;;  %890 = vmatprep.subr.bf16.mxu0 %v932_v1  ;;  %v846_v62 = vld [vmem:[%s1099_s7] ss:$0 sm:$0xff] }
  0x15   : > { %882 = vmatprep.mubr.msk.bf16.mxu1 %vm933_vm0, %v932_v1  ;;  %879 = vmatpush3.bf16.msra.mxu1 %v910_v29 }
  0x16   : > { %880 = vmatprep.subr.bf16.mxu1 %v932_v1 }
  0x17   : > { %891 = vmatpush3.bf16.msra.mxu0 %v914_v50 }
  0x18   : > { %892 = vmatprep.subr.bf16.mxu0 %v932_v1 }
  0x19   : > { %881 = vmatpush3.bf16.msra.mxu1 %v911_v30 }
  0x1b   : > { %893 = vmatpush3.bf16.msra.mxu0 %v915_v51 }
  0xd4   : > { %v499_v7 = vpop.f32.mrf.mxu1 }
  0xd5   : > { %v500_v9 = vadd.f32 %v836_v6, %v499_v7 }
  0xd6   : > { %v876_v10 = vpop.f32.mrf.mxu1 }
  0xd7   : > { %v508_v11 = vadd.f32 %v506_v8, %v500_v9 }
  0xd8   : > { %v502_v12 = vpop.f32.mrf.mxu1 }
  0xd9   : > { %v503_v14 = vadd.f32 %v836_v6, %v502_v12  ;;  %v512_v15 = vsel %vm461_vm1, %v508_v11, 0.0 }
  0xda   : > { %v877_v16 = vpop.f32.mrf.mxu1  ;;  %513 = vadd.xlane.f32.xlu0 %v512_v15 }
  0xdb   : > { %v509_v17 = vadd.f32 %v507_v13, %v503_v14 }
  0xdd   : > { %v515_v18 = vsel %vm461_vm1, %v509_v17, 0.0 }
  0xde   : > { %516 = vadd.xlane.f32.xlu0 %v515_v18 }
 0x163   : > { %v514_v19 = vpop.xlane.xlu0 %513 }
 0x164   : > { %v519_v20 = vmul.f32 0.03125, %v514_v19 }
 0x166   : > { %v521_v21 = vsub.f32 %v508_v11, %v519_v20 }
 0x167   : > { %v517_v22 = vpop.xlane.xlu0 %516 }
 0x168   : > { %v520_v23 = vmul.f32 0.03125, %v517_v22  ;;  %v523_v24 = vmul.f32 %v521_v21, %v521_v21 }
 0x16a   : > { %v522_v25 = vsub.f32 %v509_v17, %v520_v23  ;;  %v525_v26 = vsel %vm461_vm1, %v523_v24, 0.0 }
 0x16b   : > { %526 = vadd.xlane.f32.xlu1 %v525_v26  ;;  %v852_v26 = vld [vmem:[%s1102_s10] ss:$0 sm:$0xff] }
 0x16c   : > { %v524_v27 = vmul.f32 %v522_v25, %v522_v25 }
 0x16e   : > { %v528_v28 = vsel %vm461_vm1, %v524_v27, 0.0 }
 0x16f   : > { %529 = vadd.xlane.f32.xlu1 %v528_v28  ;;  %v853_v28 = vld [vmem:[%s1103_s11] ss:$0 sm:$0xff] }
 0x1f4   : > { %v527_v32 = vpop.xlane.xlu1 %526 }
 0x1f5   : > { %v531_v33 = vmul.f32 0.03125, %v527_v32 }
 0x1f7   : > { %v533_v34 = vadd.f32 1e-05, %v531_v33 }
 0x1f8   : > { %v530_v35 = vpop.xlane.xlu1 %529 }
 0x1f9   : > { %916 = vrsqrt.f32 %v533_v34  ;;  %v532_v36 = vmul.f32 0.03125, %v530_v35 }
 0x1fb   : > { %v534_v37 = vadd.f32 1e-05, %v532_v36 }
 0x1fd   : > { %918 = vrsqrt.f32 %v534_v37 }
 0x206   : > { %v917_v38 = vpop.eup %916 }
 0x207   : > { %v537_v39 = vmul.f32 %v917_v38, %v521_v21 }
 0x209   : > { %v545_v43 = vmul.f32 %v840_v40, %v537_v39 }
 0x20a   : > { %v919_v41 = vpop.eup %918 }
 0x20b   : > { %v538_v42 = vmul.f32 %v919_v41, %v522_v25  ;;  %v553_v46 = vadd.f32 %v841_v44, %v545_v43 }
 0x20d   : > { %v546_v45 = vmul.f32 %v840_v40, %v538_v42 }
 0x20f   : > { %v554_v47 = vadd.f32 %v841_v44, %v546_v45 }
 0x211   : > { %v555_v48 = vpack.c.bf16 %v554_v47, %v553_v46 }
 0x213   : > { %883 = vmatmul.mubr.msk.bf16.vlgmr.msra.gmra.mxu1 %vm461_vm1, %v555_v48 }
 0x2d3   : > { %v616_v53 = vpop.f32.mrf.mxu1 }
 0x2d4   : > { %v617_v55 = vadd.f32 %v842_v52, %v616_v53 }
 0x2d5   : > { %v884_v54 = vpop.f32.mrf.mxu1 }
 0x2d6   : > { %v623_v59 = vmax.f32 %v617_v55, 0.0 }
 0x2d7   : > { %v619_v56 = vpop.f32.mrf.mxu1 }
 0x2d8   : > { %v620_v57 = vadd.f32 %v842_v52, %v619_v56 }
 0x2d9   : > { %v885_v58 = vpop.f32.mrf.mxu1 }
 0x2da   : > { %v624_v60 = vmax.f32 %v620_v57, 0.0 }
 0x2dc   : > { %v625_v61 = vpack.c.bf16 %v624_v60, %v623_v59 }
 0x2de   : > { %895 = vmatmul.mubr.msk.bf16.vlgmr.msra.gmra.mxu0 %vm665_vm2, %v625_v61 }
 0x39e   : > { %v703_v63 = vpop.f32.mrf.mxu0 }
 0x39f   : > { %v704_v0 = vadd.f32 %v846_v62, %v703_v63 }
 0x3a0   : > { %v896_v1 = vpop.f32.mrf.mxu0 }
 0x3a1   : > { %v710_v2 = vadd.f32 %v704_v0, %v553_v46 }
 0x3a2   : > { %v706_v3 = vpop.f32.mrf.mxu0 }
 0x3a3   : > { %v707_v4 = vadd.f32 %v846_v62, %v706_v3  ;;  %v714_v5 = vsel %vm461_vm1, %v710_v2, 0.0 }
 0x3a4   : > { %715 = vadd.xlane.f32.xlu0 %v714_v5  ;;  %v897_v6 = vpop.f32.mrf.mxu0 }
 0x3a5   : > { %v711_v7 = vadd.f32 %v707_v4, %v554_v47 }
 0x3a7   : > { %v717_v8 = vsel %vm461_vm1, %v711_v7, 0.0 }
 0x3a8   : > { %718 = vadd.xlane.f32.xlu1 %v717_v8 }
 0x42d   : > { %v716_v9 = vpop.xlane.xlu0 %715 }
 0x42e   : > { %v720_v10 = vmul.f32 0.03125, %v716_v9 }
 0x430   : > { %v722_v11 = vsub.f32 %v710_v2, %v720_v10 }
 0x431   : > { %v719_v12 = vpop.xlane.xlu1 %718 }
 0x432   : > { %v721_v13 = vmul.f32 0.03125, %v719_v12  ;;  %v724_v14 = vmul.f32 %v722_v11, %v722_v11 }
 0x434   : > { %v723_v15 = vsub.f32 %v711_v7, %v721_v13  ;;  %v726_v16 = vsel %vm461_vm1, %v724_v14, 0.0 }
 0x435   : > { %727 = vadd.xlane.f32.xlu0 %v726_v16 }
 0x436   : > { %v725_v17 = vmul.f32 %v723_v15, %v723_v15 }
 0x438   : > { %v729_v18 = vsel %vm461_vm1, %v725_v17, 0.0 }
 0x439   : > { %730 = vadd.xlane.f32.xlu1 %v729_v18 }
 0x4be   : > { %v728_v19 = vpop.xlane.xlu0 %727 }
 0x4bf   : > { %v732_v20 = vmul.f32 0.03125, %v728_v19 }
 0x4c1   : > { %v734_v21 = vadd.f32 1e-05, %v732_v20 }
 0x4c2   : > { %v731_v22 = vpop.xlane.xlu1 %730 }
 0x4c3   : > { %920 = vrsqrt.f32 %v734_v21  ;;  %v733_v23 = vmul.f32 0.03125, %v731_v22 }
 0x4c5   : > { %v735_v24 = vadd.f32 1e-05, %v733_v23 }
 0x4c7   : > { %922 = vrsqrt.f32 %v735_v24 }
 0x4d0   : > { %v921_v25 = vpop.eup %920 }
 0x4d1   : > { %v738_v27 = vmul.f32 %v921_v25, %v722_v11 }
 0x4d3   : > { %v746_v29 = vmul.f32 %v852_v26, %v738_v27 }
 0x4d4   : > { %v923_v30 = vpop.eup %922 }
 0x4d5   : > { %v754_v31 = vadd.f32 %v853_v28, %v746_v29  ;;  %v739_v32 = vmul.f32 %v923_v30, %v723_v15 }
 0x4d7   : > { %756 = vst.msk [vmem:[%s433_s30] sm:$0xff] %vm461_vm1, %v754_v31  ;;  %v747_v33 = vmul.f32 %v852_v26, %v739_v32 }
 0x4d9   : > { %v755_v34 = vadd.f32 %v853_v28, %v747_v33 }
 0x4db   : > { %757 = vst.msk [vmem:[%s433_s30 + $0x8] sm:$0xff] %vm461_vm1, %v755_v34 }
 0x4dc PF: > { %s22_s21 = sadd.s32 1, %s930_s21  }
 0x4dd   : > { %p19_p4 = scmp.ge.s32.totalorder %s22_s21, 4  }
 0x4df   :  { %21 = sbr.rel (!%p19_p4) target bundleno = 1 (0x1), region = 101 }

// kernel: _lambda_.18
= control target key start
LH: loop header
LB: loop body
LE: loop exit
PB: predicated region body
PF: predicated region fallthrough
CT: control target
= control target key end

     0   :  { %s534_s15 = smov 0   ;;  %s586_s0 = inlined_call_operand.vmem [shape: f32[2,16,32], index: 0, kind: input, shape index: {}]   ;;  %s587_s1 = inlined_call_operand.vmem [shape: bf16[96,32], index: 1, kind: input, shape index: {}]   ;;  %s588_s2 = inlined_call_operand.vmem [shape: f32[1,32], index: 2, kind: input, shape index: {}]   ;;  %s589_s3 = inlined_call_operand.vmem [shape: f32[1,32], index: 3, kind: input, shape index: {}]   ;;  %s590_s4 = inlined_call_operand.vmem [shape: f32[2,16,32], index: 4, kind: output, shape index: {}]  }
   0x1 LB: > { %s418_s16 = sadd.s32 4294967295, %s503_s15   ;;  %p422_p0 = scmp.ge.s32.totalorder %s503_s15, 1  ;;  %s503_s15 = sphi %s534_s15, %s14_s15  }
   0x2   : > { %p162_p1 = scmp.lt.s32.totalorder %s503_s15, 3 }
   0x4   : > { %p163_p2 = pnand %p422_p0, %p162_p1 }
   0x5   : > { %p188_p3 = scmp.lt.s32.totalorder (!%p163_p2), %s418_s16, 1  ;;  %s507_s29 = smov (!%p163_p2), 32  }
   0x6   : > { %166 = sbr.rel (%p163_p2) target bundleno = 367 (0x16f), region = 36  ;;  %s508_s6 = smov (!%p163_p2), 64  }
   0xb   : > { %v505_v0 = vmov 0.0   ;;  %v487_v1 = vld [vmem:[%s587_s1 + $0x28] sm:$0xff]   ;;  %s592_s16 = smov (!%p188_p3, %s418_s16), 1  ;;  %v488_v2 = vld [vmem:[%s587_s1 + $0x20] sm:$0xff]   ;;  %vm213_vm0 = vcmask 1040384   ;;  %v489_v3 = vld [vmem:[%s587_s1 + $0x18] sm:$0xff]  }
   0xc   : > { %449 = vmatprep.subr.bf16.mxu0 %v505_v0  ;;  %s440_s21 = sshll.u32 %s592_s16, 4  ;;  %vm205_vm1 = vcmask 1041408   ;;  %vm506_vm2 = vmmov 0   ;;  %v490_v15 = vld [vmem:[%s587_s1 + $0x10] sm:$0xff]   ;;  %v491_v17 = vld [vmem:[%s587_s1 + $0x8] sm:$0xff]   ;;  %v492_v18 = vld [vmem:[%s587_s1] sm:$0xff]  }
   0xd   : > { %450 = vmatpush3.bf16.msra.mxu0 %v487_v1  ;;  %s192_s24 = scalar_lea.vmem %s586_s0, %s440_s21  ;;  %461 = vmatprep.mubr.msk.bf16.mxu0 %vm506_vm2, %v505_v0  ;;  %vm231_vm3 = vcmask 261120   ;;  %vm234_vm4 = vcmask 523264   ;;  %vm286_vm5 = vcmask 785408   ;;  %v434_v30 = vld [vmem:[%s588_s2] ss:$0 sm:$0xff]  ;;  %s197_s17 = scalar_lea.vmem %s590_s4, %s440_s21 }
   0xe   : > { %451 = vmatprep.subr.bf16.mxu0 %v505_v0  ;;  %v199_v4 = vld [vmem:[%s192_s24] sm:$0xff]  ;;  %v200_v5 = vld [vmem:[%s192_s24 + $0x8] sm:$0xff] }
   0xf   : > { %v202_v6 = vrot.slane %v200_v5, 6  ;;  %v211_v7 = vrot.slane %v200_v5, 7  ;;  %v214_v8 = vrot.slane %v199_v4, 7  ;;  %v206_v9 = vrot.slane %v199_v4, 6  ;;  %v435_v32 = vld [vmem:[%s589_s3] ss:$0 sm:$0xff] }
  0x10   : > { %v482_v16 = vpack.i.bf16 %v200_v5, %v199_v4 }
  0x11   : > { %452 = vmatpush3.bf16.msra.mxu0 %v488_v2  ;;  %v215_v10 = vsel %vm213_vm0, %v214_v8, %v211_v7  ;;  %v217_v11 = vsel %vm213_vm0, %v211_v7, %v214_v8  ;;  %v207_v12 = vsel %vm205_vm1, %v206_v9, %v202_v6  ;;  %v210_v13 = vsel %vm205_vm1, %v202_v6, %v206_v9 }
  0x12   : > { %453 = vmatprep.subr.bf16.mxu0 %v505_v0  ;;  %v477_v14 = vpack.i.bf16 %v215_v10, %v217_v11 }
  0x14   : > { %478 = vrot.lane.b32.xlu0 %v477_v14, %s507_s29 }
  0x15   : > { %454 = vmatpush3.bf16.msra.mxu0 %v489_v3 }
  0x16   : > { %455 = vmatprep.subr.bf16.mxu0 %v505_v0 }
  0x18   : > { %483 = vrot.lane.b32.xlu0 %v482_v16, %s508_s6 }
  0x19   : > { %456 = vmatpush3.bf16.msra.mxu0 %v490_v15 }
  0x1a   : > { %457 = vmatprep.subr.bf16.mxu0 %v505_v0 }
  0x1d   : > { %458 = vmatpush3.bf16.msra.mxu0 %v491_v17 }
  0x1e   : > { %459 = vmatprep.subr.bf16.mxu0 %v505_v0 }
  0x21   : > { %460 = vmatpush3.bf16.msra.mxu0 %v492_v18 }
  0x86   : > { %v479_v19 = vpop.permute.xlu0 %478 }
  0x87   : > { %v481_v20 = vunpack.i.h.bf16 %v479_v19  ;;  %v480_v21 = vunpack.i.l.bf16 %v479_v19 }
  0x89   : > { %v232_v25 = vsel %vm231_vm3, %v210_v13, %v480_v21  ;;  %v233_v26 = vsel %vm231_vm3, %v207_v12, %v481_v20 }
  0x8a   : > { %v484_v22 = vpop.permute.xlu0 %483 }
  0x8b   : > { %v486_v23 = vunpack.i.h.bf16 %v484_v22  ;;  %v485_v24 = vunpack.i.l.bf16 %v484_v22 }
  0x8d   : > { %v235_v27 = vsel %vm234_vm4, %v232_v25, %v485_v24  ;;  %v236_v28 = vsel %vm234_vm4, %v233_v26, %v486_v23 }
  0x8e   : > { %v237_v29 = vpack.c.bf16 %v236_v28, %v235_v27 }
  0x90   : > { %462 = vmatmul.mubr.msk.bf16.vlgmr.msra.gmra.mxu0 %vm286_vm5, %v237_v29 }
 0x150   : > { %v324_v31 = vpop.f32.mrf.mxu0 }
 0x151   : > { %v338_v33 = vmul.f32 %v434_v30, %v324_v31 }
 0x152   : > { %v463_v34 = vpop.f32.mrf.mxu0 }
 0x153   : > { %v347_v35 = vadd.f32 %v435_v32, %v338_v33 }
 0x154   : > { %v327_v36 = vpop.f32.mrf.mxu0 }
 0x155   : > { %v351_v37 = vmin.f32 %v347_v35, 0.0  ;;  %v339_v38 = vmul.f32 %v434_v30, %v327_v36  ;;  %vm349_vm6 = vcmp.gt.f32.partialorder %v347_v35, 0.0 }
 0x156   : > { %v464_v39 = vpop.f32.mrf.mxu0 }
 0x157   : > { %v353_v40 = vmul.f32 1.442695, %v351_v37  ;;  %v348_v41 = vadd.f32 %v435_v32, %v339_v38 }
 0x159   : > { %493 = vpow2.f32 %v353_v40  ;;  %v352_v42 = vmin.f32 %v348_v41, 0.0  ;;  %vm350_vm7 = vcmp.gt.f32.partialorder %v348_v41, 0.0 }
 0x15b   : > { %v355_v43 = vmul.f32 1.442695, %v352_v42 }
 0x15d   : > { %495 = vpow2.f32 %v355_v43 }
 0x166   : > { %v494_v44 = vpop.eup %493 }
 0x167   : > { %v436_v45 = vadd.f32 -1.0, %v494_v44 }
 0x169   : > { %v359_v46 = vsel %vm349_vm6, %v347_v35, %v436_v45 }
 0x16a   : > { %v496_v47 = vpop.eup %495  ;;  %361 = vst.msk [vmem:[%s197_s17] sm:$0xff] %vm231_vm3, %v359_v46 }
 0x16b   : > { %v437_v48 = vadd.f32 -1.0, %v496_v47 }
 0x16d   : > { %v360_v49 = vsel %vm350_vm7, %v348_v41, %v437_v48 }
 0x16e   : > { %362 = vst.msk [vmem:[%s197_s17 + $0x8] sm:$0xff] %vm231_vm3, %v360_v49 }
 0x16f PF: > { %s14_s15 = sadd.s32 1, %s503_s15  }
 0x170   : > { %p11_p4 = scmp.ge.s32.totalorder %s14_s15, 4  }
 0x172   :  { %13 = sbr.rel (!%p11_p4) target bundleno = 1 (0x1), region = 66 }

// kernel: _lambda_.19
= control target key start
LH: loop header
LB: loop body
LE: loop exit
PB: predicated region body
PF: predicated region fallthrough
CT: control target
= control target key end

     0   :  { %s372_s12 = smov 0   ;;  %s398_s0 = inlined_call_operand.vmem [shape: f32[2,9,32], index: 0, kind: input, shape index: {}]   ;;  %s399_s1 = inlined_call_operand.vmem [shape: bf16[32,96], index: 1, kind: input, shape index: {}]   ;;  %s400_s2 = inlined_call_operand.vmem [shape: f32[1,96], index: 2, kind: input, shape index: {}]   ;;  %s401_s3 = inlined_call_operand.vmem [shape: f32[2,9,96], index: 3, kind: output, shape index: {}]  }
   0x1 LB: > { %s302_s13 = sadd.s32 4294967295, %s348_s12   ;;  %p306_p0 = scmp.ge.s32.totalorder %s348_s12, 1  ;;  %s348_s12 = sphi %s372_s12, %s13_s12  }
   0x2   : > { %p137_p1 = scmp.lt.s32.totalorder %s348_s12, 3 }
   0x4   : > { %p138_p2 = pnand %p306_p0, %p137_p1 }
   0x5   : > { %p161_p3 = scmp.lt.s32.totalorder (!%p138_p2), %s302_s13, 1 }
   0x6   : > { %141 = sbr.rel (%p138_p2) target bundleno = 220 (0xdc), region = 32 }
   0xb   : > { %v340_v0 = vld [vmem:[%s399_s1 + $0x8] sm:$0xff]   ;;  %v350_v1 = vmov 0.0   ;;  %v341_v2 = vld [vmem:[%s399_s1] sm:$0xff]   ;;  %vm351_vm0 = vmmov 0   ;;  %s403_s13 = smov (!%p161_p3, %s302_s13), 1  ;;  %vm198_vm1 = vcmask 261120  }
   0xc   : > { %322 = vmatprep.subr.bf16.mxu0 %v350_v1  ;;  %326 = vmatprep.mubr.msk.bf16.mxu0 %vm351_vm0, %v350_v1  ;;  %s317_s18 = sshll.u32 %s403_s13, 4  ;;  %v311_v6 = vld [vmem:[%s400_s2] ss:$0 sm:$0xff]  ;;  %vm243_vm2 = vcmask 785408   ;;  %vm245_vm3 = vcmask 778240  }
   0xd   : > { %323 = vmatpush3.bf16.msra.mxu0 %v340_v0  ;;  %s165_s21 = scalar_lea.vmem %s398_s0, %s317_s18  ;;  %s170_s26 = scalar_lea.vmem %s401_s3, %s317_s18 }
   0xe   : > { %324 = vmatprep.subr.bf16.mxu0 %v350_v1  ;;  %v172_v3 = vld [vmem:[%s165_s21] sm:$0xff]  ;;  %v173_v4 = vld [vmem:[%s165_s21 + $0x8] sm:$0x1] }
   0xf   : > { %v174_v5 = vpack.c.bf16 %v173_v4, %v172_v3 }
  0x11   : > { %325 = vmatpush3.bf16.msra.mxu0 %v341_v2 }
  0x14   : > { %327 = vmatmul.mubr.msk.bf16.vlgmr.msra.gmra.mxu0 %vm198_vm1, %v174_v5 }
  0xd4   : > { %v236_v7 = vpop.f32.mrf.mxu0 }
  0xd5   : > { %v237_v8 = vadd.f32 %v311_v6, %v236_v7 }
  0xd6   : > { %v328_v9 = vpop.f32.mrf.mxu0 }
  0xd7   : > { %244 = vst.msk [vmem:[%s170_s26] sm:$0xff] %vm243_vm2, %v237_v8 }
  0xd8   : > { %v239_v10 = vpop.f32.mrf.mxu0 }
  0xd9   : > { %v240_v11 = vadd.f32 %v311_v6, %v239_v10 }
  0xda   : > { %v329_v12 = vpop.f32.mrf.mxu0 }
  0xdb   : > { %246 = vst.msk [vmem:[%s170_s26 + $0x8] sm:$0x1] %vm245_vm3, %v240_v11 }
  0xdc PF: > { %s13_s12 = sadd.s32 1, %s348_s12  }
  0xdd   : > { %p10_p4 = scmp.ge.s32.totalorder %s13_s12, 4  }
  0xdf   :  { %12 = sbr.rel (!%p10_p4) target bundleno = 1 (0x1), region = 62 }

// kernel: _lambda_.20
= control target key start
LH: loop header
LB: loop body
LE: loop exit
PB: predicated region body
PF: predicated region fallthrough
CT: control target
= control target key end

     0   :  { %s984_s12 = smov 0   ;;  %s1105_s0 = inlined_call_operand.vmem [shape: f32[2,4,9,8], index: 0, kind: input, shape index: {}]   ;;  %s1106_s1 = inlined_call_operand.vmem [shape: f32[2,4,9,8], index: 1, kind: input, shape index: {}]   ;;  %s1107_s2 = inlined_call_operand.vmem [shape: f32[2,4,9,8], index: 2, kind: input, shape index: {}]   ;;  %s1108_s3 = inlined_call_operand.vmem [shape: f32[2,4,9,8], index: 3, kind: output, shape index: {}]  }
   0x1 LB: > { %s819_s13 = sadd.s32 4294967295, %s959_s12   ;;  %p823_p0 = scmp.ge.s32.totalorder %s959_s12, 1  ;;  %s959_s12 = sphi %s984_s12, %s13_s12  }
   0x2   : > { %p157_p1 = scmp.lt.s32.totalorder %s959_s12, 3 }
   0x4   : > { %p158_p2 = pnand %p823_p0, %p157_p1 }
   0x5   : > { %p191_p3 = scmp.lt.s32.totalorder (!%p158_p2), %s819_s13, 1 }
   0x6   : > { %161 = sbr.rel (%p158_p2) target bundleno = 750 (0x2ee), region = 32 }
   0xb   : > { %v961_v0 = vmov 0.0   ;;  %s1110_s13 = smov (!%p191_p3, %s819_s13), 1  ;;  %vm962_vm0 = vmmov 0   ;;  %vm236_vm1 = vcmask 64512   ;;  %vm433_vm2 = vcmask 72704  }
   0xc   : > { %862 = vmatprep.subr.bf16.mxu0 %v961_v0  ;;  %868 = vmatprep.subr.bf16.mxu1 %v961_v0  ;;  %s998_s14 = sshll.u32 %s1110_s13, 6  ;;  %vm437_vm3 = vcmask 65536   ;;  %vm542_vm4 = vcmask 1043456   ;;  %vm543_vm5 = vcmask 1044480   ;;  %vm732_vm6 = vcmask 57344  }
   0xd   : > { %864 = vmatprep.mubr.msk.bf16.mxu0 %vm962_vm0, %v961_v0  ;;  %870 = vmatprep.mubr.msk.bf16.mxu1 %vm962_vm0, %v961_v0  ;;  %s200_s17 = scalar_lea.vmem %s1106_s1, %s998_s14  ;;  %s195_s20 = scalar_lea.vmem %s1105_s0, %s998_s14 }
   0xe   : > { %v224_v1 = vld [vmem:[%s200_s17] sm:$0xff]  ;;  %v225_v2 = vld [vmem:[%s200_s17 + $0x8] sm:$0x1]  ;;  %v226_v3 = vld [vmem:[%s200_s17 + $0x10] sm:$0xff]  ;;  %s205_s23 = scalar_lea.vmem %s1107_s2, %s998_s14  ;;  %s210_s26 = scalar_lea.vmem %s1108_s3, %s998_s14 }
   0xf   : > { %v232_v4 = vpack.c.bf16 %v225_v2, %v224_v1  ;;  %v227_v5 = vld [vmem:[%s200_s17 + $0x18] sm:$0x1]  ;;  %v228_v7 = vld [vmem:[%s200_s17 + $0x20] sm:$0xff]  ;;  %v229_v9 = vld [vmem:[%s200_s17 + $0x28] sm:$0x1] }
  0x10   : > { %v233_v6 = vpack.c.bf16 %v227_v5, %v226_v3  ;;  %v230_v10 = vld [vmem:[%s200_s17 + $0x30] sm:$0xff]  ;;  %v231_v11 = vld [vmem:[%s200_s17 + $0x38] sm:$0x1]  ;;  %v212_v13 = vld [vmem:[%s195_s20] sm:$0xff]  ;;  %v234_v17 = vpack.c.bf16 %v229_v9, %v228_v7 }
  0x11   : > { %v241_v8 = vsel %vm236_vm1, %v232_v4, 0  ;;  %v213_v14 = vld [vmem:[%s195_s20 + $0x8] sm:$0x1]  ;;  %v214_v15 = vld [vmem:[%s195_s20 + $0x10] sm:$0xff]  ;;  %v215_v16 = vld [vmem:[%s195_s20 + $0x18] sm:$0x1]  ;;  %v235_v18 = vpack.c.bf16 %v231_v11, %v230_v10 }
  0x12   : > { %863 = vmatpush3.bf16.xpose.msra.mxu0 %v241_v8  ;;  %v288_v12 = vsel %vm236_vm1, %v233_v6, 0  ;;  %v220_v19 = vpack.c.bf16 %v213_v14, %v212_v13  ;;  %v221_v20 = vpack.c.bf16 %v215_v16, %v214_v15  ;;  %v335_v21 = vsel %vm236_vm1, %v234_v17, 0  ;;  %v216_v23 = vld [vmem:[%s195_s20 + $0x20] sm:$0xff]  ;;  %v217_v24 = vld [vmem:[%s195_s20 + $0x28] sm:$0x1]  ;;  %v218_v25 = vld [vmem:[%s195_s20 + $0x30] sm:$0xff] }
  0x13   : > { %869 = vmatpush3.bf16.xpose.msra.mxu1 %v288_v12  ;;  %874 = vmatprep.subr.bf16.mxu0 %v961_v0  ;;  %v382_v22 = vsel %vm236_vm1, %v235_v18, 0  ;;  %v219_v26 = vld [vmem:[%s195_s20 + $0x38] sm:$0x1]  ;;  %v222_v27 = vpack.c.bf16 %v217_v24, %v216_v23 }
  0x14   : > { %880 = vmatprep.subr.bf16.mxu1 %v961_v0  ;;  %v223_v28 = vpack.c.bf16 %v219_v26, %v218_v25 }
  0x19   : > { %865 = vmatmul.mubr.msk.bf16.vlgmr.msra.gmra.mxu0 %vm236_vm1, %v220_v19 }
  0x1a   : > { %871 = vmatmul.mubr.msk.bf16.vlgmr.msra.gmra.mxu1 %vm236_vm1, %v221_v20  ;;  %875 = vmatpush3.bf16.xpose.msra.mxu0 %v335_v21 }
  0x1b   : > { %881 = vmatpush3.bf16.xpose.msra.mxu1 %v382_v22  ;;  %876 = vmatprep.mubr.msk.bf16.mxu0 %vm962_vm0, %v961_v0 }
  0x1c   : > { %882 = vmatprep.mubr.msk.bf16.mxu1 %vm962_vm0, %v961_v0  ;;  %886 = vmatprep.subr.bf16.mxu0 %v961_v0 }
  0x1d   : > { %892 = vmatprep.subr.bf16.mxu1 %v961_v0 }
  0x21   : > { %877 = vmatmul.mubr.msk.bf16.vlgmr.msra.gmra.mxu0 %vm236_vm1, %v222_v27 }
  0x22   : > { %883 = vmatmul.mubr.msk.bf16.vlgmr.msra.gmra.mxu1 %vm236_vm1, %v223_v28  ;;  %888 = vmatprep.mubr.msk.bf16.mxu0 %vm962_vm0, %v961_v0 }
  0x23   : > { %894 = vmatprep.mubr.msk.bf16.mxu1 %vm962_vm0, %v961_v0 }
  0xd9   : > { %v277_v29 = vpop.f32.mrf.mxu0 }
  0xda   : > { %v425_v30 = vmul.f32 0.35355338, %v277_v29  ;;  %v324_v31 = vpop.f32.mrf.mxu1 }
  0xdb   : > { %v427_v32 = vmul.f32 0.35355338, %v324_v31  ;;  %v866_v33 = vpop.f32.mrf.mxu0 }
  0xdc   : > { %v872_v34 = vpop.f32.mrf.mxu1  ;;  %v434_v35 = vsel %vm433_vm2, %v425_v30, -inf }
  0xdd   : > { %v441_v36 = vsel %vm433_vm2, %v427_v32, -inf  ;;  %435 = vmax.xlane.f32.xlu0 %v434_v35  ;;  %v280_v37 = vpop.f32.mrf.mxu0 }
  0xde   : > { %442 = vmax.xlane.f32.xlu1 %v441_v36  ;;  %v327_v38 = vpop.f32.mrf.mxu1  ;;  %v426_v39 = vmul.f32 0.35355338, %v280_v37 }
  0xdf   : > { %v428_v40 = vmul.f32 0.35355338, %v327_v38  ;;  %v867_v41 = vpop.f32.mrf.mxu0  ;;  %v527_v38 = vld [vmem:[%s205_s23] sm:$0xff] }
  0xe0   : > { %v873_v42 = vpop.f32.mrf.mxu1  ;;  %v438_v43 = vsel %vm437_vm3, %v426_v39, -inf  ;;  %v963_v41 = vmov 65535  }
  0xe1   : > { %v444_v44 = vsel %vm437_vm3, %v428_v40, -inf  ;;  %439 = vmax.xlane.f32.xlu0 %v438_v43  ;;  %v371_v45 = vpop.f32.mrf.mxu0  ;;  %v544_v42 = vsel %vm542_vm4, 4294967295, %v963_v41 }
  0xe2   : > { %445 = vmax.xlane.f32.xlu1 %v444_v44  ;;  %v418_v46 = vpop.f32.mrf.mxu1  ;;  %v429_v47 = vmul.f32 0.35355338, %v371_v45  ;;  %v545_v43 = vsel %vm543_vm5, %v544_v42, 0  ;;  %v529_v45 = vld [vmem:[%s205_s23 + $0x10] sm:$0xff] }
  0xe3   : > { %v431_v48 = vmul.f32 0.35355338, %v418_v46  ;;  %v878_v49 = vpop.f32.mrf.mxu0  ;;  %v530_v46 = vld [vmem:[%s205_s23 + $0x18] sm:$0x1] }
  0xe4   : > { %v884_v50 = vpop.f32.mrf.mxu1  ;;  %v447_v51 = vsel %vm433_vm2, %v429_v47, -inf  ;;  %v531_v49 = vld [vmem:[%s205_s23 + $0x20] sm:$0xff] }
  0xe5   : > { %448 = vmax.xlane.f32.xlu0 %v447_v51  ;;  %v374_v52 = vpop.f32.mrf.mxu0  ;;  %v453_v55 = vsel %vm433_vm2, %v431_v48, -inf  ;;  %v532_v50 = vld [vmem:[%s205_s23 + $0x28] sm:$0x1] }
  0xe6   : > { %v421_v53 = vpop.f32.mrf.mxu1  ;;  %v430_v54 = vmul.f32 0.35355338, %v374_v52  ;;  %v537_v51 = vpack.c.bf16 %v532_v50, %v531_v49 }
  0xe7   : > { %v879_v56 = vpop.f32.mrf.mxu0  ;;  %v432_v57 = vmul.f32 0.35355338, %v421_v53  ;;  %v533_v53 = vld [vmem:[%s205_s23 + $0x30] sm:$0xff] }
  0xe8   : > { %v885_v58 = vpop.f32.mrf.mxu1  ;;  %v450_v59 = vsel %vm437_vm3, %v430_v54, -inf  ;;  %v641_v52 = vand.u32 %v545_v43, %v537_v51 }
  0xe9   : > { %454 = vmax.xlane.f32.xlu0 %v453_v55  ;;  %451 = vmax.xlane.f32.xlu1 %v450_v59  ;;  %v456_v60 = vsel %vm437_vm3, %v432_v57, -inf }
  0xed   : > { %457 = vmax.xlane.f32.xlu1 %v456_v60 }
 0x166   : > { %v436_v61 = vpop.xlane.xlu0 %435 }
 0x167   : > { %v443_v62 = vpop.xlane.xlu1 %442  ;;  %v459_v63 = vsub.f32 %v425_v30, %v436_v61 }
 0x168   : > { %v461_v1 = vsub.f32 %v427_v32, %v443_v62 }
 0x169   : > { %v467_v2 = vmul.f32 1.442695, %v459_v63 }
 0x16a   : > { %v471_v3 = vmul.f32 1.442695, %v461_v1  ;;  %v440_v4 = vpop.xlane.xlu0 %439 }
 0x16b   : > { %921 = vpow2.f32 %v467_v2  ;;  %v446_v5 = vpop.xlane.xlu1 %445  ;;  %v460_v6 = vsub.f32 %v426_v39, %v440_v4  ;;  %v528_v39 = vld [vmem:[%s205_s23 + $0x8] sm:$0x1] }
 0x16c   : > { %v462_v7 = vsub.f32 %v428_v40, %v446_v5  ;;  %923 = vpow2.f32 %v471_v3  ;;  %v535_v40 = vpack.c.bf16 %v528_v39, %v527_v38 }
 0x16d   : > { %v469_v8 = vmul.f32 1.442695, %v460_v6 }
 0x16e   : > { %v473_v9 = vmul.f32 1.442695, %v462_v7  ;;  %v449_v10 = vpop.xlane.xlu0 %448  ;;  %v547_v44 = vand.u32 %v545_v43, %v535_v40 }
 0x16f   : > { %925 = vpow2.f32 %v469_v8  ;;  %v463_v11 = vsub.f32 %v429_v47, %v449_v10  ;;  %v536_v47 = vpack.c.bf16 %v530_v46, %v529_v45 }
 0x170   : > { %927 = vpow2.f32 %v473_v9  ;;  %887 = vmatpush3.bf16.msra.mxu0 %v547_v44 }
 0x171   : > { %v475_v12 = vmul.f32 1.442695, %v463_v11  ;;  %898 = vmatprep.subr.bf16.mxu0 %v961_v0 }
 0x172   : > { %v455_v13 = vpop.xlane.xlu0 %454  ;;  %v452_v14 = vpop.xlane.xlu1 %451 }
 0x173   : > { %929 = vpow2.f32 %v475_v12  ;;  %v465_v15 = vsub.f32 %v431_v48, %v455_v13  ;;  %v464_v16 = vsub.f32 %v430_v54, %v452_v14  ;;  %v594_v48 = vand.u32 %v545_v43, %v536_v47  ;;  %v534_v54 = vld [vmem:[%s205_s23 + $0x38] sm:$0x1] }
 0x174   : > { %v538_v55 = vpack.c.bf16 %v534_v54, %v533_v53 }
 0x175   : > { %v479_v17 = vmul.f32 1.442695, %v465_v15  ;;  %v477_v18 = vmul.f32 1.442695, %v464_v16  ;;  %893 = vmatpush3.bf16.msra.mxu1 %v594_v48 }
 0x176   : > { %v458_v19 = vpop.xlane.xlu1 %457  ;;  %904 = vmatprep.subr.bf16.mxu1 %v961_v0  ;;  %v688_v56 = vand.u32 %v545_v43, %v538_v55 }
 0x177   : > { %931 = vpow2.f32 %v479_v17  ;;  %v466_v20 = vsub.f32 %v432_v57, %v458_v19 }
 0x178   : > { %v1036_v21 = vpop.eup %921  ;;  %933 = vpow2.f32 %v477_v18 }
 0x179   : > { %v481_v22 = vmul.f32 1.442695, %v466_v20  ;;  %v483_v23 = vsel %vm433_vm2, %v1036_v21, 0.0  ;;  %v1040_v24 = vpop.eup %923 }
 0x17a   : > { %484 = vadd.xlane.f32.xlu0 %v483_v23  ;;  %v489_v26 = vsel %vm433_vm2, %v1040_v24, 0.0 }
 0x17b   : > { %935 = vpow2.f32 %v481_v22 }
 0x17c   : > { %v1042_v25 = vpop.eup %925 }
 0x17d   : > { %v486_v27 = vsel %vm437_vm3, %v1042_v25, 0.0  ;;  %v1048_v28 = vpop.eup %927 }
 0x17e   : > { %490 = vadd.xlane.f32.xlu0 %v489_v26  ;;  %487 = vadd.xlane.f32.xlu1 %v486_v27  ;;  %v492_v31 = vsel %vm437_vm3, %v1048_v28, 0.0 }
 0x180   : > { %v1050_v29 = vpop.eup %929 }
 0x181   : > { %v495_v30 = vsel %vm433_vm2, %v1050_v29, 0.0 }
 0x182   : > { %496 = vadd.xlane.f32.xlu0 %v495_v30  ;;  %493 = vadd.xlane.f32.xlu1 %v492_v31 }
 0x184   : > { %v1056_v32 = vpop.eup %931 }
 0x185   : > { %v1058_v33 = vpop.eup %933  ;;  %v501_v34 = vsel %vm433_vm2, %v1056_v32, 0.0 }
 0x186   : > { %502 = vadd.xlane.f32.xlu0 %v501_v34  ;;  %v498_v35 = vsel %vm437_vm3, %v1058_v33, 0.0 }
 0x187   : > { %499 = vadd.xlane.f32.xlu1 %v498_v35 }
 0x188   : > { %v1064_v36 = vpop.eup %935 }
 0x189   : > { %v504_v37 = vsel %vm437_vm3, %v1064_v36, 0.0 }
 0x18b   : > { %505 = vadd.xlane.f32.xlu1 %v504_v37 }
 0x203   : > { %v485_v57 = vpop.xlane.xlu0 %484 }
 0x204   : > { %937 = vrcp.f32 %v485_v57 }
 0x207   : > { %v491_v58 = vpop.xlane.xlu0 %490  ;;  %v488_v59 = vpop.xlane.xlu1 %487 }
 0x208   : > { %939 = vrcp.f32 %v488_v59 }
 0x209   : > { %941 = vrcp.f32 %v491_v58 }
 0x20b   : > { %v497_v60 = vpop.xlane.xlu0 %496  ;;  %v494_v61 = vpop.xlane.xlu1 %493 }
 0x20c   : > { %943 = vrcp.f32 %v494_v61 }
 0x20d   : > { %945 = vrcp.f32 %v497_v60 }
 0x20f   : > { %v503_v62 = vpop.xlane.xlu0 %502 }
 0x210   : > { %v500_v63 = vpop.xlane.xlu1 %499 }
 0x211   : > { %947 = vrcp.f32 %v500_v63  ;;  %v938_v1 = vpop.eup %937 }
 0x212   : > { %949 = vrcp.f32 %v503_v62  ;;  %v515_v4 = vmul.f32 %v938_v1, %v1036_v21 }
 0x214   : > { %v506_v2 = vpop.xlane.xlu1 %505 }
 0x215   : > { %951 = vrcp.f32 %v506_v2  ;;  %v940_v3 = vpop.eup %939 }
 0x216   : > { %v516_v5 = vmul.f32 %v940_v3, %v1042_v25  ;;  %v942_v6 = vpop.eup %941 }
 0x217   : > { %v517_v9 = vmul.f32 %v942_v6, %v1040_v24 }
 0x218   : > { %v523_v7 = vpack.c.bf16 %v516_v5, %v515_v4 }
 0x219   : > { %v944_v8 = vpop.eup %943 }
 0x21a   : > { %889 = vmatmul.mubr.msk.bf16.vlgmr.msra.gmra.mxu0 %vm433_vm2, %v523_v7  ;;  %v518_v10 = vmul.f32 %v944_v8, %v1048_v28  ;;  %v946_v11 = vpop.eup %945 }
 0x21b   : > { %899 = vmatpush3.bf16.msra.mxu0 %v641_v52  ;;  %900 = vmatprep.mubr.msk.bf16.mxu0 %vm962_vm0, %v961_v0  ;;  %v519_v14 = vmul.f32 %v946_v11, %v1050_v29 }
 0x21c   : > { %v524_v12 = vpack.c.bf16 %v518_v10, %v517_v9 }
 0x21e   : > { %v948_v13 = vpop.eup %947  ;;  %895 = vmatmul.mubr.msk.bf16.vlgmr.msra.gmra.mxu1 %vm433_vm2, %v524_v12 }
 0x21f   : > { %v520_v15 = vmul.f32 %v948_v13, %v1058_v33  ;;  %v950_v16 = vpop.eup %949  ;;  %905 = vmatpush3.bf16.msra.mxu1 %v688_v56  ;;  %906 = vmatprep.mubr.msk.bf16.mxu1 %vm962_vm0, %v961_v0 }
 0x220   : > { %v521_v19 = vmul.f32 %v950_v16, %v1056_v32 }
 0x221   : > { %v525_v17 = vpack.c.bf16 %v520_v15, %v519_v14 }
 0x222   : > { %v952_v18 = vpop.eup %951 }
 0x223   : > { %v522_v20 = vmul.f32 %v952_v18, %v1064_v36  ;;  %901 = vmatmul.mubr.msk.bf16.vlgmr.msra.gmra.mxu0 %vm433_vm2, %v525_v17 }
 0x225   : > { %v526_v21 = vpack.c.bf16 %v522_v20, %v521_v19 }
 0x227   : > { %907 = vmatmul.mubr.msk.bf16.vlgmr.msra.gmra.mxu1 %vm433_vm2, %v526_v21 }
 0x2da   : > { %v583_v22 = vpop.f32.mrf.mxu0 }
 0x2db   : > { %731 = vst.msk [vmem:[%s210_s26] sm:$0xff] %vm236_vm1, %v583_v22 }
 0x2dc   : > { %v890_v23 = vpop.f32.mrf.mxu0 }
 0x2de   : > { %v586_v0 = vpop.f32.mrf.mxu0  ;;  %v630_v24 = vpop.f32.mrf.mxu1 }
 0x2df   : > { %733 = vst.msk [vmem:[%s210_s26 + $0x8] sm:$0x1] %vm732_vm6, %v586_v0 }
 0x2e0   : > { %734 = vst.msk [vmem:[%s210_s26 + $0x10] sm:$0xff] %vm236_vm1, %v630_v24  ;;  %v891_v25 = vpop.f32.mrf.mxu0  ;;  %v896_v26 = vpop.f32.mrf.mxu1 }
 0x2e2   : > { %v633_v27 = vpop.f32.mrf.mxu1 }
 0x2e3   : > { %v677_v28 = vpop.f32.mrf.mxu0  ;;  %735 = vst.msk [vmem:[%s210_s26 + $0x18] sm:$0x1] %vm732_vm6, %v633_v27 }
 0x2e4   : > { %736 = vst.msk [vmem:[%s210_s26 + $0x20] sm:$0xff] %vm236_vm1, %v677_v28  ;;  %v897_v29 = vpop.f32.mrf.mxu1 }
 0x2e5   : > { %v902_v30 = vpop.f32.mrf.mxu0 }
 0x2e7   : > { %v680_v31 = vpop.f32.mrf.mxu0  ;;  %v724_v32 = vpop.f32.mrf.mxu1 }
 0x2e8   : > { %737 = vst.msk [vmem:[%s210_s26 + $0x28] sm:$0x1] %vm732_vm6, %v680_v31 }
 0x2e9   : > { %738 = vst.msk [vmem:[%s210_s26 + $0x30] sm:$0xff] %vm236_vm1, %v724_v32  ;;  %v903_v33 = vpop.f32.mrf.mxu0  ;;  %v908_v34 = vpop.f32.mrf.mxu1 }
 0x2eb   : > { %v727_v35 = vpop.f32.mrf.mxu1 }
 0x2ec   : > { %739 = vst.msk [vmem:[%s210_s26 + $0x38] sm:$0x1] %vm732_vm6, %v727_v35 }
 0x2ed   : > { %v909_v36 = vpop.f32.mrf.mxu1 }
 0x2ee PF: > { %s13_s12 = sadd.s32 1, %s959_s12  }
 0x2ef   : > { %p10_p4 = scmp.ge.s32.totalorder %s13_s12, 4  }
 0x2f1   :  { %12 = sbr.rel (!%p10_p4) target bundleno = 1 (0x1), region = 68 }

// kernel: _lambda_.21
= control target key start
LH: loop header
LB: loop body
LE: loop exit
PB: predicated region body
PF: predicated region fallthrough
CT: control target
= control target key end

     0   :  { %s1114_s29 = smov 0   ;;  %s1217_s0 = inlined_call_operand.vmem [shape: f32[2,9,32], index: 0, kind: input, shape index: {}]   ;;  %s1218_s1 = inlined_call_operand.vmem [shape: f32[2,9,32], index: 1, kind: input, shape index: {}]   ;;  %s1219_s2 = inlined_call_operand.vmem [shape: bf16[32,32], index: 2, kind: input, shape index: {}]   ;;  %s1220_s3 = inlined_call_operand.vmem [shape: f32[1,32], index: 3, kind: input, shape index: {}]   ;;  %s1221_s4 = inlined_call_operand.vmem [shape: bf16[32,64], index: 4, kind: input, shape index: {}]   ;;  %s1222_s5 = inlined_call_operand.vmem [shape: f32[1,64], index: 5, kind: input, shape index: {}]   ;;  %s1223_s6 = inlined_call_operand.vmem [shape: bf16[64,32], index: 6, kind: input, shape index: {}]   ;;  %s1224_s7 = inlined_call_operand.vmem [shape: f32[1,32], index: 7, kind: input, shape index: {}]   ;;  %s1225_s8 = inlined_call_operand.vmem [shape: f32[1,32], index: 8, kind: input, shape index: {}]   ;;  %s1226_s9 = inlined_call_operand.vmem [shape: f32[1,32], index: 9, kind: input, shape index: {}]   ;;  %s1227_s10 = inlined_call_operand.vmem [shape: f32[1,32], index: 10, kind: input, shape index: {}]   ;;  %s1228_s11 = inlined_call_operand.vmem [shape: f32[1,32], index: 11, kind: input, shape index: {}]   ;;  %s1229_s12 = inlined_call_operand.vmem [shape: f32[1,32], index: 12, kind: input, shape index: {}]   ;;  %s1230_s13 = inlined_call_operand.vmem [shape: f32[1,32], index: 13, kind: input, shape index: {}]   ;;  %s1231_s14 = inlined_call_operand.vmem [shape: f32[2,9,32], index: 14, kind: output, shape index: {}]  }
   0x1 LB: > { %s924_s30 = sadd.s32 4294967295, %s1035_s29   ;;  %p928_p0 = scmp.ge.s32.totalorder %s1035_s29, 1  ;;  %s1035_s29 = sphi %s1114_s29, %s24_s29  }
   0x2   : > { %p422_p1 = scmp.lt.s32.totalorder %s1035_s29, 3 }
   0x4   : > { %p423_p2 = pnand %p928_p0, %p422_p1 }
   0x5   : > { %p473_p3 = scmp.lt.s32.totalorder (!%p423_p2), %s924_s30, 1 }
   0x6   : > { %426 = sbr.rel (%p423_p2) target bundleno = 1552 (0x610), region = 76 }
   0xb   : > { %v1009_v0 = vld [vmem:[%s1219_s2 + $0x8] sm:$0xff]   ;;  %v1037_v1 = vmov 0.0   ;;  %v1010_v2 = vld [vmem:[%s1219_s2] sm:$0xff]   ;;  %vm1038_vm0 = vmmov 0   ;;  %s1233_s30 = smov (!%p473_p3, %s924_s30), 1  ;;  %vm515_vm1 = vcmask 261120  }
   0xc   : > { %971 = vmatprep.subr.bf16.mxu1 %v1037_v1  ;;  %987 = vmatprep.subr.bf16.mxu0 %v1037_v1  ;;  %s1133_s19 = sshll.u32 %s1233_s30, 4  ;;  %v935_v6 = vld [vmem:[%s1220_s3] ss:$0 sm:$0xff]  ;;  %vm569_vm2 = vcmask 253952   ;;  %v1011_v29 = vld [vmem:[%s1221_s4 + $0x8] sm:$0xff]   ;;  %v1013_v31 = vld [vmem:[%s1223_s6 + $0x18] sm:$0xff]  }
   0xd   : > { %972 = vmatpush3.bf16.msra.mxu1 %v1009_v0  ;;  %975 = vmatprep.mubr.msk.bf16.mxu1 %vm1038_vm0, %v1037_v1  ;;  %s482_s22 = scalar_lea.vmem %s1218_s1, %s1133_s19  ;;  %s477_s25 = scalar_lea.vmem %s1217_s0, %s1133_s19  ;;  %v1012_v30 = vld [vmem:[%s1221_s4] sm:$0xff]   ;;  %v1014_v49 = vld [vmem:[%s1223_s6 + $0x10] sm:$0xff]   ;;  %v1015_v50 = vld [vmem:[%s1223_s6 + $0x8] sm:$0xff]   ;;  %vm720_vm3 = vcmask 523264  }
   0xe   : > { %973 = vmatprep.subr.bf16.mxu1 %v1037_v1  ;;  %995 = vmatprep.mubr.msk.bf16.mxu0 %vm1038_vm0, %v1037_v1  ;;  %v489_v3 = vld [vmem:[%s482_s22] sm:$0xff]  ;;  %v490_v4 = vld [vmem:[%s482_s22 + $0x8] sm:$0x1]  ;;  %s487_s15 = scalar_lea.vmem %s1231_s14, %s1133_s19 }
   0xf   : > { %v491_v5 = vpack.c.bf16 %v490_v4, %v489_v3  ;;  %v560_v8 = vld [vmem:[%s477_s25] sm:$0xff]  ;;  %v561_v13 = vld [vmem:[%s477_s25 + $0x8] sm:$0x1]  ;;  %988 = vmatpush3.bf16.msra.mxu0 %v1013_v31 }
  0x10   : > { %989 = vmatprep.subr.bf16.mxu0 %v1037_v1  ;;  %v939_v40 = vld [vmem:[%s1225_s8] ss:$0 sm:$0xff] }
  0x11   : > { %974 = vmatpush3.bf16.msra.mxu1 %v1010_v2  ;;  %v940_v44 = vld [vmem:[%s1226_s9] ss:$0 sm:$0xff] }
  0x12   : > { %979 = vmatprep.subr.bf16.mxu1 %v1037_v1  ;;  %v1016_v51 = vld [vmem:[%s1223_s6] sm:$0xff]  }
  0x13   : > { %990 = vmatpush3.bf16.msra.mxu0 %v1014_v49  ;;  %v941_v52 = vld [vmem:[%s1222_s5] ss:$0 sm:$0xff] }
  0x14   : > { %976 = vmatmul.mubr.msk.bf16.vlgmr.msra.gmra.mxu1 %vm515_vm1, %v491_v5  ;;  %991 = vmatprep.subr.bf16.mxu0 %v1037_v1  ;;  %v945_v62 = vld [vmem:[%s1224_s7] ss:$0 sm:$0xff] }
  0x15   : > { %983 = vmatprep.mubr.msk.bf16.mxu1 %vm1038_vm0, %v1037_v1  ;;  %980 = vmatpush3.bf16.msra.mxu1 %v1011_v29 }
  0x16   : > { %981 = vmatprep.subr.bf16.mxu1 %v1037_v1 }
  0x17   : > { %992 = vmatpush3.bf16.msra.mxu0 %v1015_v50 }
  0x18   : > { %993 = vmatprep.subr.bf16.mxu0 %v1037_v1 }
  0x19   : > { %982 = vmatpush3.bf16.msra.mxu1 %v1012_v30 }
  0x1b   : > { %994 = vmatpush3.bf16.msra.mxu0 %v1016_v51 }
  0xd4   : > { %v553_v7 = vpop.f32.mrf.mxu1 }
  0xd5   : > { %v554_v9 = vadd.f32 %v935_v6, %v553_v7 }
  0xd6   : > { %v977_v10 = vpop.f32.mrf.mxu1 }
  0xd7   : > { %v562_v11 = vadd.f32 %v560_v8, %v554_v9 }
  0xd8   : > { %v556_v12 = vpop.f32.mrf.mxu1 }
  0xd9   : > { %v557_v14 = vadd.f32 %v935_v6, %v556_v12  ;;  %v566_v15 = vsel %vm515_vm1, %v562_v11, 0.0 }
  0xda   : > { %v978_v16 = vpop.f32.mrf.mxu1  ;;  %567 = vadd.xlane.f32.xlu0 %v566_v15 }
  0xdb   : > { %v563_v17 = vadd.f32 %v561_v13, %v557_v14 }
  0xdd   : > { %v570_v18 = vsel %vm569_vm2, %v563_v17, 0.0 }
  0xde   : > { %571 = vadd.xlane.f32.xlu0 %v570_v18 }
 0x163   : > { %v568_v19 = vpop.xlane.xlu0 %567 }
 0x164   : > { %v574_v20 = vmul.f32 0.03125, %v568_v19 }
 0x166   : > { %v576_v21 = vsub.f32 %v562_v11, %v574_v20 }
 0x167   : > { %v572_v22 = vpop.xlane.xlu0 %571 }
 0x168   : > { %v575_v23 = vmul.f32 0.03125, %v572_v22  ;;  %v578_v24 = vmul.f32 %v576_v21, %v576_v21 }
 0x16a   : > { %v577_v25 = vsub.f32 %v563_v17, %v575_v23  ;;  %v580_v26 = vsel %vm515_vm1, %v578_v24, 0.0 }
 0x16b   : > { %581 = vadd.xlane.f32.xlu1 %v580_v26  ;;  %v951_v26 = vld [vmem:[%s1227_s10] ss:$0 sm:$0xff] }
 0x16c   : > { %v579_v27 = vmul.f32 %v577_v25, %v577_v25 }
 0x16e   : > { %v583_v28 = vsel %vm569_vm2, %v579_v27, 0.0 }
 0x16f   : > { %584 = vadd.xlane.f32.xlu1 %v583_v28  ;;  %v952_v28 = vld [vmem:[%s1228_s11] ss:$0 sm:$0xff] }
 0x1f4   : > { %v582_v32 = vpop.xlane.xlu1 %581 }
 0x1f5   : > { %v586_v33 = vmul.f32 0.03125, %v582_v32 }
 0x1f7   : > { %v588_v34 = vadd.f32 1e-05, %v586_v33 }
 0x1f8   : > { %v585_v35 = vpop.xlane.xlu1 %584 }
 0x1f9   : > { %1017 = vrsqrt.f32 %v588_v34  ;;  %v587_v36 = vmul.f32 0.03125, %v585_v35 }
 0x1fb   : > { %v589_v37 = vadd.f32 1e-05, %v587_v36 }
 0x1fd   : > { %1019 = vrsqrt.f32 %v589_v37 }
 0x206   : > { %v1018_v38 = vpop.eup %1017 }
 0x207   : > { %v592_v39 = vmul.f32 %v1018_v38, %v576_v21 }
 0x209   : > { %v600_v43 = vmul.f32 %v939_v40, %v592_v39 }
 0x20a   : > { %v1020_v41 = vpop.eup %1019 }
 0x20b   : > { %v593_v42 = vmul.f32 %v1020_v41, %v577_v25  ;;  %v608_v46 = vadd.f32 %v940_v44, %v600_v43 }
 0x20d   : > { %v601_v45 = vmul.f32 %v939_v40, %v593_v42 }
 0x20f   : > { %v609_v47 = vadd.f32 %v940_v44, %v601_v45 }
 0x211   : > { %v610_v48 = vpack.c.bf16 %v609_v47, %v608_v46 }
 0x213   : > { %984 = vmatmul.mubr.msk.bf16.vlgmr.msra.gmra.mxu1 %vm515_vm1, %v610_v48 }
 0x2d3   : > { %v671_v53 = vpop.f32.mrf.mxu1 }
 0x2d4   : > { %v672_v55 = vadd.f32 %v941_v52, %v671_v53 }
 0x2d5   : > { %v985_v54 = vpop.f32.mrf.mxu1 }
 0x2d6   : > { %v678_v59 = vmax.f32 %v672_v55, 0.0  ;;  %v953_v54 = vld [vmem:[%s1229_s12] ss:$0 sm:$0xff] }
 0x2d7   : > { %v674_v56 = vpop.f32.mrf.mxu1 }
 0x2d8   : > { %v675_v57 = vadd.f32 %v941_v52, %v674_v56  ;;  %v954_v56 = vld [vmem:[%s1230_s13] ss:$0 sm:$0xff] }
 0x2d9   : > { %v986_v58 = vpop.f32.mrf.mxu1 }
 0x2da   : > { %v679_v60 = vmax.f32 %v675_v57, 0.0 }
 0x2dc   : > { %v680_v61 = vpack.c.bf16 %v679_v60, %v678_v59 }
 0x2de   : > { %996 = vmatmul.mubr.msk.bf16.vlgmr.msra.gmra.mxu0 %vm720_vm3, %v680_v61 }
 0x39e   : > { %v758_v63 = vpop.f32.mrf.mxu0 }
 0x39f   : > { %v759_v0 = vadd.f32 %v945_v62, %v758_v63 }
 0x3a0   : > { %v997_v1 = vpop.f32.mrf.mxu0 }
 0x3a1   : > { %v765_v2 = vadd.f32 %v759_v0, %v608_v46 }
 0x3a2   : > { %v761_v3 = vpop.f32.mrf.mxu0 }
 0x3a3   : > { %v762_v4 = vadd.f32 %v945_v62, %v761_v3  ;;  %v769_v5 = vsel %vm515_vm1, %v765_v2, 0.0 }
 0x3a4   : > { %770 = vadd.xlane.f32.xlu0 %v769_v5  ;;  %v998_v6 = vpop.f32.mrf.mxu0 }
 0x3a5   : > { %v766_v7 = vadd.f32 %v762_v4, %v609_v47 }
 0x3a7   : > { %v772_v8 = vsel %vm569_vm2, %v766_v7, 0.0 }
 0x3a8   : > { %773 = vadd.xlane.f32.xlu1 %v772_v8 }
 0x42d   : > { %v771_v9 = vpop.xlane.xlu0 %770 }
 0x42e   : > { %v775_v10 = vmul.f32 0.03125, %v771_v9 }
 0x430   : > { %v777_v11 = vsub.f32 %v765_v2, %v775_v10 }
 0x431   : > { %v774_v12 = vpop.xlane.xlu1 %773 }
 0x432   : > { %v776_v13 = vmul.f32 0.03125, %v774_v12  ;;  %v779_v14 = vmul.f32 %v777_v11, %v777_v11 }
 0x434   : > { %v778_v15 = vsub.f32 %v766_v7, %v776_v13  ;;  %v781_v16 = vsel %vm515_vm1, %v779_v14, 0.0 }
 0x435   : > { %782 = vadd.xlane.f32.xlu0 %v781_v16 }
 0x436   : > { %v780_v17 = vmul.f32 %v778_v15, %v778_v15 }
 0x438   : > { %v784_v18 = vsel %vm569_vm2, %v780_v17, 0.0 }
 0x439   : > { %785 = vadd.xlane.f32.xlu1 %v784_v18 }
 0x4be   : > { %v783_v19 = vpop.xlane.xlu0 %782 }
 0x4bf   : > { %v787_v20 = vmul.f32 0.03125, %v783_v19 }
 0x4c1   : > { %v789_v21 = vadd.f32 1e-05, %v787_v20 }
 0x4c2   : > { %v786_v22 = vpop.xlane.xlu1 %785 }
 0x4c3   : > { %1021 = vrsqrt.f32 %v789_v21  ;;  %v788_v23 = vmul.f32 0.03125, %v786_v22 }
 0x4c5   : > { %v790_v24 = vadd.f32 1e-05, %v788_v23 }
 0x4c7   : > { %1023 = vrsqrt.f32 %v790_v24 }
 0x4d0   : > { %v1022_v25 = vpop.eup %1021 }
 0x4d1   : > { %v793_v27 = vmul.f32 %v1022_v25, %v777_v11 }
 0x4d3   : > { %v801_v29 = vmul.f32 %v951_v26, %v793_v27 }
 0x4d4   : > { %v1024_v30 = vpop.eup %1023 }
 0x4d5   : > { %v809_v31 = vadd.f32 %v952_v28, %v801_v29  ;;  %v794_v32 = vmul.f32 %v1024_v30, %v778_v15 }
 0x4d7   : > { %v813_v33 = vsel %vm515_vm1, %v809_v31, 0.0  ;;  %v802_v34 = vmul.f32 %v951_v26, %v794_v32 }
 0x4d8   : > { %814 = vadd.xlane.f32.xlu0 %v813_v33 }
 0x4d9   : > { %v810_v35 = vadd.f32 %v952_v28, %v802_v34 }
 0x4db   : > { %v816_v36 = vsel %vm569_vm2, %v810_v35, 0.0 }
 0x4dc   : > { %817 = vadd.xlane.f32.xlu1 %v816_v36 }
 0x561   : > { %v815_v37 = vpop.xlane.xlu0 %814 }
 0x562   : > { %v819_v38 = vmul.f32 0.03125, %v815_v37 }
 0x564   : > { %v821_v39 = vsub.f32 %v809_v31, %v819_v38 }
 0x565   : > { %v818_v40 = vpop.xlane.xlu1 %817 }
 0x566   : > { %v820_v41 = vmul.f32 0.03125, %v818_v40  ;;  %v823_v42 = vmul.f32 %v821_v39, %v821_v39 }
 0x568   : > { %v822_v43 = vsub.f32 %v810_v35, %v820_v41  ;;  %v825_v44 = vsel %vm515_vm1, %v823_v42, 0.0 }
 0x569   : > { %826 = vadd.xlane.f32.xlu0 %v825_v44 }
 0x56a   : > { %v824_v45 = vmul.f32 %v822_v43, %v822_v43 }
 0x56c   : > { %v828_v46 = vsel %vm569_vm2, %v824_v45, 0.0 }
 0x56d   : > { %829 = vadd.xlane.f32.xlu1 %v828_v46 }
 0x5f2   : > { %v827_v47 = vpop.xlane.xlu0 %826 }
 0x5f3   : > { %v831_v48 = vmul.f32 0.03125, %v827_v47 }
 0x5f5   : > { %v833_v49 = vadd.f32 1e-05, %v831_v48 }
 0x5f6   : > { %v830_v50 = vpop.xlane.xlu1 %829 }
 0x5f7   : > { %1025 = vrsqrt.f32 %v833_v49  ;;  %v832_v51 = vmul.f32 0.03125, %v830_v50 }
 0x5f9   : > { %v834_v52 = vadd.f32 1e-05, %v832_v51 }
 0x5fb   : > { %1027 = vrsqrt.f32 %v834_v52 }
 0x604   : > { %v1026_v53 = vpop.eup %1025 }
 0x605   : > { %v837_v55 = vmul.f32 %v1026_v53, %v821_v39 }
 0x607   : > { %v845_v57 = vmul.f32 %v953_v54, %v837_v55 }
 0x608   : > { %v1028_v58 = vpop.eup %1027 }
 0x609   : > { %v853_v59 = vadd.f32 %v954_v56, %v845_v57  ;;  %v838_v60 = vmul.f32 %v1028_v58, %v822_v43 }
 0x60b   : > { %855 = vst.msk [vmem:[%s487_s15] sm:$0xff] %vm515_vm1, %v853_v59  ;;  %v846_v61 = vmul.f32 %v953_v54, %v838_v60 }
 0x60d   : > { %v854_v62 = vadd.f32 %v954_v56, %v846_v61 }
 0x60f   : > { %856 = vst.msk [vmem:[%s487_s15 + $0x8] sm:$0x1] %vm569_vm2, %v854_v62 }
 0x610 PF: > { %s24_s29 = sadd.s32 1, %s1035_s29  }
 0x611   : > { %p21_p4 = scmp.ge.s32.totalorder %s24_s29, 4  }
 0x613   :  { %23 = sbr.rel (!%p21_p4) target bundleno = 1 (0x1), region = 109 }

// kernel: _lambda_.24
= control target key start
LH: loop header
LB: loop body
LE: loop exit
PB: predicated region body
PF: predicated region fallthrough
CT: control target
= control target key end

     0   :  { %s1087_s15 = smov 0   ;;  %s1228_s0 = inlined_call_operand.vmem [shape: f32[2,4,15,8], index: 0, kind: input, shape index: {}]   ;;  %s1229_s1 = inlined_call_operand.vmem [shape: f32[2,4,16,8], index: 1, kind: input, shape index: {}]   ;;  %s1230_s2 = inlined_call_operand.vmem [shape: f32[2,4,16,8], index: 2, kind: input, shape index: {}]   ;;  %s1231_s3 = inlined_call_operand.vmem [shape: s32[2,4,15,1], index: 3, kind: input, shape index: {}]   ;;  %s1232_s4 = inlined_call_operand.vmem [shape: f32[2,4,15,8], index: 4, kind: output, shape index: {}]  }
   0x1 LB: > { %s912_s16 = sadd.s32 4294967295, %s1057_s15   ;;  %p916_p0 = scmp.ge.s32.totalorder %s1057_s15, 1  ;;  %s1057_s15 = sphi %s1087_s15, %s14_s15  }
   0x2   : > { %p192_p1 = scmp.lt.s32.totalorder %s1057_s15, 3 }
   0x4   : > { %p193_p2 = pnand %p916_p0, %p192_p1 }
   0x5   : > { %p233_p3 = scmp.lt.s32.totalorder (!%p193_p2), %s912_s16, 1 }
   0x6   : > { %196 = sbr.rel (%p193_p2) target bundleno = 751 (0x2ef), region = 36 }
   0xb   : > { %v1059_v0 = vmov 0.0   ;;  %s1234_s16 = smov (!%p233_p3, %s912_s16), 1  ;;  %vm1060_vm0 = vmmov 0   ;;  %v1061_v1 = vmov 0   ;;  %vm283_vm1 = vcmask 64512  }
   0xc   : > { %958 = vmatprep.subr.bf16.mxu0 %v1059_v0  ;;  %964 = vmatprep.subr.bf16.mxu1 %v1059_v0  ;;  %s1101_s17 = sshll.u32 %s1234_s16, 6  ;;  %v480_v39 = vlaneseq  ;;  %vm530_vm4 = vcmask 130048   ;;  %vm534_vm5 = vcmask 129024   ;;  %vm813_vm12 = vcmask 63488  }
   0xd   : > { %960 = vmatprep.mubr.msk.bf16.mxu0 %vm1060_vm0, %v1059_v0  ;;  %966 = vmatprep.mubr.msk.bf16.mxu1 %vm1060_vm0, %v1059_v0  ;;  %s242_s20 = scalar_lea.vmem %s1229_s1, %s1101_s17  ;;  %s1111_s23 = scalar_lea.vmem %s1228_s0, %s1101_s17 }
   0xe   : > { %1017 = vset.pattern.permute.xlu0 %v1061_v1  ;;  %1018 = vset.pattern.permute.xlu1 %v1061_v1  ;;  %v271_v2 = vld [vmem:[%s242_s20] sm:$0xff]  ;;  %v272_v3 = vld [vmem:[%s242_s20 + $0x8] sm:$0xff]  ;;  %v273_v4 = vld [vmem:[%s242_s20 + $0x10] sm:$0xff]  ;;  %s1117_s26 = scalar_lea.vmem %s1231_s3, %s1101_s17  ;;  %v1155_v41 = vand.u32 127, %v480_v39  ;;  %s1191_s29 = scalar_lea.vmem %s1230_s2, %s1101_s17 }
   0xf   : > { %v279_v5 = vpack.c.bf16 %v272_v3, %v271_v2  ;;  %v274_v6 = vld [vmem:[%s242_s20 + $0x18] sm:$0xff]  ;;  %v275_v8 = vld [vmem:[%s242_s20 + $0x20] sm:$0xff]  ;;  %v276_v10 = vld [vmem:[%s242_s20 + $0x28] sm:$0xff]  ;;  %s257_s6 = scalar_lea.vmem %s1232_s4, %s1101_s17 }
  0x10   : > { %v280_v7 = vpack.c.bf16 %v274_v6, %v273_v4  ;;  %v277_v11 = vld [vmem:[%s242_s20 + $0x30] sm:$0xff]  ;;  %v278_v12 = vld [vmem:[%s242_s20 + $0x38] sm:$0xff]  ;;  %v259_v14 = vld [vmem:[%s1111_s23] sm:$0xff]  ;;  %v281_v18 = vpack.c.bf16 %v276_v10, %v275_v8 }
  0x11   : > { %v288_v9 = vsel %vm283_vm1, %v279_v5, 0  ;;  %v260_v15 = vld [vmem:[%s1111_s23 + $0x8] sm:$0x7f]  ;;  %v261_v16 = vld [vmem:[%s1111_s23 + $0x10] sm:$0xff]  ;;  %v262_v17 = vld [vmem:[%s1111_s23 + $0x18] sm:$0x7f]  ;;  %v282_v21 = vpack.c.bf16 %v278_v12, %v277_v11 }
  0x12   : > { %959 = vmatpush3.bf16.xpose.msra.mxu0 %v288_v9  ;;  %v335_v13 = vsel %vm283_vm1, %v280_v7, 0  ;;  %v482_v19 = vld [vmem:[%s1117_s26] sm:$0xff]  ;;  %v484_v20 = vld [vmem:[%s1117_s26 + $0x10] sm:$0xff]  ;;  %v267_v22 = vpack.c.bf16 %v260_v15, %v259_v14  ;;  %v483_v23 = vld [vmem:[%s1117_s26 + $0x8] sm:$0x7f]  ;;  %v268_v24 = vpack.c.bf16 %v262_v17, %v261_v16  ;;  %v382_v26 = vsel %vm283_vm1, %v281_v18, 0 }
  0x13   : > { %965 = vmatpush3.bf16.xpose.msra.mxu1 %v335_v13  ;;  %970 = vmatprep.subr.bf16.mxu0 %v1059_v0  ;;  %v485_v25 = vld [vmem:[%s1117_s26 + $0x18] sm:$0x7f]  ;;  %v429_v27 = vsel %vm283_vm1, %v282_v21, 0  ;;  %v486_v28 = vld [vmem:[%s1117_s26 + $0x20] sm:$0xff]  ;;  %v264_v30 = vld [vmem:[%s1111_s23 + $0x28] sm:$0x7f] }
  0x14   : > { %976 = vmatprep.subr.bf16.mxu1 %v1059_v0  ;;  %491 = vperm.xlu0 %1017, %v482_v19   ;;  %v263_v29 = vld [vmem:[%s1111_s23 + $0x20] sm:$0xff]  ;;  %v487_v31 = vld [vmem:[%s1117_s26 + $0x28] sm:$0x7f]  ;;  %v265_v32 = vld [vmem:[%s1111_s23 + $0x30] sm:$0xff] }
  0x15   : > { %497 = vperm.xlu1 %1018, %v484_v20   ;;  %v266_v33 = vld [vmem:[%s1111_s23 + $0x38] sm:$0x7f]  ;;  %v269_v34 = vpack.c.bf16 %v264_v30, %v263_v29  ;;  %v488_v35 = vld [vmem:[%s1117_s26 + $0x30] sm:$0xff] }
  0x16   : > { %v270_v36 = vpack.c.bf16 %v266_v33, %v265_v32  ;;  %v489_v37 = vld [vmem:[%s1117_s26 + $0x38] sm:$0x7f] }
  0x18   : > { %494 = vperm.xlu0 %1017, %v483_v23  }
  0x19   : > { %961 = vmatmul.mubr.msk.bf16.vlgmr.msra.gmra.mxu0 %vm283_vm1, %v267_v22  ;;  %500 = vperm.xlu1 %1018, %v485_v25  }
  0x1a   : > { %967 = vmatmul.mubr.msk.bf16.vlgmr.msra.gmra.mxu1 %vm283_vm1, %v268_v24  ;;  %971 = vmatpush3.bf16.xpose.msra.mxu0 %v382_v26 }
  0x1b   : > { %977 = vmatpush3.bf16.xpose.msra.mxu1 %v429_v27  ;;  %972 = vmatprep.mubr.msk.bf16.mxu0 %vm1060_vm0, %v1059_v0 }
  0x1c   : > { %978 = vmatprep.mubr.msk.bf16.mxu1 %vm1060_vm0, %v1059_v0  ;;  %503 = vperm.xlu0 %1017, %v486_v28  }
  0x1d   : > { %506 = vperm.xlu1 %1018, %v487_v31   ;;  %982 = vmatprep.subr.bf16.mxu0 %v1059_v0 }
  0x1e   : > { %988 = vmatprep.subr.bf16.mxu1 %v1059_v0 }
  0x20   : > { %509 = vperm.xlu0 %1017, %v488_v35  }
  0x21   : > { %973 = vmatmul.mubr.msk.bf16.vlgmr.msra.gmra.mxu0 %vm283_vm1, %v269_v34  ;;  %512 = vperm.xlu1 %1018, %v489_v37  }
  0x22   : > { %979 = vmatmul.mubr.msk.bf16.vlgmr.msra.gmra.mxu1 %vm283_vm1, %v270_v36  ;;  %984 = vmatprep.mubr.msk.bf16.mxu0 %vm1060_vm0, %v1059_v0 }
  0x23   : > { %990 = vmatprep.mubr.msk.bf16.mxu1 %vm1060_vm0, %v1059_v0 }
  0x8f   : > { %v492_v38 = vpop.permute.xlu0 %491 }
  0x90   : > { %v498_v40 = vpop.permute.xlu1 %497  ;;  %vm514_vm2 = vcmp.gt.s32.totalorder %v1155_v41, %v492_v38 }
  0x91   : > { %vm516_vm3 = vcmp.gt.s32.totalorder %v1155_v41, %v498_v40 }
  0x93   : > { %v495_v42 = vpop.permute.xlu0 %494 }
  0x94   : > { %v501_v44 = vpop.permute.xlu1 %500  ;;  %vm515_vm6 = vcmp.gt.s32.totalorder %v1155_v41, %v495_v42 }
  0x95   : > { %vm517_vm7 = vcmp.gt.s32.totalorder %v1155_v41, %v501_v44 }
  0x97   : > { %v504_v49 = vpop.permute.xlu0 %503 }
  0x98   : > { %v507_v60 = vpop.permute.xlu1 %506  ;;  %vm518_vm8 = vcmp.gt.s32.totalorder %v1155_v41, %v504_v49 }
  0x99   : > { %vm519_vm10 = vcmp.gt.s32.totalorder %v1155_v41, %v507_v60 }
  0x9b   : > { %v510_v2 = vpop.permute.xlu0 %509 }
  0x9c   : > { %vm520_vm9 = vcmp.gt.s32.totalorder %v1155_v41, %v510_v2  ;;  %v513_v13 = vpop.permute.xlu1 %512  ;;  %v624_v2 = vld [vmem:[%s1191_s29] sm:$0xff] }
  0x9d   : > { %vm521_vm11 = vcmp.gt.s32.totalorder %v1155_v41, %v513_v13 }
  0xd9   : > { %v324_v43 = vpop.f32.mrf.mxu0 }
  0xda   : > { %v472_v45 = vmul.f32 0.35355338, %v324_v43  ;;  %v371_v46 = vpop.f32.mrf.mxu1 }
  0xdb   : > { %v474_v47 = vmul.f32 0.35355338, %v371_v46  ;;  %v962_v48 = vpop.f32.mrf.mxu0 }
  0xdc   : > { %v968_v50 = vpop.f32.mrf.mxu1  ;;  %v522_v51 = vsel %vm514_vm2, -1e+30, %v472_v45 }
  0xdd   : > { %v327_v52 = vpop.f32.mrf.mxu0  ;;  %v531_v53 = vsel %vm530_vm4, %v522_v51, -inf  ;;  %v524_v54 = vsel %vm516_vm3, -1e+30, %v474_v47 }
  0xde   : > { %v473_v55 = vmul.f32 0.35355338, %v327_v52  ;;  %v374_v56 = vpop.f32.mrf.mxu1  ;;  %532 = vmax.xlane.f32.xlu0 %v531_v53  ;;  %v538_v59 = vsel %vm530_vm4, %v524_v54, -inf }
  0xdf   : > { %v475_v57 = vmul.f32 0.35355338, %v374_v56  ;;  %v963_v58 = vpop.f32.mrf.mxu0 }
  0xe0   : > { %v969_v61 = vpop.f32.mrf.mxu1  ;;  %v523_v62 = vsel %vm515_vm6, -1e+30, %v473_v55 }
  0xe1   : > { %v418_v63 = vpop.f32.mrf.mxu0  ;;  %v535_v1 = vsel %vm534_vm5, %v523_v62, -inf  ;;  %v525_v5 = vsel %vm517_vm7, -1e+30, %v475_v57 }
  0xe2   : > { %v476_v3 = vmul.f32 0.35355338, %v418_v63  ;;  %v465_v4 = vpop.f32.mrf.mxu1  ;;  %539 = vmax.xlane.f32.xlu0 %v538_v59  ;;  %536 = vmax.xlane.f32.xlu1 %v535_v1  ;;  %v541_v11 = vsel %vm534_vm5, %v525_v5, -inf }
  0xe3   : > { %v478_v6 = vmul.f32 0.35355338, %v465_v4  ;;  %v974_v7 = vpop.f32.mrf.mxu0 }
  0xe4   : > { %v980_v8 = vpop.f32.mrf.mxu1  ;;  %v526_v9 = vsel %vm518_vm8, -1e+30, %v476_v3  ;;  %v625_v3 = vld [vmem:[%s1191_s29 + $0x8] sm:$0xff] }
  0xe5   : > { %v421_v10 = vpop.f32.mrf.mxu0  ;;  %v544_v12 = vsel %vm530_vm4, %v526_v9, -inf  ;;  %v528_v16 = vsel %vm520_vm9, -1e+30, %v478_v6  ;;  %v632_v4 = vpack.c.bf16 %v625_v3, %v624_v2  ;;  %v627_v6 = vld [vmem:[%s1191_s29 + $0x18] sm:$0xff] }
  0xe6   : > { %v477_v14 = vmul.f32 0.35355338, %v421_v10  ;;  %v468_v15 = vpop.f32.mrf.mxu1  ;;  %542 = vmax.xlane.f32.xlu0 %v541_v11  ;;  %545 = vmax.xlane.f32.xlu1 %v544_v12  ;;  %v550_v21 = vsel %vm530_vm4, %v528_v16, -inf }
  0xe7   : > { %v479_v17 = vmul.f32 0.35355338, %v468_v15  ;;  %v975_v18 = vpop.f32.mrf.mxu0  ;;  %983 = vmatpush3.bf16.msra.mxu0 %v632_v4 }
  0xe8   : > { %v981_v19 = vpop.f32.mrf.mxu1  ;;  %v527_v20 = vsel %vm519_vm10, -1e+30, %v477_v14  ;;  %994 = vmatprep.subr.bf16.mxu0 %v1059_v0  ;;  %v629_v18 = vld [vmem:[%s1191_s29 + $0x28] sm:$0xff] }
  0xe9   : > { %v547_v22 = vsel %vm534_vm5, %v527_v20, -inf  ;;  %v529_v23 = vsel %vm521_vm11, -1e+30, %v479_v17  ;;  %v628_v17 = vld [vmem:[%s1191_s29 + $0x20] sm:$0xff] }
  0xea   : > { %551 = vmax.xlane.f32.xlu1 %v550_v21  ;;  %548 = vmax.xlane.f32.xlu0 %v547_v22  ;;  %v553_v24 = vsel %vm534_vm5, %v529_v23, -inf  ;;  %v634_v22 = vpack.c.bf16 %v629_v18, %v628_v17 }
  0xee   : > { %554 = vmax.xlane.f32.xlu0 %v553_v24 }
 0x167   : > { %v533_v25 = vpop.xlane.xlu0 %532 }
 0x168   : > { %v556_v26 = vsub.f32 %v522_v51, %v533_v25  ;;  %v630_v25 = vld [vmem:[%s1191_s29 + $0x30] sm:$0xff] }
 0x16a   : > { %v564_v27 = vmul.f32 1.442695, %v556_v26  ;;  %v631_v26 = vld [vmem:[%s1191_s29 + $0x38] sm:$0xff] }
 0x16b   : > { %v540_v28 = vpop.xlane.xlu0 %539  ;;  %v537_v29 = vpop.xlane.xlu1 %536 }
 0x16c   : > { %1019 = vpow2.f32 %v564_v27  ;;  %v558_v30 = vsub.f32 %v524_v54, %v540_v28  ;;  %v557_v31 = vsub.f32 %v523_v62, %v537_v29 }
 0x16e   : > { %v568_v32 = vmul.f32 1.442695, %v558_v30  ;;  %v566_v33 = vmul.f32 1.442695, %v557_v31  ;;  %v635_v31 = vpack.c.bf16 %v631_v26, %v630_v25 }
 0x16f   : > { %v543_v34 = vpop.xlane.xlu0 %542  ;;  %v546_v35 = vpop.xlane.xlu1 %545 }
 0x170   : > { %1021 = vpow2.f32 %v568_v32  ;;  %v559_v36 = vsub.f32 %v525_v5, %v543_v34  ;;  %v560_v37 = vsub.f32 %v526_v9, %v546_v35  ;;  %v626_v5 = vld [vmem:[%s1191_s29 + $0x10] sm:$0xff] }
 0x171   : > { %1023 = vpow2.f32 %v566_v33  ;;  %v633_v7 = vpack.c.bf16 %v627_v6, %v626_v5 }
 0x172   : > { %v570_v38 = vmul.f32 1.442695, %v559_v36  ;;  %v572_v39 = vmul.f32 1.442695, %v560_v37 }
 0x173   : > { %v552_v40 = vpop.xlane.xlu1 %551  ;;  %v549_v41 = vpop.xlane.xlu0 %548  ;;  %989 = vmatpush3.bf16.msra.mxu1 %v633_v7 }
 0x174   : > { %1025 = vpow2.f32 %v570_v38  ;;  %v562_v42 = vsub.f32 %v528_v16, %v552_v40  ;;  %v561_v43 = vsub.f32 %v527_v20, %v549_v41  ;;  %1000 = vmatprep.subr.bf16.mxu1 %v1059_v0 }
 0x175   : > { %1027 = vpow2.f32 %v572_v39 }
 0x176   : > { %v576_v44 = vmul.f32 1.442695, %v562_v42  ;;  %v574_v45 = vmul.f32 1.442695, %v561_v43 }
 0x177   : > { %v555_v46 = vpop.xlane.xlu0 %554 }
 0x178   : > { %1029 = vpow2.f32 %v576_v44  ;;  %v563_v47 = vsub.f32 %v529_v23, %v555_v46 }
 0x179   : > { %v1020_v48 = vpop.eup %1019  ;;  %1031 = vpow2.f32 %v574_v45 }
 0x17a   : > { %v578_v49 = vmul.f32 1.442695, %v563_v47  ;;  %v580_v50 = vsel %vm530_vm4, %v1020_v48, 0.0 }
 0x17b   : > { %581 = vadd.xlane.f32.xlu1 %v580_v50 }
 0x17c   : > { %1033 = vpow2.f32 %v578_v49 }
 0x17d   : > { %v1022_v51 = vpop.eup %1021 }
 0x17e   : > { %v1024_v52 = vpop.eup %1023  ;;  %v586_v53 = vsel %vm530_vm4, %v1022_v51, 0.0 }
 0x17f   : > { %587 = vadd.xlane.f32.xlu1 %v586_v53  ;;  %v583_v54 = vsel %vm534_vm5, %v1024_v52, 0.0 }
 0x180   : > { %584 = vadd.xlane.f32.xlu0 %v583_v54 }
 0x181   : > { %v1026_v55 = vpop.eup %1025 }
 0x182   : > { %v1176_v56 = vpop.eup %1027  ;;  %v589_v57 = vsel %vm534_vm5, %v1026_v55, 0.0 }
 0x183   : > { %v592_v58 = vsel %vm530_vm4, %v1176_v56, 0.0 }
 0x184   : > { %593 = vadd.xlane.f32.xlu1 %v592_v58  ;;  %590 = vadd.xlane.f32.xlu0 %v589_v57 }
 0x185   : > { %v1181_v59 = vpop.eup %1029 }
 0x186   : > { %v1032_v60 = vpop.eup %1031  ;;  %v598_v61 = vsel %vm530_vm4, %v1181_v59, 0.0 }
 0x187   : > { %v595_v62 = vsel %vm534_vm5, %v1032_v60, 0.0 }
 0x188   : > { %599 = vadd.xlane.f32.xlu1 %v598_v61  ;;  %596 = vadd.xlane.f32.xlu0 %v595_v62 }
 0x189   : > { %v1034_v63 = vpop.eup %1033 }
 0x18a   : > { %v601_v1 = vsel %vm534_vm5, %v1034_v63, 0.0 }
 0x18c   : > { %602 = vadd.xlane.f32.xlu0 %v601_v1 }
 0x204   : > { %v582_v8 = vpop.xlane.xlu1 %581 }
 0x205   : > { %1035 = vrcp.f32 %v582_v8 }
 0x208   : > { %v588_v9 = vpop.xlane.xlu1 %587 }
 0x209   : > { %v585_v10 = vpop.xlane.xlu0 %584 }
 0x20a   : > { %1037 = vrcp.f32 %v585_v10 }
 0x20b   : > { %1039 = vrcp.f32 %v588_v9 }
 0x20d   : > { %v594_v11 = vpop.xlane.xlu1 %593  ;;  %v591_v12 = vpop.xlane.xlu0 %590 }
 0x20e   : > { %1041 = vrcp.f32 %v591_v12 }
 0x20f   : > { %1043 = vrcp.f32 %v594_v11 }
 0x211   : > { %v600_v13 = vpop.xlane.xlu1 %599  ;;  %v597_v14 = vpop.xlane.xlu0 %596 }
 0x212   : > { %1045 = vrcp.f32 %v597_v14  ;;  %v1036_v15 = vpop.eup %1035 }
 0x213   : > { %1047 = vrcp.f32 %v600_v13  ;;  %v612_v20 = vmul.f32 %v1036_v15, %v1020_v48 }
 0x215   : > { %v603_v16 = vpop.xlane.xlu0 %602 }
 0x216   : > { %1049 = vrcp.f32 %v603_v16 }
 0x217   : > { %v1038_v19 = vpop.eup %1037 }
 0x218   : > { %v613_v21 = vmul.f32 %v1038_v19, %v1024_v52  ;;  %v1040_v23 = vpop.eup %1039 }
 0x219   : > { %v614_v28 = vmul.f32 %v1040_v23, %v1022_v51 }
 0x21a   : > { %v620_v24 = vpack.c.bf16 %v613_v21, %v612_v20 }
 0x21b   : > { %v1042_v27 = vpop.eup %1041 }
 0x21c   : > { %985 = vmatmul.mubr.msk.bf16.vlgmr.msra.gmra.mxu0 %vm530_vm4, %v620_v24  ;;  %v615_v29 = vmul.f32 %v1042_v27, %v1026_v55  ;;  %v1044_v30 = vpop.eup %1043 }
 0x21d   : > { %995 = vmatpush3.bf16.msra.mxu0 %v634_v22  ;;  %996 = vmatprep.mubr.msk.bf16.mxu0 %vm1060_vm0, %v1059_v0  ;;  %v616_v35 = vmul.f32 %v1044_v30, %v1176_v56 }
 0x21e   : > { %v621_v32 = vpack.c.bf16 %v615_v29, %v614_v28 }
 0x21f   : > { %v1046_v33 = vpop.eup %1045 }
 0x220   : > { %v1048_v34 = vpop.eup %1047  ;;  %991 = vmatmul.mubr.msk.bf16.vlgmr.msra.gmra.mxu1 %vm530_vm4, %v621_v32  ;;  %v617_v36 = vmul.f32 %v1046_v33, %v1032_v60 }
 0x221   : > { %1001 = vmatpush3.bf16.msra.mxu1 %v635_v31  ;;  %1002 = vmatprep.mubr.msk.bf16.mxu1 %vm1060_vm0, %v1059_v0  ;;  %v618_v39 = vmul.f32 %v1048_v34, %v1181_v59 }
 0x222   : > { %v622_v38 = vpack.c.bf16 %v617_v36, %v616_v35 }
 0x223   : > { %v1050_v37 = vpop.eup %1049 }
 0x224   : > { %v619_v40 = vmul.f32 %v1050_v37, %v1034_v63  ;;  %997 = vmatmul.mubr.msk.bf16.vlgmr.msra.gmra.mxu0 %vm530_vm4, %v622_v38 }
 0x226   : > { %v623_v41 = vpack.c.bf16 %v619_v40, %v618_v39 }
 0x228   : > { %1003 = vmatmul.mubr.msk.bf16.vlgmr.msra.gmra.mxu1 %vm530_vm4, %v623_v41 }
 0x2dc   : > { %v673_v42 = vpop.f32.mrf.mxu0 }
 0x2dd   : > { %812 = vst.msk [vmem:[%s257_s6] sm:$0xff] %vm283_vm1, %v673_v42 }
 0x2de   : > { %v986_v43 = vpop.f32.mrf.mxu0 }
 0x2e0   : > { %v676_v0 = vpop.f32.mrf.mxu0  ;;  %v717_v44 = vpop.f32.mrf.mxu1 }
 0x2e1   : > { %814 = vst.msk [vmem:[%s257_s6 + $0x8] sm:$0x7f] %vm813_vm12, %v676_v0 }
 0x2e2   : > { %815 = vst.msk [vmem:[%s257_s6 + $0x10] sm:$0xff] %vm283_vm1, %v717_v44  ;;  %v987_v45 = vpop.f32.mrf.mxu0  ;;  %v992_v46 = vpop.f32.mrf.mxu1 }
 0x2e4   : > { %v720_v47 = vpop.f32.mrf.mxu1  ;;  %v761_v48 = vpop.f32.mrf.mxu0 }
 0x2e5   : > { %816 = vst.msk [vmem:[%s257_s6 + $0x18] sm:$0x7f] %vm813_vm12, %v720_v47 }
 0x2e6   : > { %817 = vst.msk [vmem:[%s257_s6 + $0x20] sm:$0xff] %vm283_vm1, %v761_v48  ;;  %v993_v49 = vpop.f32.mrf.mxu1  ;;  %v998_v50 = vpop.f32.mrf.mxu0 }
 0x2e8   : > { %v764_v51 = vpop.f32.mrf.mxu0  ;;  %v805_v52 = vpop.f32.mrf.mxu1 }
 0x2e9   : > { %818 = vst.msk [vmem:[%s257_s6 + $0x28] sm:$0x7f] %vm813_vm12, %v764_v51 }
 0x2ea   : > { %819 = vst.msk [vmem:[%s257_s6 + $0x30] sm:$0xff] %vm283_vm1, %v805_v52  ;;  %v999_v53 = vpop.f32.mrf.mxu0  ;;  %v1004_v54 = vpop.f32.mrf.mxu1 }
 0x2ec   : > { %v808_v55 = vpop.f32.mrf.mxu1 }
 0x2ed   : > { %820 = vst.msk [vmem:[%s257_s6 + $0x38] sm:$0x7f] %vm813_vm12, %v808_v55 }
 0x2ee   : > { %v1005_v56 = vpop.f32.mrf.mxu1 }
 0x2ef PF: > { %s14_s15 = sadd.s32 1, %s1057_s15  }
 0x2f0   : > { %p11_p4 = scmp.ge.s32.totalorder %s14_s15, 4  }
 0x2f2   :  { %13 = sbr.rel (!%p11_p4) target bundleno = 1 (0x1), region = 75 }

// kernel: _lambda_.25
= control target key start
LH: loop header
LB: loop body
LE: loop exit
PB: predicated region body
PF: predicated region fallthrough
CT: control target
= control target key end

     0   :  { %s1090_s25 = smov 0   ;;  %s1171_s0 = inlined_call_operand.vmem [shape: f32[2,16,32], index: 0, kind: input, shape index: {}]   ;;  %s1172_s1 = inlined_call_operand.vmem [shape: f32[2,16,32], index: 1, kind: input, shape index: {}]   ;;  %s1173_s2 = inlined_call_operand.vmem [shape: f32[2,9,32], index: 2, kind: input, shape index: {}]   ;;  %s1174_s3 = inlined_call_operand.vmem [shape: bf16[32,32], index: 3, kind: input, shape index: {}]   ;;  %s1175_s4 = inlined_call_operand.vmem [shape: f32[1,32], index: 4, kind: input, shape index: {}]   ;;  %s1176_s5 = inlined_call_operand.vmem [shape: f32[1,32], index: 5, kind: input, shape index: {}]   ;;  %s1177_s6 = inlined_call_operand.vmem [shape: f32[1,32], index: 6, kind: input, shape index: {}]   ;;  %s1178_s7 = inlined_call_operand.vmem [shape: bf16[32,32], index: 7, kind: input, shape index: {}]   ;;  %s1179_s8 = inlined_call_operand.vmem [shape: f32[1,32], index: 8, kind: input, shape index: {}]   ;;  %s1180_s9 = inlined_call_operand.vmem [shape: bf16[32,64], index: 9, kind: input, shape index: {}]   ;;  %s1181_s10 = inlined_call_operand.vmem [shape: f32[1,64], index: 10, kind: input, shape index: {}]   ;;  %s1182_s11 = inlined_call_operand.vmem [shape: f32[2,16,32], index: 11, kind: output, shape index: {0}]   ;;  %s1183_s12 = inlined_call_operand.vmem [shape: f32[2,16,32], index: 12, kind: output, shape index: {1}]   ;;  %s1184_s13 = inlined_call_operand.vmem [shape: f32[2,9,64], index: 13, kind: output, shape index: {2}]  }
   0x1 LB: > { %s918_s26 = sadd.s32 4294967295, %s1016_s25   ;;  %p922_p0 = scmp.ge.s32.totalorder %s1016_s25, 1  ;;  %s1016_s25 = sphi %s1090_s25, %s24_s25  }
   0x2   : > { %p412_p1 = scmp.lt.s32.totalorder %s1016_s25, 3 }
   0x4   : > { %p413_p2 = pnand %p922_p0, %p412_p1 }
   0x5   : > { %p476_p3 = scmp.lt.s32.totalorder (!%p413_p2), %s918_s26, 1 }
   0x6   : > { %416 = sbr.rel (%p413_p2) target bundleno = 731 (0x2db), region = 64 }
   0xb   : > { %v1000_v0 = vld [vmem:[%s1174_s3 + $0x8] sm:$0xff]   ;;  %v1018_v1 = vmov 0.0   ;;  %v1001_v2 = vld [vmem:[%s1174_s3] sm:$0xff]   ;;  %vm1019_vm0 = vmmov 0   ;;  %s1186_s26 = smov (!%p476_p3, %s918_s26), 1  ;;  %vm533_vm1 = vcmask 261120  }
   0xc   : > { %966 = vmatprep.subr.bf16.mxu0 %v1018_v1  ;;  %974 = vmatprep.subr.bf16.mxu1 %v1018_v1  ;;  %s1104_s14 = sshll.u32 %s1186_s26, 4  ;;  %v935_v6 = vld [vmem:[%s1175_s4] ss:$0 sm:$0xff]  ;;  %v1002_v29 = vld [vmem:[%s1180_s9 + $0x8] sm:$0xff]   ;;  %vm769_vm2 = vcmask 523264   ;;  %vm771_vm3 = vcmask 516096  }
   0xd   : > { %967 = vmatpush3.bf16.msra.mxu0 %v1000_v0  ;;  %970 = vmatprep.mubr.msk.bf16.mxu0 %vm1019_vm0, %v1018_v1  ;;  %s485_s17 = scalar_lea.vmem %s1172_s1, %s1104_s14  ;;  %s480_s20 = scalar_lea.vmem %s1171_s0, %s1104_s14  ;;  %v1004_v30 = vld [vmem:[%s1178_s7 + $0x8] sm:$0xff]   ;;  %v1003_v31 = vld [vmem:[%s1180_s9] sm:$0xff]  }
   0xe   : > { %968 = vmatprep.subr.bf16.mxu0 %v1018_v1  ;;  %978 = vmatprep.mubr.msk.bf16.mxu1 %vm1019_vm0, %v1018_v1  ;;  %v507_v3 = vld [vmem:[%s485_s17] sm:$0xff]  ;;  %v508_v4 = vld [vmem:[%s485_s17 + $0x8] sm:$0xff]  ;;  %s490_s30 = scalar_lea.vmem %s1173_s2, %s1104_s14  ;;  %s495_s26 = scalar_lea.vmem %s1182_s11, %s1104_s14 }
   0xf   : > { %v509_v5 = vpack.c.bf16 %v508_v4, %v507_v3  ;;  %v578_v8 = vld [vmem:[%s480_s20] sm:$0xff]  ;;  %v579_v13 = vld [vmem:[%s480_s20 + $0x8] sm:$0xff]  ;;  %975 = vmatpush3.bf16.msra.mxu1 %v1004_v30  ;;  %s505_s15 = scalar_lea.vmem %s1184_s13, %s1104_s14  ;;  %s500_s20 = scalar_lea.vmem %s1183_s12, %s1104_s14 }
  0x10   : > { %v699_v32 = vld [vmem:[%s490_s30] sm:$0xff]  ;;  %v700_v33 = vld [vmem:[%s490_s30 + $0x8] sm:$0x1]  ;;  %976 = vmatprep.subr.bf16.mxu1 %v1018_v1 }
  0x11   : > { %969 = vmatpush3.bf16.msra.mxu0 %v1001_v2  ;;  %v1005_v34 = vld [vmem:[%s1178_s7] sm:$0xff]   ;;  %v701_v35 = vpack.c.bf16 %v700_v33, %v699_v32 }
  0x12   : > { %982 = vmatprep.subr.bf16.mxu0 %v1018_v1  ;;  %v939_v43 = vld [vmem:[%s1176_s5] ss:$0 sm:$0xff] }
  0x13   : > { %977 = vmatpush3.bf16.msra.mxu1 %v1005_v34  ;;  %v940_v45 = vld [vmem:[%s1177_s6] ss:$0 sm:$0xff] }
  0x14   : > { %971 = vmatmul.mubr.msk.bf16.vlgmr.msra.gmra.mxu0 %vm533_vm1, %v509_v5  ;;  %v945_v53 = vld [vmem:[%s1181_s10] ss:$0 sm:$0xff] }
  0x15   : > { %986 = vmatprep.mubr.msk.bf16.mxu0 %vm1019_vm0, %v1018_v1  ;;  %983 = vmatpush3.bf16.msra.mxu0 %v1002_v29  ;;  %v941_v60 = vld [vmem:[%s1179_s8] ss:$0 sm:$0xff] }
  0x16   : > { %984 = vmatprep.subr.bf16.mxu0 %v1018_v1 }
  0x19   : > { %985 = vmatpush3.bf16.msra.mxu0 %v1003_v31 }
  0x1c   : > { %987 = vmatmul.mubr.msk.bf16.vlgmr.msra.gmra.mxu0 %vm533_vm1, %v701_v35 }
  0xd4   : > { %v571_v7 = vpop.f32.mrf.mxu0 }
  0xd5   : > { %v572_v9 = vadd.f32 %v935_v6, %v571_v7 }
  0xd6   : > { %v972_v10 = vpop.f32.mrf.mxu0 }
  0xd7   : > { %v580_v11 = vadd.f32 %v578_v8, %v572_v9 }
  0xd8   : > { %v574_v12 = vpop.f32.mrf.mxu0 }
  0xd9   : > { %v575_v14 = vadd.f32 %v935_v6, %v574_v12  ;;  %v584_v15 = vsel %vm533_vm1, %v580_v11, 0.0 }
  0xda   : > { %v973_v16 = vpop.f32.mrf.mxu0  ;;  %585 = vadd.xlane.f32.xlu0 %v584_v15 }
  0xdb   : > { %v581_v17 = vadd.f32 %v579_v13, %v575_v14 }
  0xdc   : > { %v762_v54 = vpop.f32.mrf.mxu0 }
  0xdd   : > { %v587_v18 = vsel %vm533_vm1, %v581_v17, 0.0  ;;  %v763_v55 = vadd.f32 %v945_v53, %v762_v54 }
  0xde   : > { %588 = vadd.xlane.f32.xlu0 %v587_v18  ;;  %v988_v56 = vpop.f32.mrf.mxu0 }
  0xdf   : > { %770 = vst.msk [vmem:[%s505_s15] sm:$0xff] %vm769_vm2, %v763_v55 }
  0xe0   : > { %v765_v57 = vpop.f32.mrf.mxu0 }
  0xe1   : > { %v766_v58 = vadd.f32 %v945_v53, %v765_v57 }
  0xe2   : > { %v989_v59 = vpop.f32.mrf.mxu0 }
  0xe3   : > { %772 = vst.msk [vmem:[%s505_s15 + $0x8] sm:$0x1] %vm771_vm3, %v766_v58 }
 0x163   : > { %v586_v19 = vpop.xlane.xlu0 %585 }
 0x164   : > { %v591_v20 = vmul.f32 0.03125, %v586_v19 }
 0x166   : > { %v593_v21 = vsub.f32 %v580_v11, %v591_v20 }
 0x167   : > { %v589_v22 = vpop.xlane.xlu0 %588 }
 0x168   : > { %v592_v23 = vmul.f32 0.03125, %v589_v22  ;;  %v595_v24 = vmul.f32 %v593_v21, %v593_v21 }
 0x16a   : > { %v594_v25 = vsub.f32 %v581_v17, %v592_v23  ;;  %v597_v26 = vsel %vm533_vm1, %v595_v24, 0.0 }
 0x16b   : > { %598 = vadd.xlane.f32.xlu1 %v597_v26 }
 0x16c   : > { %v596_v27 = vmul.f32 %v594_v25, %v594_v25 }
 0x16e   : > { %v600_v28 = vsel %vm533_vm1, %v596_v27, 0.0 }
 0x16f   : > { %601 = vadd.xlane.f32.xlu1 %v600_v28 }
 0x1f4   : > { %v599_v36 = vpop.xlane.xlu1 %598 }
 0x1f5   : > { %v603_v37 = vmul.f32 0.03125, %v599_v36 }
 0x1f7   : > { %v605_v38 = vadd.f32 1e-05, %v603_v37 }
 0x1f8   : > { %v602_v39 = vpop.xlane.xlu1 %601 }
 0x1f9   : > { %1006 = vrsqrt.f32 %v605_v38  ;;  %v604_v40 = vmul.f32 0.03125, %v602_v39 }
 0x1fb   : > { %v606_v41 = vadd.f32 1e-05, %v604_v40 }
 0x1fd   : > { %1008 = vrsqrt.f32 %v606_v41 }
 0x206   : > { %v1007_v42 = vpop.eup %1006 }
 0x207   : > { %v609_v44 = vmul.f32 %v1007_v42, %v593_v21 }
 0x209   : > { %v617_v46 = vmul.f32 %v939_v43, %v609_v44 }
 0x20a   : > { %v1009_v47 = vpop.eup %1008 }
 0x20b   : > { %v610_v48 = vmul.f32 %v1009_v47, %v594_v25  ;;  %v625_v49 = vadd.f32 %v940_v45, %v617_v46 }
 0x20d   : > { %v618_v50 = vmul.f32 %v939_v43, %v610_v48  ;;  %627 = vst.msk [vmem:[%s495_s26] sm:$0xff] %vm533_vm1, %v625_v49 }
 0x20f   : > { %v626_v51 = vadd.f32 %v940_v45, %v618_v50 }
 0x211   : > { %628 = vst.msk [vmem:[%s495_s26 + $0x8] sm:$0xff] %vm533_vm1, %v626_v51  ;;  %v629_v52 = vpack.c.bf16 %v626_v51, %v625_v49 }
 0x213   : > { %979 = vmatmul.mubr.msk.bf16.vlgmr.msra.gmra.mxu1 %vm533_vm1, %v629_v52 }
 0x2d3   : > { %v690_v61 = vpop.f32.mrf.mxu1 }
 0x2d4   : > { %v691_v62 = vadd.f32 %v941_v60, %v690_v61 }
 0x2d5   : > { %v980_v63 = vpop.f32.mrf.mxu1 }
 0x2d6   : > { %697 = vst.msk [vmem:[%s500_s20] sm:$0xff] %vm533_vm1, %v691_v62 }
 0x2d7   : > { %v693_v0 = vpop.f32.mrf.mxu1 }
 0x2d8   : > { %v694_v1 = vadd.f32 %v941_v60, %v693_v0 }
 0x2d9   : > { %v981_v2 = vpop.f32.mrf.mxu1 }
 0x2da   : > { %698 = vst.msk [vmem:[%s500_s20 + $0x8] sm:$0xff] %vm533_vm1, %v694_v1 }
 0x2db PF: > { %s24_s25 = sadd.s32 1, %s1016_s25  }
 0x2dc   : > { %p21_p4 = scmp.ge.s32.totalorder %s24_s25, 4  }
 0x2de   :  { %23 = sbr.rel (!%p21_p4) target bundleno = 1 (0x1), region = 124 }

// kernel: _lambda_.26
= control target key start
LH: loop header
LB: loop body
LE: loop exit
PB: predicated region body
PF: predicated region fallthrough
CT: control target
= control target key end

     0   :  { %s984_s12 = smov 0   ;;  %s1105_s0 = inlined_call_operand.vmem [shape: f32[2,4,15,8], index: 0, kind: input, shape index: {}]   ;;  %s1106_s1 = inlined_call_operand.vmem [shape: f32[2,4,9,8], index: 1, kind: input, shape index: {}]   ;;  %s1107_s2 = inlined_call_operand.vmem [shape: f32[2,4,9,8], index: 2, kind: input, shape index: {}]   ;;  %s1108_s3 = inlined_call_operand.vmem [shape: f32[2,4,15,8], index: 3, kind: output, shape index: {}]  }
   0x1 LB: > { %s819_s13 = sadd.s32 4294967295, %s959_s12   ;;  %p823_p0 = scmp.ge.s32.totalorder %s959_s12, 1  ;;  %s959_s12 = sphi %s984_s12, %s13_s12  }
   0x2   : > { %p157_p1 = scmp.lt.s32.totalorder %s959_s12, 3 }
   0x4   : > { %p158_p2 = pnand %p823_p0, %p157_p1 }
   0x5   : > { %p191_p3 = scmp.lt.s32.totalorder (!%p158_p2), %s819_s13, 1 }
   0x6   : > { %161 = sbr.rel (%p158_p2) target bundleno = 750 (0x2ee), region = 32 }
   0xb   : > { %v961_v0 = vmov 0.0   ;;  %s1110_s13 = smov (!%p191_p3, %s819_s13), 1  ;;  %vm962_vm0 = vmmov 0   ;;  %vm236_vm1 = vcmask 64512   ;;  %vm433_vm2 = vcmask 72704  }
   0xc   : > { %862 = vmatprep.subr.bf16.mxu0 %v961_v0  ;;  %868 = vmatprep.subr.bf16.mxu1 %v961_v0  ;;  %s998_s14 = sshll.u32 %s1110_s13, 6  ;;  %vm437_vm3 = vcmask 71680   ;;  %vm542_vm4 = vcmask 1043456   ;;  %vm543_vm5 = vcmask 1044480   ;;  %vm732_vm6 = vcmask 63488  }
   0xd   : > { %864 = vmatprep.mubr.msk.bf16.mxu0 %vm962_vm0, %v961_v0  ;;  %870 = vmatprep.mubr.msk.bf16.mxu1 %vm962_vm0, %v961_v0  ;;  %s200_s17 = scalar_lea.vmem %s1106_s1, %s998_s14  ;;  %s195_s20 = scalar_lea.vmem %s1105_s0, %s998_s14 }
   0xe   : > { %v224_v1 = vld [vmem:[%s200_s17] sm:$0xff]  ;;  %v225_v2 = vld [vmem:[%s200_s17 + $0x8] sm:$0x1]  ;;  %v226_v3 = vld [vmem:[%s200_s17 + $0x10] sm:$0xff]  ;;  %s205_s23 = scalar_lea.vmem %s1107_s2, %s998_s14  ;;  %s210_s26 = scalar_lea.vmem %s1108_s3, %s998_s14 }
   0xf   : > { %v232_v4 = vpack.c.bf16 %v225_v2, %v224_v1  ;;  %v227_v5 = vld [vmem:[%s200_s17 + $0x18] sm:$0x1]  ;;  %v228_v7 = vld [vmem:[%s200_s17 + $0x20] sm:$0xff]  ;;  %v229_v9 = vld [vmem:[%s200_s17 + $0x28] sm:$0x1] }
  0x10   : > { %v233_v6 = vpack.c.bf16 %v227_v5, %v226_v3  ;;  %v230_v10 = vld [vmem:[%s200_s17 + $0x30] sm:$0xff]  ;;  %v231_v11 = vld [vmem:[%s200_s17 + $0x38] sm:$0x1]  ;;  %v212_v13 = vld [vmem:[%s195_s20] sm:$0xff]  ;;  %v234_v17 = vpack.c.bf16 %v229_v9, %v228_v7 }
  0x11   : > { %v241_v8 = vsel %vm236_vm1, %v232_v4, 0  ;;  %v213_v14 = vld [vmem:[%s195_s20 + $0x8] sm:$0x7f]  ;;  %v214_v15 = vld [vmem:[%s195_s20 + $0x10] sm:$0xff]  ;;  %v215_v16 = vld [vmem:[%s195_s20 + $0x18] sm:$0x7f]  ;;  %v235_v18 = vpack.c.bf16 %v231_v11, %v230_v10 }
  0x12   : > { %863 = vmatpush3.bf16.xpose.msra.mxu0 %v241_v8  ;;  %v288_v12 = vsel %vm236_vm1, %v233_v6, 0  ;;  %v220_v19 = vpack.c.bf16 %v213_v14, %v212_v13  ;;  %v221_v20 = vpack.c.bf16 %v215_v16, %v214_v15  ;;  %v335_v21 = vsel %vm236_vm1, %v234_v17, 0  ;;  %v216_v23 = vld [vmem:[%s195_s20 + $0x20] sm:$0xff]  ;;  %v217_v24 = vld [vmem:[%s195_s20 + $0x28] sm:$0x7f]  ;;  %v218_v25 = vld [vmem:[%s195_s20 + $0x30] sm:$0xff] }
  0x13   : > { %869 = vmatpush3.bf16.xpose.msra.mxu1 %v288_v12  ;;  %874 = vmatprep.subr.bf16.mxu0 %v961_v0  ;;  %v382_v22 = vsel %vm236_vm1, %v235_v18, 0  ;;  %v219_v26 = vld [vmem:[%s195_s20 + $0x38] sm:$0x7f]  ;;  %v222_v27 = vpack.c.bf16 %v217_v24, %v216_v23 }
  0x14   : > { %880 = vmatprep.subr.bf16.mxu1 %v961_v0  ;;  %v223_v28 = vpack.c.bf16 %v219_v26, %v218_v25 }
  0x19   : > { %865 = vmatmul.mubr.msk.bf16.vlgmr.msra.gmra.mxu0 %vm236_vm1, %v220_v19 }
  0x1a   : > { %871 = vmatmul.mubr.msk.bf16.vlgmr.msra.gmra.mxu1 %vm236_vm1, %v221_v20  ;;  %875 = vmatpush3.bf16.xpose.msra.mxu0 %v335_v21 }
  0x1b   : > { %881 = vmatpush3.bf16.xpose.msra.mxu1 %v382_v22  ;;  %876 = vmatprep.mubr.msk.bf16.mxu0 %vm962_vm0, %v961_v0 }
  0x1c   : > { %882 = vmatprep.mubr.msk.bf16.mxu1 %vm962_vm0, %v961_v0  ;;  %886 = vmatprep.subr.bf16.mxu0 %v961_v0 }
  0x1d   : > { %892 = vmatprep.subr.bf16.mxu1 %v961_v0 }
  0x21   : > { %877 = vmatmul.mubr.msk.bf16.vlgmr.msra.gmra.mxu0 %vm236_vm1, %v222_v27 }
  0x22   : > { %883 = vmatmul.mubr.msk.bf16.vlgmr.msra.gmra.mxu1 %vm236_vm1, %v223_v28  ;;  %888 = vmatprep.mubr.msk.bf16.mxu0 %vm962_vm0, %v961_v0 }
  0x23   : > { %894 = vmatprep.mubr.msk.bf16.mxu1 %vm962_vm0, %v961_v0 }
  0xd9   : > { %v277_v29 = vpop.f32.mrf.mxu0 }
  0xda   : > { %v425_v30 = vmul.f32 0.35355338, %v277_v29  ;;  %v324_v31 = vpop.f32.mrf.mxu1 }
  0xdb   : > { %v427_v32 = vmul.f32 0.35355338, %v324_v31  ;;  %v866_v33 = vpop.f32.mrf.mxu0 }
  0xdc   : > { %v872_v34 = vpop.f32.mrf.mxu1  ;;  %v434_v35 = vsel %vm433_vm2, %v425_v30, -inf }
  0xdd   : > { %v441_v36 = vsel %vm433_vm2, %v427_v32, -inf  ;;  %435 = vmax.xlane.f32.xlu0 %v434_v35  ;;  %v280_v37 = vpop.f32.mrf.mxu0 }
  0xde   : > { %442 = vmax.xlane.f32.xlu1 %v441_v36  ;;  %v327_v38 = vpop.f32.mrf.mxu1  ;;  %v426_v39 = vmul.f32 0.35355338, %v280_v37 }
  0xdf   : > { %v428_v40 = vmul.f32 0.35355338, %v327_v38  ;;  %v867_v41 = vpop.f32.mrf.mxu0  ;;  %v527_v38 = vld [vmem:[%s205_s23] sm:$0xff] }
  0xe0   : > { %v873_v42 = vpop.f32.mrf.mxu1  ;;  %v438_v43 = vsel %vm437_vm3, %v426_v39, -inf  ;;  %v963_v41 = vmov 65535  }
  0xe1   : > { %v444_v44 = vsel %vm437_vm3, %v428_v40, -inf  ;;  %439 = vmax.xlane.f32.xlu0 %v438_v43  ;;  %v371_v45 = vpop.f32.mrf.mxu0  ;;  %v544_v42 = vsel %vm542_vm4, 4294967295, %v963_v41 }
  0xe2   : > { %445 = vmax.xlane.f32.xlu1 %v444_v44  ;;  %v418_v46 = vpop.f32.mrf.mxu1  ;;  %v429_v47 = vmul.f32 0.35355338, %v371_v45  ;;  %v545_v43 = vsel %vm543_vm5, %v544_v42, 0  ;;  %v529_v45 = vld [vmem:[%s205_s23 + $0x10] sm:$0xff] }
  0xe3   : > { %v431_v48 = vmul.f32 0.35355338, %v418_v46  ;;  %v878_v49 = vpop.f32.mrf.mxu0  ;;  %v530_v46 = vld [vmem:[%s205_s23 + $0x18] sm:$0x1] }
  0xe4   : > { %v884_v50 = vpop.f32.mrf.mxu1  ;;  %v447_v51 = vsel %vm433_vm2, %v429_v47, -inf  ;;  %v531_v49 = vld [vmem:[%s205_s23 + $0x20] sm:$0xff] }
  0xe5   : > { %448 = vmax.xlane.f32.xlu0 %v447_v51  ;;  %v374_v52 = vpop.f32.mrf.mxu0  ;;  %v453_v55 = vsel %vm433_vm2, %v431_v48, -inf  ;;  %v532_v50 = vld [vmem:[%s205_s23 + $0x28] sm:$0x1] }
  0xe6   : > { %v421_v53 = vpop.f32.mrf.mxu1  ;;  %v430_v54 = vmul.f32 0.35355338, %v374_v52  ;;  %v537_v51 = vpack.c.bf16 %v532_v50, %v531_v49 }
  0xe7   : > { %v879_v56 = vpop.f32.mrf.mxu0  ;;  %v432_v57 = vmul.f32 0.35355338, %v421_v53  ;;  %v533_v53 = vld [vmem:[%s205_s23 + $0x30] sm:$0xff] }
  0xe8   : > { %v885_v58 = vpop.f32.mrf.mxu1  ;;  %v450_v59 = vsel %vm437_vm3, %v430_v54, -inf  ;;  %v641_v52 = vand.u32 %v545_v43, %v537_v51 }
  0xe9   : > { %454 = vmax.xlane.f32.xlu0 %v453_v55  ;;  %451 = vmax.xlane.f32.xlu1 %v450_v59  ;;  %v456_v60 = vsel %vm437_vm3, %v432_v57, -inf }
  0xed   : > { %457 = vmax.xlane.f32.xlu1 %v456_v60 }
 0x166   : > { %v436_v61 = vpop.xlane.xlu0 %435 }
 0x167   : > { %v443_v62 = vpop.xlane.xlu1 %442  ;;  %v459_v63 = vsub.f32 %v425_v30, %v436_v61 }
 0x168   : > { %v461_v1 = vsub.f32 %v427_v32, %v443_v62 }
 0x169   : > { %v467_v2 = vmul.f32 1.442695, %v459_v63 }
 0x16a   : > { %v471_v3 = vmul.f32 1.442695, %v461_v1  ;;  %v440_v4 = vpop.xlane.xlu0 %439 }
 0x16b   : > { %921 = vpow2.f32 %v467_v2  ;;  %v446_v5 = vpop.xlane.xlu1 %445  ;;  %v460_v6 = vsub.f32 %v426_v39, %v440_v4  ;;  %v528_v39 = vld [vmem:[%s205_s23 + $0x8] sm:$0x1] }
 0x16c   : > { %v462_v7 = vsub.f32 %v428_v40, %v446_v5  ;;  %923 = vpow2.f32 %v471_v3  ;;  %v535_v40 = vpack.c.bf16 %v528_v39, %v527_v38 }
 0x16d   : > { %v469_v8 = vmul.f32 1.442695, %v460_v6 }
 0x16e   : > { %v473_v9 = vmul.f32 1.442695, %v462_v7  ;;  %v449_v10 = vpop.xlane.xlu0 %448  ;;  %v547_v44 = vand.u32 %v545_v43, %v535_v40 }
 0x16f   : > { %925 = vpow2.f32 %v469_v8  ;;  %v463_v11 = vsub.f32 %v429_v47, %v449_v10  ;;  %v536_v47 = vpack.c.bf16 %v530_v46, %v529_v45 }
 0x170   : > { %927 = vpow2.f32 %v473_v9  ;;  %887 = vmatpush3.bf16.msra.mxu0 %v547_v44 }
 0x171   : > { %v475_v12 = vmul.f32 1.442695, %v463_v11  ;;  %898 = vmatprep.subr.bf16.mxu0 %v961_v0 }
 0x172   : > { %v455_v13 = vpop.xlane.xlu0 %454  ;;  %v452_v14 = vpop.xlane.xlu1 %451 }
 0x173   : > { %929 = vpow2.f32 %v475_v12  ;;  %v465_v15 = vsub.f32 %v431_v48, %v455_v13  ;;  %v464_v16 = vsub.f32 %v430_v54, %v452_v14  ;;  %v594_v48 = vand.u32 %v545_v43, %v536_v47  ;;  %v534_v54 = vld [vmem:[%s205_s23 + $0x38] sm:$0x1] }
 0x174   : > { %v538_v55 = vpack.c.bf16 %v534_v54, %v533_v53 }
 0x175   : > { %v479_v17 = vmul.f32 1.442695, %v465_v15  ;;  %v477_v18 = vmul.f32 1.442695, %v464_v16  ;;  %893 = vmatpush3.bf16.msra.mxu1 %v594_v48 }
 0x176   : > { %v458_v19 = vpop.xlane.xlu1 %457  ;;  %904 = vmatprep.subr.bf16.mxu1 %v961_v0  ;;  %v688_v56 = vand.u32 %v545_v43, %v538_v55 }
 0x177   : > { %931 = vpow2.f32 %v479_v17  ;;  %v466_v20 = vsub.f32 %v432_v57, %v458_v19 }
 0x178   : > { %v1036_v21 = vpop.eup %921  ;;  %933 = vpow2.f32 %v477_v18 }
 0x179   : > { %v481_v22 = vmul.f32 1.442695, %v466_v20  ;;  %v483_v23 = vsel %vm433_vm2, %v1036_v21, 0.0  ;;  %v1040_v24 = vpop.eup %923 }
 0x17a   : > { %484 = vadd.xlane.f32.xlu0 %v483_v23  ;;  %v489_v26 = vsel %vm433_vm2, %v1040_v24, 0.0 }
 0x17b   : > { %935 = vpow2.f32 %v481_v22 }
 0x17c   : > { %v1042_v25 = vpop.eup %925 }
 0x17d   : > { %v486_v27 = vsel %vm437_vm3, %v1042_v25, 0.0  ;;  %v1048_v28 = vpop.eup %927 }
 0x17e   : > { %490 = vadd.xlane.f32.xlu0 %v489_v26  ;;  %487 = vadd.xlane.f32.xlu1 %v486_v27  ;;  %v492_v31 = vsel %vm437_vm3, %v1048_v28, 0.0 }
 0x180   : > { %v1050_v29 = vpop.eup %929 }
 0x181   : > { %v495_v30 = vsel %vm433_vm2, %v1050_v29, 0.0 }
 0x182   : > { %496 = vadd.xlane.f32.xlu0 %v495_v30  ;;  %493 = vadd.xlane.f32.xlu1 %v492_v31 }
 0x184   : > { %v1056_v32 = vpop.eup %931 }
 0x185   : > { %v1058_v33 = vpop.eup %933  ;;  %v501_v34 = vsel %vm433_vm2, %v1056_v32, 0.0 }
 0x186   : > { %502 = vadd.xlane.f32.xlu0 %v501_v34  ;;  %v498_v35 = vsel %vm437_vm3, %v1058_v33, 0.0 }
 0x187   : > { %499 = vadd.xlane.f32.xlu1 %v498_v35 }
 0x188   : > { %v1064_v36 = vpop.eup %935 }
 0x189   : > { %v504_v37 = vsel %vm437_vm3, %v1064_v36, 0.0 }
 0x18b   : > { %505 = vadd.xlane.f32.xlu1 %v504_v37 }
 0x203   : > { %v485_v57 = vpop.xlane.xlu0 %484 }
 0x204   : > { %937 = vrcp.f32 %v485_v57 }
 0x207   : > { %v491_v58 = vpop.xlane.xlu0 %490  ;;  %v488_v59 = vpop.xlane.xlu1 %487 }
 0x208   : > { %939 = vrcp.f32 %v488_v59 }
 0x209   : > { %941 = vrcp.f32 %v491_v58 }
 0x20b   : > { %v497_v60 = vpop.xlane.xlu0 %496  ;;  %v494_v61 = vpop.xlane.xlu1 %493 }
 0x20c   : > { %943 = vrcp.f32 %v494_v61 }
 0x20d   : > { %945 = vrcp.f32 %v497_v60 }
 0x20f   : > { %v503_v62 = vpop.xlane.xlu0 %502 }
 0x210   : > { %v500_v63 = vpop.xlane.xlu1 %499 }
 0x211   : > { %947 = vrcp.f32 %v500_v63  ;;  %v938_v1 = vpop.eup %937 }
 0x212   : > { %949 = vrcp.f32 %v503_v62  ;;  %v515_v4 = vmul.f32 %v938_v1, %v1036_v21 }
 0x214   : > { %v506_v2 = vpop.xlane.xlu1 %505 }
 0x215   : > { %951 = vrcp.f32 %v506_v2  ;;  %v940_v3 = vpop.eup %939 }
 0x216   : > { %v516_v5 = vmul.f32 %v940_v3, %v1042_v25  ;;  %v942_v6 = vpop.eup %941 }
 0x217   : > { %v517_v9 = vmul.f32 %v942_v6, %v1040_v24 }
 0x218   : > { %v523_v7 = vpack.c.bf16 %v516_v5, %v515_v4 }
 0x219   : > { %v944_v8 = vpop.eup %943 }
 0x21a   : > { %889 = vmatmul.mubr.msk.bf16.vlgmr.msra.gmra.mxu0 %vm433_vm2, %v523_v7  ;;  %v518_v10 = vmul.f32 %v944_v8, %v1048_v28  ;;  %v946_v11 = vpop.eup %945 }
 0x21b   : > { %899 = vmatpush3.bf16.msra.mxu0 %v641_v52  ;;  %900 = vmatprep.mubr.msk.bf16.mxu0 %vm962_vm0, %v961_v0  ;;  %v519_v14 = vmul.f32 %v946_v11, %v1050_v29 }
 0x21c   : > { %v524_v12 = vpack.c.bf16 %v518_v10, %v517_v9 }
 0x21e   : > { %v948_v13 = vpop.eup %947  ;;  %895 = vmatmul.mubr.msk.bf16.vlgmr.msra.gmra.mxu1 %vm433_vm2, %v524_v12 }
 0x21f   : > { %v520_v15 = vmul.f32 %v948_v13, %v1058_v33  ;;  %v950_v16 = vpop.eup %949  ;;  %905 = vmatpush3.bf16.msra.mxu1 %v688_v56  ;;  %906 = vmatprep.mubr.msk.bf16.mxu1 %vm962_vm0, %v961_v0 }
 0x220   : > { %v521_v19 = vmul.f32 %v950_v16, %v1056_v32 }
 0x221   : > { %v525_v17 = vpack.c.bf16 %v520_v15, %v519_v14 }
 0x222   : > { %v952_v18 = vpop.eup %951 }
 0x223   : > { %v522_v20 = vmul.f32 %v952_v18, %v1064_v36  ;;  %901 = vmatmul.mubr.msk.bf16.vlgmr.msra.gmra.mxu0 %vm433_vm2, %v525_v17 }
 0x225   : > { %v526_v21 = vpack.c.bf16 %v522_v20, %v521_v19 }
 0x227   : > { %907 = vmatmul.mubr.msk.bf16.vlgmr.msra.gmra.mxu1 %vm433_vm2, %v526_v21 }
 0x2da   : > { %v583_v22 = vpop.f32.mrf.mxu0 }
 0x2db   : > { %731 = vst.msk [vmem:[%s210_s26] sm:$0xff] %vm236_vm1, %v583_v22 }
 0x2dc   : > { %v890_v23 = vpop.f32.mrf.mxu0 }
 0x2de   : > { %v586_v0 = vpop.f32.mrf.mxu0  ;;  %v630_v24 = vpop.f32.mrf.mxu1 }
 0x2df   : > { %733 = vst.msk [vmem:[%s210_s26 + $0x8] sm:$0x7f] %vm732_vm6, %v586_v0 }
 0x2e0   : > { %734 = vst.msk [vmem:[%s210_s26 + $0x10] sm:$0xff] %vm236_vm1, %v630_v24  ;;  %v891_v25 = vpop.f32.mrf.mxu0  ;;  %v896_v26 = vpop.f32.mrf.mxu1 }
 0x2e2   : > { %v633_v27 = vpop.f32.mrf.mxu1 }
 0x2e3   : > { %v677_v28 = vpop.f32.mrf.mxu0  ;;  %735 = vst.msk [vmem:[%s210_s26 + $0x18] sm:$0x7f] %vm732_vm6, %v633_v27 }
 0x2e4   : > { %736 = vst.msk [vmem:[%s210_s26 + $0x20] sm:$0xff] %vm236_vm1, %v677_v28  ;;  %v897_v29 = vpop.f32.mrf.mxu1 }
 0x2e5   : > { %v902_v30 = vpop.f32.mrf.mxu0 }
 0x2e7   : > { %v680_v31 = vpop.f32.mrf.mxu0  ;;  %v724_v32 = vpop.f32.mrf.mxu1 }
 0x2e8   : > { %737 = vst.msk [vmem:[%s210_s26 + $0x28] sm:$0x7f] %vm732_vm6, %v680_v31 }
 0x2e9   : > { %738 = vst.msk [vmem:[%s210_s26 + $0x30] sm:$0xff] %vm236_vm1, %v724_v32  ;;  %v903_v33 = vpop.f32.mrf.mxu0  ;;  %v908_v34 = vpop.f32.mrf.mxu1 }
 0x2eb   : > { %v727_v35 = vpop.f32.mrf.mxu1 }
 0x2ec   : > { %739 = vst.msk [vmem:[%s210_s26 + $0x38] sm:$0x7f] %vm732_vm6, %v727_v35 }
 0x2ed   : > { %v909_v36 = vpop.f32.mrf.mxu1 }
 0x2ee PF: > { %s13_s12 = sadd.s32 1, %s959_s12  }
 0x2ef   : > { %p10_p4 = scmp.ge.s32.totalorder %s13_s12, 4  }
 0x2f1   :  { %12 = sbr.rel (!%p10_p4) target bundleno = 1 (0x1), region = 68 }

// kernel: _lambda_.27
= control target key start
LH: loop header
LB: loop body
LE: loop exit
PB: predicated region body
PF: predicated region fallthrough
CT: control target
= control target key end

     0   :  { %s1113_s29 = smov 0   ;;  %s1216_s0 = inlined_call_operand.vmem [shape: f32[2,16,32], index: 0, kind: input, shape index: {}]   ;;  %s1217_s1 = inlined_call_operand.vmem [shape: f32[2,16,32], index: 1, kind: input, shape index: {}]   ;;  %s1218_s2 = inlined_call_operand.vmem [shape: bf16[32,32], index: 2, kind: input, shape index: {}]   ;;  %s1219_s3 = inlined_call_operand.vmem [shape: f32[1,32], index: 3, kind: input, shape index: {}]   ;;  %s1220_s4 = inlined_call_operand.vmem [shape: bf16[32,64], index: 4, kind: input, shape index: {}]   ;;  %s1221_s5 = inlined_call_operand.vmem [shape: f32[1,64], index: 5, kind: input, shape index: {}]   ;;  %s1222_s6 = inlined_call_operand.vmem [shape: bf16[64,32], index: 6, kind: input, shape index: {}]   ;;  %s1223_s7 = inlined_call_operand.vmem [shape: f32[1,32], index: 7, kind: input, shape index: {}]   ;;  %s1224_s8 = inlined_call_operand.vmem [shape: f32[1,32], index: 8, kind: input, shape index: {}]   ;;  %s1225_s9 = inlined_call_operand.vmem [shape: f32[1,32], index: 9, kind: input, shape index: {}]   ;;  %s1226_s10 = inlined_call_operand.vmem [shape: f32[1,32], index: 10, kind: input, shape index: {}]   ;;  %s1227_s11 = inlined_call_operand.vmem [shape: f32[1,32], index: 11, kind: input, shape index: {}]   ;;  %s1228_s12 = inlined_call_operand.vmem [shape: f32[1,32], index: 12, kind: input, shape index: {}]   ;;  %s1229_s13 = inlined_call_operand.vmem [shape: f32[1,32], index: 13, kind: input, shape index: {}]   ;;  %s1230_s14 = inlined_call_operand.vmem [shape: f32[2,16,32], index: 14, kind: output, shape index: {}]  }
   0x1 LB: > { %s923_s30 = sadd.s32 4294967295, %s1034_s29   ;;  %p927_p0 = scmp.ge.s32.totalorder %s1034_s29, 1  ;;  %s1034_s29 = sphi %s1113_s29, %s24_s29  }
   0x2   : > { %p422_p1 = scmp.lt.s32.totalorder %s1034_s29, 3 }
   0x4   : > { %p423_p2 = pnand %p927_p0, %p422_p1 }
   0x5   : > { %p473_p3 = scmp.lt.s32.totalorder (!%p423_p2), %s923_s30, 1 }
   0x6   : > { %426 = sbr.rel (%p423_p2) target bundleno = 1552 (0x610), region = 76 }
   0xb   : > { %v1008_v0 = vld [vmem:[%s1218_s2 + $0x8] sm:$0xff]   ;;  %v1036_v1 = vmov 0.0   ;;  %v1009_v2 = vld [vmem:[%s1218_s2] sm:$0xff]   ;;  %vm1037_vm0 = vmmov 0   ;;  %s1232_s30 = smov (!%p473_p3, %s923_s30), 1  ;;  %vm515_vm1 = vcmask 261120  }
   0xc   : > { %970 = vmatprep.subr.bf16.mxu1 %v1036_v1  ;;  %986 = vmatprep.subr.bf16.mxu0 %v1036_v1  ;;  %s1132_s19 = sshll.u32 %s1232_s30, 4  ;;  %v934_v6 = vld [vmem:[%s1219_s3] ss:$0 sm:$0xff]  ;;  %v1010_v29 = vld [vmem:[%s1220_s4 + $0x8] sm:$0xff]   ;;  %v1012_v31 = vld [vmem:[%s1222_s6 + $0x18] sm:$0xff]   ;;  %vm719_vm2 = vcmask 523264  }
   0xd   : > { %971 = vmatpush3.bf16.msra.mxu1 %v1008_v0  ;;  %974 = vmatprep.mubr.msk.bf16.mxu1 %vm1037_vm0, %v1036_v1  ;;  %s482_s22 = scalar_lea.vmem %s1217_s1, %s1132_s19  ;;  %s477_s25 = scalar_lea.vmem %s1216_s0, %s1132_s19  ;;  %v1011_v30 = vld [vmem:[%s1220_s4] sm:$0xff]   ;;  %v1013_v49 = vld [vmem:[%s1222_s6 + $0x10] sm:$0xff]   ;;  %v1014_v50 = vld [vmem:[%s1222_s6 + $0x8] sm:$0xff]  }
   0xe   : > { %972 = vmatprep.subr.bf16.mxu1 %v1036_v1  ;;  %994 = vmatprep.mubr.msk.bf16.mxu0 %vm1037_vm0, %v1036_v1  ;;  %v489_v3 = vld [vmem:[%s482_s22] sm:$0xff]  ;;  %v490_v4 = vld [vmem:[%s482_s22 + $0x8] sm:$0xff]  ;;  %s487_s15 = scalar_lea.vmem %s1230_s14, %s1132_s19 }
   0xf   : > { %v491_v5 = vpack.c.bf16 %v490_v4, %v489_v3  ;;  %v560_v8 = vld [vmem:[%s477_s25] sm:$0xff]  ;;  %v561_v13 = vld [vmem:[%s477_s25 + $0x8] sm:$0xff]  ;;  %987 = vmatpush3.bf16.msra.mxu0 %v1012_v31 }
  0x10   : > { %988 = vmatprep.subr.bf16.mxu0 %v1036_v1  ;;  %v938_v40 = vld [vmem:[%s1224_s8] ss:$0 sm:$0xff] }
  0x11   : > { %973 = vmatpush3.bf16.msra.mxu1 %v1009_v2  ;;  %v939_v44 = vld [vmem:[%s1225_s9] ss:$0 sm:$0xff] }
  0x12   : > { %978 = vmatprep.subr.bf16.mxu1 %v1036_v1  ;;  %v1015_v51 = vld [vmem:[%s1222_s6] sm:$0xff]  }
  0x13   : > { %989 = vmatpush3.bf16.msra.mxu0 %v1013_v49  ;;  %v940_v52 = vld [vmem:[%s1221_s5] ss:$0 sm:$0xff] }
  0x14   : > { %975 = vmatmul.mubr.msk.bf16.vlgmr.msra.gmra.mxu1 %vm515_vm1, %v491_v5  ;;  %990 = vmatprep.subr.bf16.mxu0 %v1036_v1  ;;  %v944_v62 = vld [vmem:[%s1223_s7] ss:$0 sm:$0xff] }
  0x15   : > { %982 = vmatprep.mubr.msk.bf16.mxu1 %vm1037_vm0, %v1036_v1  ;;  %979 = vmatpush3.bf16.msra.mxu1 %v1010_v29 }
  0x16   : > { %980 = vmatprep.subr.bf16.mxu1 %v1036_v1 }
  0x17   : > { %991 = vmatpush3.bf16.msra.mxu0 %v1014_v50 }
  0x18   : > { %992 = vmatprep.subr.bf16.mxu0 %v1036_v1 }
  0x19   : > { %981 = vmatpush3.bf16.msra.mxu1 %v1011_v30 }
  0x1b   : > { %993 = vmatpush3.bf16.msra.mxu0 %v1015_v51 }
  0xd4   : > { %v553_v7 = vpop.f32.mrf.mxu1 }
  0xd5   : > { %v554_v9 = vadd.f32 %v934_v6, %v553_v7 }
  0xd6   : > { %v976_v10 = vpop.f32.mrf.mxu1 }
  0xd7   : > { %v562_v11 = vadd.f32 %v560_v8, %v554_v9 }
  0xd8   : > { %v556_v12 = vpop.f32.mrf.mxu1 }
  0xd9   : > { %v557_v14 = vadd.f32 %v934_v6, %v556_v12  ;;  %v566_v15 = vsel %vm515_vm1, %v562_v11, 0.0 }
  0xda   : > { %v977_v16 = vpop.f32.mrf.mxu1  ;;  %567 = vadd.xlane.f32.xlu0 %v566_v15 }
  0xdb   : > { %v563_v17 = vadd.f32 %v561_v13, %v557_v14 }
  0xdd   : > { %v569_v18 = vsel %vm515_vm1, %v563_v17, 0.0 }
  0xde   : > { %570 = vadd.xlane.f32.xlu0 %v569_v18 }
 0x163   : > { %v568_v19 = vpop.xlane.xlu0 %567 }
 0x164   : > { %v573_v20 = vmul.f32 0.03125, %v568_v19 }
 0x166   : > { %v575_v21 = vsub.f32 %v562_v11, %v573_v20 }
 0x167   : > { %v571_v22 = vpop.xlane.xlu0 %570 }
 0x168   : > { %v574_v23 = vmul.f32 0.03125, %v571_v22  ;;  %v577_v24 = vmul.f32 %v575_v21, %v575_v21 }
 0x16a   : > { %v576_v25 = vsub.f32 %v563_v17, %v574_v23  ;;  %v579_v26 = vsel %vm515_vm1, %v577_v24, 0.0 }
 0x16b   : > { %580 = vadd.xlane.f32.xlu1 %v579_v26  ;;  %v950_v26 = vld [vmem:[%s1226_s10] ss:$0 sm:$0xff] }
 0x16c   : > { %v578_v27 = vmul.f32 %v576_v25, %v576_v25 }
 0x16e   : > { %v582_v28 = vsel %vm515_vm1, %v578_v27, 0.0 }
 0x16f   : > { %583 = vadd.xlane.f32.xlu1 %v582_v28  ;;  %v951_v28 = vld [vmem:[%s1227_s11] ss:$0 sm:$0xff] }
 0x1f4   : > { %v581_v32 = vpop.xlane.xlu1 %580 }
 0x1f5   : > { %v585_v33 = vmul.f32 0.03125, %v581_v32 }
 0x1f7   : > { %v587_v34 = vadd.f32 1e-05, %v585_v33 }
 0x1f8   : > { %v584_v35 = vpop.xlane.xlu1 %583 }
 0x1f9   : > { %1016 = vrsqrt.f32 %v587_v34  ;;  %v586_v36 = vmul.f32 0.03125, %v584_v35 }
 0x1fb   : > { %v588_v37 = vadd.f32 1e-05, %v586_v36 }
 0x1fd   : > { %1018 = vrsqrt.f32 %v588_v37 }
 0x206   : > { %v1017_v38 = vpop.eup %1016 }
 0x207   : > { %v591_v39 = vmul.f32 %v1017_v38, %v575_v21 }
 0x209   : > { %v599_v43 = vmul.f32 %v938_v40, %v591_v39 }
 0x20a   : > { %v1019_v41 = vpop.eup %1018 }
 0x20b   : > { %v592_v42 = vmul.f32 %v1019_v41, %v576_v25  ;;  %v607_v46 = vadd.f32 %v939_v44, %v599_v43 }
 0x20d   : > { %v600_v45 = vmul.f32 %v938_v40, %v592_v42 }
 0x20f   : > { %v608_v47 = vadd.f32 %v939_v44, %v600_v45 }
 0x211   : > { %v609_v48 = vpack.c.bf16 %v608_v47, %v607_v46 }
 0x213   : > { %983 = vmatmul.mubr.msk.bf16.vlgmr.msra.gmra.mxu1 %vm515_vm1, %v609_v48 }
 0x2d3   : > { %v670_v53 = vpop.f32.mrf.mxu1 }
 0x2d4   : > { %v671_v55 = vadd.f32 %v940_v52, %v670_v53 }
 0x2d5   : > { %v984_v54 = vpop.f32.mrf.mxu1 }
 0x2d6   : > { %v677_v59 = vmax.f32 %v671_v55, 0.0  ;;  %v952_v54 = vld [vmem:[%s1228_s12] ss:$0 sm:$0xff] }
 0x2d7   : > { %v673_v56 = vpop.f32.mrf.mxu1 }
 0x2d8   : > { %v674_v57 = vadd.f32 %v940_v52, %v673_v56  ;;  %v953_v56 = vld [vmem:[%s1229_s13] ss:$0 sm:$0xff] }
 0x2d9   : > { %v985_v58 = vpop.f32.mrf.mxu1 }
 0x2da   : > { %v678_v60 = vmax.f32 %v674_v57, 0.0 }
 0x2dc   : > { %v679_v61 = vpack.c.bf16 %v678_v60, %v677_v59 }
 0x2de   : > { %995 = vmatmul.mubr.msk.bf16.vlgmr.msra.gmra.mxu0 %vm719_vm2, %v679_v61 }
 0x39e   : > { %v757_v63 = vpop.f32.mrf.mxu0 }
 0x39f   : > { %v758_v0 = vadd.f32 %v944_v62, %v757_v63 }
 0x3a0   : > { %v996_v1 = vpop.f32.mrf.mxu0 }
 0x3a1   : > { %v764_v2 = vadd.f32 %v758_v0, %v607_v46 }
 0x3a2   : > { %v760_v3 = vpop.f32.mrf.mxu0 }
 0x3a3   : > { %v761_v4 = vadd.f32 %v944_v62, %v760_v3  ;;  %v768_v5 = vsel %vm515_vm1, %v764_v2, 0.0 }
 0x3a4   : > { %769 = vadd.xlane.f32.xlu0 %v768_v5  ;;  %v997_v6 = vpop.f32.mrf.mxu0 }
 0x3a5   : > { %v765_v7 = vadd.f32 %v761_v4, %v608_v47 }
 0x3a7   : > { %v771_v8 = vsel %vm515_vm1, %v765_v7, 0.0 }
 0x3a8   : > { %772 = vadd.xlane.f32.xlu1 %v771_v8 }
 0x42d   : > { %v770_v9 = vpop.xlane.xlu0 %769 }
 0x42e   : > { %v774_v10 = vmul.f32 0.03125, %v770_v9 }
 0x430   : > { %v776_v11 = vsub.f32 %v764_v2, %v774_v10 }
 0x431   : > { %v773_v12 = vpop.xlane.xlu1 %772 }
 0x432   : > { %v775_v13 = vmul.f32 0.03125, %v773_v12  ;;  %v778_v14 = vmul.f32 %v776_v11, %v776_v11 }
 0x434   : > { %v777_v15 = vsub.f32 %v765_v7, %v775_v13  ;;  %v780_v16 = vsel %vm515_vm1, %v778_v14, 0.0 }
 0x435   : > { %781 = vadd.xlane.f32.xlu0 %v780_v16 }
 0x436   : > { %v779_v17 = vmul.f32 %v777_v15, %v777_v15 }
 0x438   : > { %v783_v18 = vsel %vm515_vm1, %v779_v17, 0.0 }
 0x439   : > { %784 = vadd.xlane.f32.xlu1 %v783_v18 }
 0x4be   : > { %v782_v19 = vpop.xlane.xlu0 %781 }
 0x4bf   : > { %v786_v20 = vmul.f32 0.03125, %v782_v19 }
 0x4c1   : > { %v788_v21 = vadd.f32 1e-05, %v786_v20 }
 0x4c2   : > { %v785_v22 = vpop.xlane.xlu1 %784 }
 0x4c3   : > { %1020 = vrsqrt.f32 %v788_v21  ;;  %v787_v23 = vmul.f32 0.03125, %v785_v22 }
 0x4c5   : > { %v789_v24 = vadd.f32 1e-05, %v787_v23 }
 0x4c7   : > { %1022 = vrsqrt.f32 %v789_v24 }
 0x4d0   : > { %v1021_v25 = vpop.eup %1020 }
 0x4d1   : > { %v792_v27 = vmul.f32 %v1021_v25, %v776_v11 }
 0x4d3   : > { %v800_v29 = vmul.f32 %v950_v26, %v792_v27 }
 0x4d4   : > { %v1023_v30 = vpop.eup %1022 }
 0x4d5   : > { %v808_v31 = vadd.f32 %v951_v28, %v800_v29  ;;  %v793_v32 = vmul.f32 %v1023_v30, %v777_v15 }
 0x4d7   : > { %v812_v33 = vsel %vm515_vm1, %v808_v31, 0.0  ;;  %v801_v34 = vmul.f32 %v950_v26, %v793_v32 }
 0x4d8   : > { %813 = vadd.xlane.f32.xlu0 %v812_v33 }
 0x4d9   : > { %v809_v35 = vadd.f32 %v951_v28, %v801_v34 }
 0x4db   : > { %v815_v36 = vsel %vm515_vm1, %v809_v35, 0.0 }
 0x4dc   : > { %816 = vadd.xlane.f32.xlu1 %v815_v36 }
 0x561   : > { %v814_v37 = vpop.xlane.xlu0 %813 }
 0x562   : > { %v818_v38 = vmul.f32 0.03125, %v814_v37 }
 0x564   : > { %v820_v39 = vsub.f32 %v808_v31, %v818_v38 }
 0x565   : > { %v817_v40 = vpop.xlane.xlu1 %816 }
 0x566   : > { %v819_v41 = vmul.f32 0.03125, %v817_v40  ;;  %v822_v42 = vmul.f32 %v820_v39, %v820_v39 }
 0x568   : > { %v821_v43 = vsub.f32 %v809_v35, %v819_v41  ;;  %v824_v44 = vsel %vm515_vm1, %v822_v42, 0.0 }
 0x569   : > { %825 = vadd.xlane.f32.xlu0 %v824_v44 }
 0x56a   : > { %v823_v45 = vmul.f32 %v821_v43, %v821_v43 }
 0x56c   : > { %v827_v46 = vsel %vm515_vm1, %v823_v45, 0.0 }
 0x56d   : > { %828 = vadd.xlane.f32.xlu1 %v827_v46 }
 0x5f2   : > { %v826_v47 = vpop.xlane.xlu0 %825 }
 0x5f3   : > { %v830_v48 = vmul.f32 0.03125, %v826_v47 }
 0x5f5   : > { %v832_v49 = vadd.f32 1e-05, %v830_v48 }
 0x5f6   : > { %v829_v50 = vpop.xlane.xlu1 %828 }
 0x5f7   : > { %1024 = vrsqrt.f32 %v832_v49  ;;  %v831_v51 = vmul.f32 0.03125, %v829_v50 }
 0x5f9   : > { %v833_v52 = vadd.f32 1e-05, %v831_v51 }
 0x5fb   : > { %1026 = vrsqrt.f32 %v833_v52 }
 0x604   : > { %v1025_v53 = vpop.eup %1024 }
 0x605   : > { %v836_v55 = vmul.f32 %v1025_v53, %v820_v39 }
 0x607   : > { %v844_v57 = vmul.f32 %v952_v54, %v836_v55 }
 0x608   : > { %v1027_v58 = vpop.eup %1026 }
 0x609   : > { %v852_v59 = vadd.f32 %v953_v56, %v844_v57  ;;  %v837_v60 = vmul.f32 %v1027_v58, %v821_v43 }
 0x60b   : > { %854 = vst.msk [vmem:[%s487_s15] sm:$0xff] %vm515_vm1, %v852_v59  ;;  %v845_v61 = vmul.f32 %v952_v54, %v837_v60 }
 0x60d   : > { %v853_v62 = vadd.f32 %v953_v56, %v845_v61 }
 0x60f   : > { %855 = vst.msk [vmem:[%s487_s15 + $0x8] sm:$0xff] %vm515_vm1, %v853_v62 }
 0x610 PF: > { %s24_s29 = sadd.s32 1, %s1034_s29  }
 0x611   : > { %p21_p4 = scmp.ge.s32.totalorder %s24_s29, 4  }
 0x613   :  { %23 = sbr.rel (!%p21_p4) target bundleno = 1 (0x1), region = 109 }

</bundles_post_ra>
